<compile_context>
chip_gen: v7x
topology: tpu7x:2x2x1
jax: 0.10.0
libtpu: 0.0.40
codegen_flags: <defaults>
</compile_context>

<pallas_src>
import functools

import jax
import jax.numpy as jnp
from jax.experimental import pallas as pl
from jax.experimental.pallas import tpu as pltpu


def _round_up(n, m):
    return ((n + m - 1) // m) * m


# ----------------------------- Pallas kernel ------------------------------ #

def _decoder_block_kernel(x_ref, w1_ref, s1_ref, w2_ref, s2_ref, o_ref,
                          y1p_ref, *, TH, W, Wp, NT, CR1, CR2):
    """One (batch, row-tile) grid step of [Conv3x3 + BN + ReLU] x 2.

    x_ref:   (1, 1, (TH+5)*Wp, Cp) bf16  padded input tile (2-row halo each
             side + 1 guard row), flattened (row*Wp, Cp): implicit-GEMM layout.
    w1_ref:  (9, Cp, Cm) bf16   conv1 weights (BN1 scale folded in)
    s1_ref:  (1, Cm)     f32    BN1 shift
    w2_ref:  (9, Cm, Co) bf16   conv2 weights (BN2 scale folded in)
    s2_ref:  (1, Co)     f32    BN2 shift
    o_ref:   (1, TH, W, Co) f32 output row tile (lane-dense, Co % 128 == 0)
    y1p_ref: ((TH+4)*Wp, Cm) bf16 scratch: intermediate activation in the same
             flattened layout (guard row, TH+2 rows incl. halo, slack row).
    """
    t = pl.program_id(1)
    Cm = w1_ref.shape[2]
    Co = w2_ref.shape[2]

    # Guard row 0: supplies the zero read for conv2's top-left taps (col -1 of
    # a row wraps into the previous row's right padding in the flat layout).
    # Only the border needs zeros; the interior is fully rewritten each step.
    y1p_ref[0:Wp, :] = jnp.zeros((Wp, Cm), jnp.bfloat16)

    shift1 = s1_ref[...]
    shift2 = s2_ref[...]
    # Width-padding columns must be zero: they double as conv2's l/r padding.
    col_ok = jax.lax.broadcasted_iota(jnp.int32, (Wp, Cm), 0) < W

    # ---------------- conv1 + BN + ReLU (implicit GEMM, 9 taps) ------------ #
    n_rows1 = TH + 2                                # y1 rows incl. 1-row halo
    for r0 in range(0, n_rows1, CR1):
        cr = min(CR1, n_rows1 - r0)
        m = cr * Wp
        acc = None
        for dh in range(3):
            for dw in range(3):
                off = (r0 + dh) * Wp + dw
                part = jnp.dot(x_ref[0, 0, off:off + m, :],
                               w1_ref[dh * 3 + dw],
                               preferred_element_type=jnp.float32)
                acc = part if acc is None else acc + part
        y1 = jnp.maximum(acc + shift1, 0.0).reshape(cr, Wp, Cm)
        y1 = jnp.where(col_ok[None, :, :], y1, 0.0).astype(jnp.bfloat16)
        y1p_ref[(r0 + 1) * Wp:(r0 + 1 + cr) * Wp, :] = y1.reshape(m, Cm)

    # conv2's zero padding at the image top/bottom: the halo row that falls
    # outside the image must be zero (first / last row tile only).
    @pl.when(t == 0)
    def _():
        y1p_ref[Wp:2 * Wp, :] = jnp.zeros((Wp, Cm), jnp.bfloat16)

    @pl.when(t == NT - 1)
    def _():
        y1p_ref[(TH + 2) * Wp:(TH + 3) * Wp, :] = jnp.zeros((Wp, Cm),
                                                            jnp.bfloat16)

    # ---------------- conv2 + BN + ReLU (implicit GEMM, 9 taps) ------------ #
    for i0 in range(0, TH, CR2):
        cr = min(CR2, TH - i0)
        m = cr * Wp
        acc = None
        for dh in range(3):
            for dw in range(3):
                off = (i0 + dh + 1) * Wp + dw - 1
                part = jnp.dot(y1p_ref[off:off + m, :],
                               w2_ref[dh * 3 + dw],
                               preferred_element_type=jnp.float32)
                acc = part if acc is None else acc + part
        y2 = jnp.maximum(acc + shift2, 0.0).reshape(cr, Wp, Co)
        o_ref[0, i0:i0 + cr, :, :] = y2[:, :W, :]


# ------------------------------- JAX glue ---------------------------------- #

def _vmem_limit_bytes():
    """Generation-aware scoped-VMEM limit (~48 MiB on 64 MiB v7x parts,
    ~96 MiB on 128 MiB v5e/v6e parts)."""
    try:
        cap = pltpu.get_tpu_info().vmem_capacity_bytes
    except Exception:
        cap = 64 * 1024 * 1024
    return int(min(100 * 1024 * 1024, cap - cap // 4))


def _pick_row_tile(H, Wp, Cp, Cm, Co, budget=24 * 1024 * 1024):
    """Largest row tile whose per-step VMEM stays well under the scoped limit."""
    def est(th):
        return ((th + 5) * Wp * Cp * 2 * 2        # input tile, bf16, 2 buffers
                + (th + 4) * Wp * Cm * 2          # y1 scratch, bf16
                + th * Wp * Co * 4 * 2)           # output tile, f32, 2 buffers
    for th in (256, 128, 64, 32, 16, 8):
        if H % th == 0 and est(th) <= budget:
            return th
    return H


def _fold_conv_bn(w_oihw, bias, gamma, beta, mean, var, cin_pad, cout_pad,
                  eps=1e-5):
    """Fold BN (inference) into the conv weights.

    Returns w: (9, cin_pad, cout_pad) bf16 with BN scale folded in, and
    shift: (1, cout_pad) f32 with shift = beta + scale * (bias - mean).
    """
    cout, cin, kh, kw = w_oihw.shape
    scale = gamma / jnp.sqrt(var + eps)
    w = jnp.transpose(w_oihw, (2, 3, 1, 0)).reshape(kh * kw, cin, cout)
    w = w * scale[None, None, :]
    w = jnp.pad(w, ((0, 0), (0, cin_pad - cin), (0, cout_pad - cout)))
    shift = beta + scale * (bias - mean)
    shift = jnp.pad(shift, (0, cout_pad - cout)).reshape(1, cout_pad)
    return w.astype(jnp.bfloat16), shift.astype(jnp.float32)


def _fused_conv_block(x_nchw, params, row_tile=None):
    """[Conv2dSame(3x3)->BN->ReLU] x 2, fused into one pallas_call."""
    B, Cin, H, W = x_nchw.shape
    Cmid = params["w1"].shape[0]
    Cout = params["w2"].shape[0]
    assert W % 8 == 0, "width must be a multiple of 8 for the fused kernel"

    # TODO(synk): on v6e/v7x round channels above 128 to multiples of 256
    #             (2x256^2 MXU); pysegcnn decoder channel counts here are small.
    Cp = _round_up(Cin, 128)          # conv1 input channels (padded)
    Cm = _round_up(Cmid, 128)         # conv1 out / conv2 in channels (padded)
    Co = _round_up(Cout, 128)         # conv2 output channels (padded)
    Wp = _round_up(W + 2, 16)         # padded width (layout-friendly)

    TH = row_tile if row_tile is not None else _pick_row_tile(H, Wp, Cp, Cm, Co)
    assert H % TH == 0, "row_tile must divide the feature height"
    NT = H // TH
    FL = (TH + 5) * Wp                # flat rows per input tile

    # GEMM M-chunk (~256 rows) accumulated in registers before a single store.
    CR = max(1, 256 // Wp)
    CR1 = min(TH + 2, CR)
    CR2 = min(TH, CR)

    # Input prep (one fused XLA pass): NCHW->NHWC, bf16, spatial pad (2-row
    # halo top / 2+1-guard bottom, 1 col left, right pad to Wp), channel pad,
    # overlapping row tiles, flatten (row, col) for the implicit GEMM.
    x_nhwc = jnp.transpose(x_nchw, (0, 2, 3, 1)).astype(jnp.bfloat16)
    xp = jnp.pad(x_nhwc, ((0, 0), (2, 3), (1, Wp - W - 1), (0, Cp - Cin)))
    tiles = jnp.stack([xp[:, t * TH:t * TH + TH + 5] for t in range(NT)],
                      axis=1)                       # (B, NT, TH+5, Wp, Cp)
    x_tiles = tiles.reshape(B, NT, FL, Cp)

    w1, s1 = _fold_conv_bn(params["w1"], params["b1"], params["g1"],
                           params["be1"], params["m1"], params["v1"], Cp, Cm)
    w2, s2 = _fold_conv_bn(params["w2"], params["b2"], params["g2"],
                           params["be2"], params["m2"], params["v2"], Cm, Co)

    kernel = functools.partial(_decoder_block_kernel, TH=TH, W=W, Wp=Wp,
                               NT=NT, CR1=CR1, CR2=CR2)

    out = pl.pallas_call(
        kernel,
        out_shape=jax.ShapeDtypeStruct((B, H, W, Co), jnp.float32),
        grid_spec=pltpu.PrefetchScalarGridSpec(
            num_scalar_prefetch=0,
            grid=(B, NT),
            in_specs=[
                pl.BlockSpec((1, 1, FL, Cp), lambda b, t: (b, t, 0, 0)),
                # weights / shifts are grid-invariant -> single-buffered
                pl.BlockSpec((9, Cp, Cm), lambda b, t: (0, 0, 0),
                             pipeline_mode=pl.Buffered(1)),
                pl.BlockSpec((1, Cm), lambda b, t: (0, 0),
                             pipeline_mode=pl.Buffered(1)),
                pl.BlockSpec((9, Cm, Co), lambda b, t: (0, 0, 0),
                             pipeline_mode=pl.Buffered(1)),
                pl.BlockSpec((1, Co), lambda b, t: (0, 0),
                             pipeline_mode=pl.Buffered(1)),
            ],
            out_specs=pl.BlockSpec((1, TH, W, Co), lambda b, t: (b, t, 0, 0)),
            scratch_shapes=[
                pltpu.VMEM(((TH + 4) * Wp, Cm), jnp.bfloat16),   # y1 (padded)
            ],
        ),
        compiler_params=pltpu.CompilerParams(
            # batch and row tiles are independent -> megacore shards both
            dimension_semantics=("parallel", "parallel"),
            vmem_limit_bytes=_vmem_limit_bytes(),
        ),
    )(x_tiles, w1, s1, w2, s2)

    # TODO(synk): for tiny Cout, pack (W, Cout) into lanes (or emit bf16) to
    #             cut the padded-channel HBM writeback.
    out = out[..., :Cout]                        # drop channel padding
    return jnp.transpose(out, (0, 3, 1, 2))      # NHWC -> NCHW (module API)


def nearest_upsample_to(x_nchw, size_hw):
    """Match F.interpolate(mode='nearest', size=size_hw) for integer factors."""
    B, C, H, W = x_nchw.shape
    Ht, Wt = size_hw
    assert Ht % H == 0 and Wt % W == 0
    x = jnp.repeat(x_nchw, Ht // H, axis=2)
    x = jnp.repeat(x, Wt // W, axis=3)
    return x


def decoder_block_forward(params, x, feature, indices, skip, row_tile=None):
    """DecoderBlock.forward: upsample -> (skip concat) -> conv block."""
    # TODO(synk): max_unpool2d variant (indices-driven scatter) not implemented;
    # this block uses the interpolate-based upsampling (ConvBnReluUpsample).
    del indices
    x = nearest_upsample_to(x, feature.shape[2:])
    if skip:
        x = jnp.concatenate([x, feature], axis=1)
    return _fused_conv_block(x, params, row_tile=row_tile)


# ----------------------------- reference (JAX) ----------------------------- #

def _ref_layer(x, w, b, g, be, m, v, eps=1e-5):
    y = jax.lax.conv_general_dilated(
        x, w, window_strides=(1, 1), padding=((1, 1), (1, 1)),
        dimension_numbers=("NCHW", "OIHW", "NCHW"))
    y = y + b[None, :, None, None]
    y = g[None, :, None, None] * (y - m[None, :, None, None]) / \
        jnp.sqrt(v[None, :, None, None] + eps) + be[None, :, None, None]
    return jnp.maximum(y, 0.0)


def _ref_forward(params, x, feature, skip):
    x = nearest_upsample_to(x, feature.shape[2:])
    if skip:
        x = jnp.concatenate([x, feature], axis=1)
    x = _ref_layer(x, params["w1"], params["b1"], params["g1"],
                   params["be1"], params["m1"], params["v1"])
    x = _ref_layer(x, params["w2"], params["b2"], params["g2"],
                   params["be2"], params["m2"], params["v2"])
    return x


# --------------------------------- main ------------------------------------ #

if __name__ == "__main__":
    key = jax.random.PRNGKey(0)
    k = jax.random.split(key, 10)

    B = 2
    C_x, C_feat = 4, 4           # decoder input / encoder feature channels
    Hx, Wx = 8, 8                # decoder spatial (pre-upsample)
    Hf, Wf = 16, 16              # encoder feature spatial (upsample target)
    skip = True
    in_channels = C_x + C_feat   # 8 (after skip concat)
    out_channels = 4

    params = {
        "w1": 0.1 * jax.random.normal(k[0], (out_channels, in_channels, 3, 3),
                                      jnp.float32),
        "b1": 0.05 * jax.random.normal(k[1], (out_channels,), jnp.float32),
        "g1": 1.0 + 0.1 * jax.random.normal(k[2], (out_channels,), jnp.float32),
        "be1": 0.1 * jax.random.normal(k[3], (out_channels,), jnp.float32),
        "m1": 0.01 * jnp.arange(out_channels, dtype=jnp.float32),
        "v1": 1.0 + 0.01 * jnp.arange(out_channels, dtype=jnp.float32),
        "w2": 0.1 * jax.random.normal(k[4], (out_channels, out_channels, 3, 3),
                                      jnp.float32),
        "b2": 0.05 * jax.random.normal(k[5], (out_channels,), jnp.float32),
        "g2": 1.0 + 0.1 * jax.random.normal(k[6], (out_channels,), jnp.float32),
        "be2": 0.1 * jax.random.normal(k[7], (out_channels,), jnp.float32),
        "m2": 0.02 * jnp.arange(out_channels, dtype=jnp.float32),
        "v2": 1.0 + 0.02 * jnp.arange(out_channels, dtype=jnp.float32),
    }

    x = jax.random.normal(k[8], (B, C_x, Hx, Wx), jnp.float32)
    feature = jax.random.normal(k[9], (B, C_feat, Hf, Wf), jnp.float32)
    indices = None   # interpolate-based upsampling does not use indices

    # row_tile=8 -> 2 row tiles per image: exercises the halo / boundary path.
    fwd = jax.jit(functools.partial(decoder_block_forward, skip=skip,
                                    row_tile=8))
    out = jax.block_until_ready(fwd(params, x, feature, indices))

    ref = jax.block_until_ready(_ref_forward(params, x, feature, skip))
    assert out.shape == (B, out_channels, Hf, Wf), out.shape
    assert jnp.allclose(out, ref, rtol=1e-2, atol=1e-2), "mismatch vs reference"

    print("KERNEL_OK")
</pallas_src>

<mosaic_0001>
module attributes {stable_mosaic.version = 11 : i64} {
  func.func @_decoder_block_kernel(%arg0: i32, %arg1: i32, %arg2: memref<1x1x416x128xbf16, #tpu.memory_space<vmem>>, %arg3: memref<9x128x128xbf16, #tpu.memory_space<vmem>>, %arg4: memref<1x128xf32, #tpu.memory_space<vmem>>, %arg5: memref<9x128x128xbf16, #tpu.memory_space<vmem>>, %arg6: memref<1x128xf32, #tpu.memory_space<vmem>>, %arg7: memref<1x8x16x128xf32, #tpu.memory_space<vmem>>, %arg8: memref<384x128xbf16, #tpu.memory_space<vmem>>) attributes {dimension_semantics = [#tpu.dimension_semantics<parallel>, #tpu.dimension_semantics<parallel>], iteration_bounds = array<i64: 2, 2>, scalar_prefetch = 0 : i64, scratch_operands = 1 : i64, tpu.core_type = #tpu.core_type<tc>, window_params = [{transform_indices = @transform_0, window_bounds = array<i64: 1, 1, 416, 128>}, {pipeline_mode = #tpu.pipeline_mode<synchronous>, transform_indices = @transform_1, window_bounds = array<i64: 9, 128, 128>}, {pipeline_mode = #tpu.pipeline_mode<synchronous>, transform_indices = @transform_2, window_bounds = array<i64: 1, 128>}, {pipeline_mode = #tpu.pipeline_mode<synchronous>, transform_indices = @transform_3, window_bounds = array<i64: 9, 128, 128>}, {pipeline_mode = #tpu.pipeline_mode<synchronous>, transform_indices = @transform_4, window_bounds = array<i64: 1, 128>}, {transform_indices = @transform_5, window_bounds = array<i64: 1, 8, 16, 128>}]} {
    %cst = arith.constant 0.000000e+00 : bf16
    %0 = vector.broadcast %cst : bf16 to vector<32x128xbf16>
    %c0 = arith.constant 0 : index
    %c0_0 = arith.constant 0 : index
    %1 = vector.load %arg8[%c0, %c0_0] : memref<384x128xbf16, #tpu.memory_space<vmem>>, vector<32x128xbf16>
    tpu.vector_store %arg8[%c0, %c0_0], %0 {strides = array<i32>} : memref<384x128xbf16, #tpu.memory_space<vmem>>, vector<32x128xbf16>,
    %c0_1 = arith.constant 0 : index
    %c0_2 = arith.constant 0 : index
    %2 = vector.load %arg4[%c0_1, %c0_2] : memref<1x128xf32, #tpu.memory_space<vmem>>, vector<1x128xf32>
    %c0_3 = arith.constant 0 : index
    %c0_4 = arith.constant 0 : index
    %3 = vector.load %arg6[%c0_3, %c0_4] : memref<1x128xf32, #tpu.memory_space<vmem>>, vector<1x128xf32>
    %4 = tpu.iota {dimensions = array<i32: 0>} : vector<32x128xi32>
    %c16_i32 = arith.constant 16 : i32
    %5 = vector.broadcast %c16_i32 : i32 to vector<32x128xi32>
    %6 = arith.cmpi slt, %4, %5 : vector<32x128xi32>
    %c0_5 = arith.constant 0 : index
    %c0_6 = arith.constant 0 : index
    %c0_7 = arith.constant 0 : index
    %c0_8 = arith.constant 0 : index
    %7 = vector.load %arg2[%c0_5, %c0_6, %c0_7, %c0_8] : memref<1x1x416x128xbf16, #tpu.memory_space<vmem>>, vector<1x1x256x128xbf16>
    %8 = vector.shape_cast %7 : vector<1x1x256x128xbf16> to vector<256x128xbf16>
    %c0_9 = arith.constant 0 : index
    %c0_10 = arith.constant 0 : index
    %c0_11 = arith.constant 0 : index
    %9 = vector.load %arg3[%c0_9, %c0_10, %c0_11] : memref<9x128x128xbf16, #tpu.memory_space<vmem>>, vector<1x128x128xbf16>
    %10 = vector.shape_cast %9 : vector<1x128x128xbf16> to vector<128x128xbf16>
    %cst_12 = arith.constant dense<0.000000e+00> : vector<256x128xf32>
    %11 = tpu.matmul %8, %10, %cst_12 {dimension_numbers = #tpu.dot_dimension_numbers<[1], [0], [0], [1], [0, 0, 1, 1], [], []>} : vector<256x128xbf16>, vector<128x128xbf16>, vector<256x128xf32> -> vector<256x128xf32>
    %c0_13 = arith.constant 0 : index
    %c0_14 = arith.constant 0 : index
    %c1 = arith.constant 1 : index
    %c0_15 = arith.constant 0 : index
    %12 = vector.load %arg2[%c0_13, %c0_14, %c1, %c0_15] : memref<1x1x416x128xbf16, #tpu.memory_space<vmem>>, vector<1x1x256x128xbf16>
    %13 = vector.shape_cast %12 : vector<1x1x256x128xbf16> to vector<256x128xbf16>
    %c1_16 = arith.constant 1 : index
    %c0_17 = arith.constant 0 : index
    %c0_18 = arith.constant 0 : index
    %14 = vector.load %arg3[%c1_16, %c0_17, %c0_18] : memref<9x128x128xbf16, #tpu.memory_space<vmem>>, vector<1x128x128xbf16>
    %15 = vector.shape_cast %14 : vector<1x128x128xbf16> to vector<128x128xbf16>
    %cst_19 = arith.constant dense<0.000000e+00> : vector<256x128xf32>
    %16 = tpu.matmul %13, %15, %cst_19 {dimension_numbers = #tpu.dot_dimension_numbers<[1], [0], [0], [1], [0, 0, 1, 1], [], []>} : vector<256x128xbf16>, vector<128x128xbf16>, vector<256x128xf32> -> vector<256x128xf32>
    %17 = arith.addf %11, %16 : vector<256x128xf32>
    %c0_20 = arith.constant 0 : index
    %c0_21 = arith.constant 0 : index
    %c2 = arith.constant 2 : index
    %c0_22 = arith.constant 0 : index
    %18 = vector.load %arg2[%c0_20, %c0_21, %c2, %c0_22] : memref<1x1x416x128xbf16, #tpu.memory_space<vmem>>, vector<1x1x256x128xbf16>
    %19 = vector.shape_cast %18 : vector<1x1x256x128xbf16> to vector<256x128xbf16>
    %c2_23 = arith.constant 2 : index
    %c0_24 = arith.constant 0 : index
    %c0_25 = arith.constant 0 : index
    %20 = vector.load %arg3[%c2_23, %c0_24, %c0_25] : memref<9x128x128xbf16, #tpu.memory_space<vmem>>, vector<1x128x128xbf16>
    %21 = vector.shape_cast %20 : vector<1x128x128xbf16> to vector<128x128xbf16>
    %cst_26 = arith.constant dense<0.000000e+00> : vector<256x128xf32>
    %22 = tpu.matmul %19, %21, %cst_26 {dimension_numbers = #tpu.dot_dimension_numbers<[1], [0], [0], [1], [0, 0, 1, 1], [], []>} : vector<256x128xbf16>, vector<128x128xbf16>, vector<256x128xf32> -> vector<256x128xf32>
    %23 = arith.addf %17, %22 : vector<256x128xf32>
    %c0_27 = arith.constant 0 : index
    %c0_28 = arith.constant 0 : index
    %c32 = arith.constant 32 : index
    %c0_29 = arith.constant 0 : index
    %24 = vector.load %arg2[%c0_27, %c0_28, %c32, %c0_29] : memref<1x1x416x128xbf16, #tpu.memory_space<vmem>>, vector<1x1x256x128xbf16>
    %25 = vector.shape_cast %24 : vector<1x1x256x128xbf16> to vector<256x128xbf16>
    %c3 = arith.constant 3 : index
    %c0_30 = arith.constant 0 : index
    %c0_31 = arith.constant 0 : index
    %26 = vector.load %arg3[%c3, %c0_30, %c0_31] : memref<9x128x128xbf16, #tpu.memory_space<vmem>>, vector<1x128x128xbf16>
    %27 = vector.shape_cast %26 : vector<1x128x128xbf16> to vector<128x128xbf16>
    %cst_32 = arith.constant dense<0.000000e+00> : vector<256x128xf32>
    %28 = tpu.matmul %25, %27, %cst_32 {dimension_numbers = #tpu.dot_dimension_numbers<[1], [0], [0], [1], [0, 0, 1, 1], [], []>} : vector<256x128xbf16>, vector<128x128xbf16>, vector<256x128xf32> -> vector<256x128xf32>
    %29 = arith.addf %23, %28 : vector<256x128xf32>
    %c0_33 = arith.constant 0 : index
    %c0_34 = arith.constant 0 : index
    %c33 = arith.constant 33 : index
    %c0_35 = arith.constant 0 : index
    %30 = vector.load %arg2[%c0_33, %c0_34, %c33, %c0_35] : memref<1x1x416x128xbf16, #tpu.memory_space<vmem>>, vector<1x1x256x128xbf16>
    %31 = vector.shape_cast %30 : vector<1x1x256x128xbf16> to vector<256x128xbf16>
    %c4 = arith.constant 4 : index
    %c0_36 = arith.constant 0 : index
    %c0_37 = arith.constant 0 : index
    %32 = vector.load %arg3[%c4, %c0_36, %c0_37] : memref<9x128x128xbf16, #tpu.memory_space<vmem>>, vector<1x128x128xbf16>
    %33 = vector.shape_cast %32 : vector<1x128x128xbf16> to vector<128x128xbf16>
    %cst_38 = arith.constant dense<0.000000e+00> : vector<256x128xf32>
    %34 = tpu.matmul %31, %33, %cst_38 {dimension_numbers = #tpu.dot_dimension_numbers<[1], [0], [0], [1], [0, 0, 1, 1], [], []>} : vector<256x128xbf16>, vector<128x128xbf16>, vector<256x128xf32> -> vector<256x128xf32>
    %35 = arith.addf %29, %34 : vector<256x128xf32>
    %c0_39 = arith.constant 0 : index
    %c0_40 = arith.constant 0 : index
    %c34 = arith.constant 34 : index
    %c0_41 = arith.constant 0 : index
    %36 = vector.load %arg2[%c0_39, %c0_40, %c34, %c0_41] : memref<1x1x416x128xbf16, #tpu.memory_space<vmem>>, vector<1x1x256x128xbf16>
    %37 = vector.shape_cast %36 : vector<1x1x256x128xbf16> to vector<256x128xbf16>
    %c5 = arith.constant 5 : index
    %c0_42 = arith.constant 0 : index
    %c0_43 = arith.constant 0 : index
    %38 = vector.load %arg3[%c5, %c0_42, %c0_43] : memref<9x128x128xbf16, #tpu.memory_space<vmem>>, vector<1x128x128xbf16>
    %39 = vector.shape_cast %38 : vector<1x128x128xbf16> to vector<128x128xbf16>
    %cst_44 = arith.constant dense<0.000000e+00> : vector<256x128xf32>
    %40 = tpu.matmul %37, %39, %cst_44 {dimension_numbers = #tpu.dot_dimension_numbers<[1], [0], [0], [1], [0, 0, 1, 1], [], []>} : vector<256x128xbf16>, vector<128x128xbf16>, vector<256x128xf32> -> vector<256x128xf32>
    %41 = arith.addf %35, %40 : vector<256x128xf32>
    %c0_45 = arith.constant 0 : index
    %c0_46 = arith.constant 0 : index
    %c64 = arith.constant 64 : index
    %c0_47 = arith.constant 0 : index
    %42 = vector.load %arg2[%c0_45, %c0_46, %c64, %c0_47] : memref<1x1x416x128xbf16, #tpu.memory_space<vmem>>, vector<1x1x256x128xbf16>
    %43 = vector.shape_cast %42 : vector<1x1x256x128xbf16> to vector<256x128xbf16>
    %c6 = arith.constant 6 : index
    %c0_48 = arith.constant 0 : index
    %c0_49 = arith.constant 0 : index
    %44 = vector.load %arg3[%c6, %c0_48, %c0_49] : memref<9x128x128xbf16, #tpu.memory_space<vmem>>, vector<1x128x128xbf16>
    %45 = vector.shape_cast %44 : vector<1x128x128xbf16> to vector<128x128xbf16>
    %cst_50 = arith.constant dense<0.000000e+00> : vector<256x128xf32>
    %46 = tpu.matmul %43, %45, %cst_50 {dimension_numbers = #tpu.dot_dimension_numbers<[1], [0], [0], [1], [0, 0, 1, 1], [], []>} : vector<256x128xbf16>, vector<128x128xbf16>, vector<256x128xf32> -> vector<256x128xf32>
    %47 = arith.addf %41, %46 : vector<256x128xf32>
    %c0_51 = arith.constant 0 : index
    %c0_52 = arith.constant 0 : index
    %c65 = arith.constant 65 : index
    %c0_53 = arith.constant 0 : index
    %48 = vector.load %arg2[%c0_51, %c0_52, %c65, %c0_53] : memref<1x1x416x128xbf16, #tpu.memory_space<vmem>>, vector<1x1x256x128xbf16>
    %49 = vector.shape_cast %48 : vector<1x1x256x128xbf16> to vector<256x128xbf16>
    %c7 = arith.constant 7 : index
    %c0_54 = arith.constant 0 : index
    %c0_55 = arith.constant 0 : index
    %50 = vector.load %arg3[%c7, %c0_54, %c0_55] : memref<9x128x128xbf16, #tpu.memory_space<vmem>>, vector<1x128x128xbf16>
    %51 = vector.shape_cast %50 : vector<1x128x128xbf16> to vector<128x128xbf16>
    %cst_56 = arith.constant dense<0.000000e+00> : vector<256x128xf32>
    %52 = tpu.matmul %49, %51, %cst_56 {dimension_numbers = #tpu.dot_dimension_numbers<[1], [0], [0], [1], [0, 0, 1, 1], [], []>} : vector<256x128xbf16>, vector<128x128xbf16>, vector<256x128xf32> -> vector<256x128xf32>
    %53 = arith.addf %47, %52 : vector<256x128xf32>
    %c0_57 = arith.constant 0 : index
    %c0_58 = arith.constant 0 : index
    %c66 = arith.constant 66 : index
    %c0_59 = arith.constant 0 : index
    %54 = vector.load %arg2[%c0_57, %c0_58, %c66, %c0_59] : memref<1x1x416x128xbf16, #tpu.memory_space<vmem>>, vector<1x1x256x128xbf16>
    %55 = vector.shape_cast %54 : vector<1x1x256x128xbf16> to vector<256x128xbf16>
    %c8 = arith.constant 8 : index
    %c0_60 = arith.constant 0 : index
    %c0_61 = arith.constant 0 : index
    %56 = vector.load %arg3[%c8, %c0_60, %c0_61] : memref<9x128x128xbf16, #tpu.memory_space<vmem>>, vector<1x128x128xbf16>
    %57 = vector.shape_cast %56 : vector<1x128x128xbf16> to vector<128x128xbf16>
    %cst_62 = arith.constant dense<0.000000e+00> : vector<256x128xf32>
    %58 = tpu.matmul %55, %57, %cst_62 {dimension_numbers = #tpu.dot_dimension_numbers<[1], [0], [0], [1], [0, 0, 1, 1], [], []>} : vector<256x128xbf16>, vector<128x128xbf16>, vector<256x128xf32> -> vector<256x128xf32>
    %59 = arith.addf %53, %58 : vector<256x128xf32>
    %60 = vector.broadcast %2 : vector<1x128xf32> to vector<256x128xf32>
    %61 = arith.addf %59, %60 : vector<256x128xf32>
    %cst_63 = arith.constant 0.000000e+00 : f32
    %62 = vector.broadcast %cst_63 : f32 to vector<256x128xf32>
    %63 = arith.maximumf %61, %62 : vector<256x128xf32>
    %64 = vector.shape_cast %63 : vector<256x128xf32> to vector<8x32x128xf32>
    %65 = vector.shape_cast %6 : vector<32x128xi1> to vector<1x32x128xi1>
    %cst_64 = arith.constant 0.000000e+00 : f32
    %66 = vector.shape_cast %65 : vector<1x32x128xi1> to vector<1x32x128xi1>
    %67 = vector.broadcast %66 : vector<1x32x128xi1> to vector<8x32x128xi1>
    %68 = vector.broadcast %cst_64 : f32 to vector<8x32x128xf32>
    %69 = arith.select %67, %64, %68 : vector<8x32x128xi1>, vector<8x32x128xf32>
    %70 = arith.truncf %69 : vector<8x32x128xf32> to vector<8x32x128xbf16>
    %71 = vector.shape_cast %70 : vector<8x32x128xbf16> to vector<256x128xbf16>
    %c32_65 = arith.constant 32 : index
    %c0_66 = arith.constant 0 : index
    %72 = vector.load %arg8[%c32_65, %c0_66] : memref<384x128xbf16, #tpu.memory_space<vmem>>, vector<256x128xbf16>
    tpu.vector_store %arg8[%c32_65, %c0_66], %71 {strides = array<i32>} : memref<384x128xbf16, #tpu.memory_space<vmem>>, vector<256x128xbf16>,
    %c0_67 = arith.constant 0 : index
    %c0_68 = arith.constant 0 : index
    %c256 = arith.constant 256 : index
    %c0_69 = arith.constant 0 : index
    %73 = vector.load %arg2[%c0_67, %c0_68, %c256, %c0_69] : memref<1x1x416x128xbf16, #tpu.memory_space<vmem>>, vector<1x1x64x128xbf16>
    %74 = vector.shape_cast %73 : vector<1x1x64x128xbf16> to vector<64x128xbf16>
    %c0_70 = arith.constant 0 : index
    %c0_71 = arith.constant 0 : index
    %c0_72 = arith.constant 0 : index
    %75 = vector.load %arg3[%c0_70, %c0_71, %c0_72] : memref<9x128x128xbf16, #tpu.memory_space<vmem>>, vector<1x128x128xbf16>
    %76 = vector.shape_cast %75 : vector<1x128x128xbf16> to vector<128x128xbf16>
    %cst_73 = arith.constant dense<0.000000e+00> : vector<64x128xf32>
    %77 = tpu.matmul %74, %76, %cst_73 {dimension_numbers = #tpu.dot_dimension_numbers<[1], [0], [0], [1], [0, 0, 1, 1], [], []>} : vector<64x128xbf16>, vector<128x128xbf16>, vector<64x128xf32> -> vector<64x128xf32>
    %c0_74 = arith.constant 0 : index
    %c0_75 = arith.constant 0 : index
    %c257 = arith.constant 257 : index
    %c0_76 = arith.constant 0 : index
    %78 = vector.load %arg2[%c0_74, %c0_75, %c257, %c0_76] : memref<1x1x416x128xbf16, #tpu.memory_space<vmem>>, vector<1x1x64x128xbf16>
    %79 = vector.shape_cast %78 : vector<1x1x64x128xbf16> to vector<64x128xbf16>
    %c1_77 = arith.constant 1 : index
    %c0_78 = arith.constant 0 : index
    %c0_79 = arith.constant 0 : index
    %80 = vector.load %arg3[%c1_77, %c0_78, %c0_79] : memref<9x128x128xbf16, #tpu.memory_space<vmem>>, vector<1x128x128xbf16>
    %81 = vector.shape_cast %80 : vector<1x128x128xbf16> to vector<128x128xbf16>
    %cst_80 = arith.constant dense<0.000000e+00> : vector<64x128xf32>
    %82 = tpu.matmul %79, %81, %cst_80 {dimension_numbers = #tpu.dot_dimension_numbers<[1], [0], [0], [1], [0, 0, 1, 1], [], []>} : vector<64x128xbf16>, vector<128x128xbf16>, vector<64x128xf32> -> vector<64x128xf32>
    %83 = arith.addf %77, %82 : vector<64x128xf32>
    %c0_81 = arith.constant 0 : index
    %c0_82 = arith.constant 0 : index
    %c258 = arith.constant 258 : index
    %c0_83 = arith.constant 0 : index
    %84 = vector.load %arg2[%c0_81, %c0_82, %c258, %c0_83] : memref<1x1x416x128xbf16, #tpu.memory_space<vmem>>, vector<1x1x64x128xbf16>
    %85 = vector.shape_cast %84 : vector<1x1x64x128xbf16> to vector<64x128xbf16>
    %c2_84 = arith.constant 2 : index
    %c0_85 = arith.constant 0 : index
    %c0_86 = arith.constant 0 : index
    %86 = vector.load %arg3[%c2_84, %c0_85, %c0_86] : memref<9x128x128xbf16, #tpu.memory_space<vmem>>, vector<1x128x128xbf16>
    %87 = vector.shape_cast %86 : vector<1x128x128xbf16> to vector<128x128xbf16>
    %cst_87 = arith.constant dense<0.000000e+00> : vector<64x128xf32>
    %88 = tpu.matmul %85, %87, %cst_87 {dimension_numbers = #tpu.dot_dimension_numbers<[1], [0], [0], [1], [0, 0, 1, 1], [], []>} : vector<64x128xbf16>, vector<128x128xbf16>, vector<64x128xf32> -> vector<64x128xf32>
    %89 = arith.addf %83, %88 : vector<64x128xf32>
    %c0_88 = arith.constant 0 : index
    %c0_89 = arith.constant 0 : index
    %c288 = arith.constant 288 : index
    %c0_90 = arith.constant 0 : index
    %90 = vector.load %arg2[%c0_88, %c0_89, %c288, %c0_90] : memref<1x1x416x128xbf16, #tpu.memory_space<vmem>>, vector<1x1x64x128xbf16>
    %91 = vector.shape_cast %90 : vector<1x1x64x128xbf16> to vector<64x128xbf16>
    %c3_91 = arith.constant 3 : index
    %c0_92 = arith.constant 0 : index
    %c0_93 = arith.constant 0 : index
    %92 = vector.load %arg3[%c3_91, %c0_92, %c0_93] : memref<9x128x128xbf16, #tpu.memory_space<vmem>>, vector<1x128x128xbf16>
    %93 = vector.shape_cast %92 : vector<1x128x128xbf16> to vector<128x128xbf16>
    %cst_94 = arith.constant dense<0.000000e+00> : vector<64x128xf32>
    %94 = tpu.matmul %91, %93, %cst_94 {dimension_numbers = #tpu.dot_dimension_numbers<[1], [0], [0], [1], [0, 0, 1, 1], [], []>} : vector<64x128xbf16>, vector<128x128xbf16>, vector<64x128xf32> -> vector<64x128xf32>
    %95 = arith.addf %89, %94 : vector<64x128xf32>
    %c0_95 = arith.constant 0 : index
    %c0_96 = arith.constant 0 : index
    %c289 = arith.constant 289 : index
    %c0_97 = arith.constant 0 : index
    %96 = vector.load %arg2[%c0_95, %c0_96, %c289, %c0_97] : memref<1x1x416x128xbf16, #tpu.memory_space<vmem>>, vector<1x1x64x128xbf16>
    %97 = vector.shape_cast %96 : vector<1x1x64x128xbf16> to vector<64x128xbf16>
    %c4_98 = arith.constant 4 : index
    %c0_99 = arith.constant 0 : index
    %c0_100 = arith.constant 0 : index
    %98 = vector.load %arg3[%c4_98, %c0_99, %c0_100] : memref<9x128x128xbf16, #tpu.memory_space<vmem>>, vector<1x128x128xbf16>
    %99 = vector.shape_cast %98 : vector<1x128x128xbf16> to vector<128x128xbf16>
    %cst_101 = arith.constant dense<0.000000e+00> : vector<64x128xf32>
    %100 = tpu.matmul %97, %99, %cst_101 {dimension_numbers = #tpu.dot_dimension_numbers<[1], [0], [0], [1], [0, 0, 1, 1], [], []>} : vector<64x128xbf16>, vector<128x128xbf16>, vector<64x128xf32> -> vector<64x128xf32>
    %101 = arith.addf %95, %100 : vector<64x128xf32>
    %c0_102 = arith.constant 0 : index
    %c0_103 = arith.constant 0 : index
    %c290 = arith.constant 290 : index
    %c0_104 = arith.constant 0 : index
    %102 = vector.load %arg2[%c0_102, %c0_103, %c290, %c0_104] : memref<1x1x416x128xbf16, #tpu.memory_space<vmem>>, vector<1x1x64x128xbf16>
    %103 = vector.shape_cast %102 : vector<1x1x64x128xbf16> to vector<64x128xbf16>
    %c5_105 = arith.constant 5 : index
    %c0_106 = arith.constant 0 : index
    %c0_107 = arith.constant 0 : index
    %104 = vector.load %arg3[%c5_105, %c0_106, %c0_107] : memref<9x128x128xbf16, #tpu.memory_space<vmem>>, vector<1x128x128xbf16>
    %105 = vector.shape_cast %104 : vector<1x128x128xbf16> to vector<128x128xbf16>
    %cst_108 = arith.constant dense<0.000000e+00> : vector<64x128xf32>
    %106 = tpu.matmul %103, %105, %cst_108 {dimension_numbers = #tpu.dot_dimension_numbers<[1], [0], [0], [1], [0, 0, 1, 1], [], []>} : vector<64x128xbf16>, vector<128x128xbf16>, vector<64x128xf32> -> vector<64x128xf32>
    %107 = arith.addf %101, %106 : vector<64x128xf32>
    %c0_109 = arith.constant 0 : index
    %c0_110 = arith.constant 0 : index
    %c320 = arith.constant 320 : index
    %c0_111 = arith.constant 0 : index
    %108 = vector.load %arg2[%c0_109, %c0_110, %c320, %c0_111] : memref<1x1x416x128xbf16, #tpu.memory_space<vmem>>, vector<1x1x64x128xbf16>
    %109 = vector.shape_cast %108 : vector<1x1x64x128xbf16> to vector<64x128xbf16>
    %c6_112 = arith.constant 6 : index
    %c0_113 = arith.constant 0 : index
    %c0_114 = arith.constant 0 : index
    %110 = vector.load %arg3[%c6_112, %c0_113, %c0_114] : memref<9x128x128xbf16, #tpu.memory_space<vmem>>, vector<1x128x128xbf16>
    %111 = vector.shape_cast %110 : vector<1x128x128xbf16> to vector<128x128xbf16>
    %cst_115 = arith.constant dense<0.000000e+00> : vector<64x128xf32>
    %112 = tpu.matmul %109, %111, %cst_115 {dimension_numbers = #tpu.dot_dimension_numbers<[1], [0], [0], [1], [0, 0, 1, 1], [], []>} : vector<64x128xbf16>, vector<128x128xbf16>, vector<64x128xf32> -> vector<64x128xf32>
    %113 = arith.addf %107, %112 : vector<64x128xf32>
    %c0_116 = arith.constant 0 : index
    %c0_117 = arith.constant 0 : index
    %c321 = arith.constant 321 : index
    %c0_118 = arith.constant 0 : index
    %114 = vector.load %arg2[%c0_116, %c0_117, %c321, %c0_118] : memref<1x1x416x128xbf16, #tpu.memory_space<vmem>>, vector<1x1x64x128xbf16>
    %115 = vector.shape_cast %114 : vector<1x1x64x128xbf16> to vector<64x128xbf16>
    %c7_119 = arith.constant 7 : index
    %c0_120 = arith.constant 0 : index
    %c0_121 = arith.constant 0 : index
    %116 = vector.load %arg3[%c7_119, %c0_120, %c0_121] : memref<9x128x128xbf16, #tpu.memory_space<vmem>>, vector<1x128x128xbf16>
    %117 = vector.shape_cast %116 : vector<1x128x128xbf16> to vector<128x128xbf16>
    %cst_122 = arith.constant dense<0.000000e+00> : vector<64x128xf32>
    %118 = tpu.matmul %115, %117, %cst_122 {dimension_numbers = #tpu.dot_dimension_numbers<[1], [0], [0], [1], [0, 0, 1, 1], [], []>} : vector<64x128xbf16>, vector<128x128xbf16>, vector<64x128xf32> -> vector<64x128xf32>
    %119 = arith.addf %113, %118 : vector<64x128xf32>
    %c0_123 = arith.constant 0 : index
    %c0_124 = arith.constant 0 : index
    %c322 = arith.constant 322 : index
    %c0_125 = arith.constant 0 : index
    %120 = vector.load %arg2[%c0_123, %c0_124, %c322, %c0_125] : memref<1x1x416x128xbf16, #tpu.memory_space<vmem>>, vector<1x1x64x128xbf16>
    %121 = vector.shape_cast %120 : vector<1x1x64x128xbf16> to vector<64x128xbf16>
    %c8_126 = arith.constant 8 : index
    %c0_127 = arith.constant 0 : index
    %c0_128 = arith.constant 0 : index
    %122 = vector.load %arg3[%c8_126, %c0_127, %c0_128] : memref<9x128x128xbf16, #tpu.memory_space<vmem>>, vector<1x128x128xbf16>
    %123 = vector.shape_cast %122 : vector<1x128x128xbf16> to vector<128x128xbf16>
    %cst_129 = arith.constant dense<0.000000e+00> : vector<64x128xf32>
    %124 = tpu.matmul %121, %123, %cst_129 {dimension_numbers = #tpu.dot_dimension_numbers<[1], [0], [0], [1], [0, 0, 1, 1], [], []>} : vector<64x128xbf16>, vector<128x128xbf16>, vector<64x128xf32> -> vector<64x128xf32>
    %125 = arith.addf %119, %124 : vector<64x128xf32>
    %126 = vector.broadcast %2 : vector<1x128xf32> to vector<64x128xf32>
    %127 = arith.addf %125, %126 : vector<64x128xf32>
    %cst_130 = arith.constant 0.000000e+00 : f32
    %128 = vector.broadcast %cst_130 : f32 to vector<64x128xf32>
    %129 = arith.maximumf %127, %128 : vector<64x128xf32>
    %130 = vector.shape_cast %129 : vector<64x128xf32> to vector<2x32x128xf32>
    %131 = vector.shape_cast %6 : vector<32x128xi1> to vector<1x32x128xi1>
    %cst_131 = arith.constant 0.000000e+00 : f32
    %132 = vector.shape_cast %131 : vector<1x32x128xi1> to vector<1x32x128xi1>
    %133 = vector.broadcast %132 : vector<1x32x128xi1> to vector<2x32x128xi1>
    %134 = vector.broadcast %cst_131 : f32 to vector<2x32x128xf32>
    %135 = arith.select %133, %130, %134 : vector<2x32x128xi1>, vector<2x32x128xf32>
    %136 = arith.truncf %135 : vector<2x32x128xf32> to vector<2x32x128xbf16>
    %137 = vector.shape_cast %136 : vector<2x32x128xbf16> to vector<64x128xbf16>
    %c288_132 = arith.constant 288 : index
    %c0_133 = arith.constant 0 : index
    %138 = vector.load %arg8[%c288_132, %c0_133] : memref<384x128xbf16, #tpu.memory_space<vmem>>, vector<64x128xbf16>
    tpu.vector_store %arg8[%c288_132, %c0_133], %137 {strides = array<i32>} : memref<384x128xbf16, #tpu.memory_space<vmem>>, vector<64x128xbf16>,
    %c0_i32 = arith.constant 0 : i32
    %139 = arith.cmpi eq, %arg1, %c0_i32 : i32
    %140 = arith.extui %139 : i1 to i32
    %c0_i32_134 = arith.constant 0 : i32
    %141 = arith.cmpi ne, %140, %c0_i32_134 : i32
    scf.if %141 {
      %cst_190 = arith.constant 0.000000e+00 : bf16
      %198 = vector.broadcast %cst_190 : bf16 to vector<32x128xbf16>
      %c32_191 = arith.constant 32 : index
      %c0_192 = arith.constant 0 : index
      %199 = vector.load %arg8[%c32_191, %c0_192] : memref<384x128xbf16, #tpu.memory_space<vmem>>, vector<32x128xbf16>
      tpu.vector_store %arg8[%c32_191, %c0_192], %198 {strides = array<i32>} : memref<384x128xbf16, #tpu.memory_space<vmem>>, vector<32x128xbf16>,
    } else {
    }
    %c1_i32 = arith.constant 1 : i32
    %142 = arith.cmpi eq, %arg1, %c1_i32 : i32
    %143 = arith.extui %142 : i1 to i32
    %c0_i32_135 = arith.constant 0 : i32
    %144 = arith.cmpi ne, %143, %c0_i32_135 : i32
    scf.if %144 {
      %cst_190 = arith.constant 0.000000e+00 : bf16
      %198 = vector.broadcast %cst_190 : bf16 to vector<32x128xbf16>
      %c320_191 = arith.constant 320 : index
      %c0_192 = arith.constant 0 : index
      %199 = vector.load %arg8[%c320_191, %c0_192] : memref<384x128xbf16, #tpu.memory_space<vmem>>, vector<32x128xbf16>
      tpu.vector_store %arg8[%c320_191, %c0_192], %198 {strides = array<i32>} : memref<384x128xbf16, #tpu.memory_space<vmem>>, vector<32x128xbf16>,
    } else {
    }
    %c31 = arith.constant 31 : index
    %c0_136 = arith.constant 0 : index
    %145 = vector.load %arg8[%c31, %c0_136] : memref<384x128xbf16, #tpu.memory_space<vmem>>, vector<256x128xbf16>
    %c0_137 = arith.constant 0 : index
    %c0_138 = arith.constant 0 : index
    %c0_139 = arith.constant 0 : index
    %146 = vector.load %arg5[%c0_137, %c0_138, %c0_139] : memref<9x128x128xbf16, #tpu.memory_space<vmem>>, vector<1x128x128xbf16>
    %147 = vector.shape_cast %146 : vector<1x128x128xbf16> to vector<128x128xbf16>
    %cst_140 = arith.constant dense<0.000000e+00> : vector<256x128xf32>
    %148 = tpu.matmul %145, %147, %cst_140 {dimension_numbers = #tpu.dot_dimension_numbers<[1], [0], [0], [1], [0, 0, 1, 1], [], []>} : vector<256x128xbf16>, vector<128x128xbf16>, vector<256x128xf32> -> vector<256x128xf32>
    %c32_141 = arith.constant 32 : index
    %c0_142 = arith.constant 0 : index
    %149 = vector.load %arg8[%c32_141, %c0_142] : memref<384x128xbf16, #tpu.memory_space<vmem>>, vector<256x128xbf16>
    %c1_143 = arith.constant 1 : index
    %c0_144 = arith.constant 0 : index
    %c0_145 = arith.constant 0 : index
    %150 = vector.load %arg5[%c1_143, %c0_144, %c0_145] : memref<9x128x128xbf16, #tpu.memory_space<vmem>>, vector<1x128x128xbf16>
    %151 = vector.shape_cast %150 : vector<1x128x128xbf16> to vector<128x128xbf16>
    %cst_146 = arith.constant dense<0.000000e+00> : vector<256x128xf32>
    %152 = tpu.matmul %149, %151, %cst_146 {dimension_numbers = #tpu.dot_dimension_numbers<[1], [0], [0], [1], [0, 0, 1, 1], [], []>} : vector<256x128xbf16>, vector<128x128xbf16>, vector<256x128xf32> -> vector<256x128xf32>
    %153 = arith.addf %148, %152 : vector<256x128xf32>
    %c33_147 = arith.constant 33 : index
    %c0_148 = arith.constant 0 : index
    %154 = vector.load %arg8[%c33_147, %c0_148] : memref<384x128xbf16, #tpu.memory_space<vmem>>, vector<256x128xbf16>
    %c2_149 = arith.constant 2 : index
    %c0_150 = arith.constant 0 : index
    %c0_151 = arith.constant 0 : index
    %155 = vector.load %arg5[%c2_149, %c0_150, %c0_151] : memref<9x128x128xbf16, #tpu.memory_space<vmem>>, vector<1x128x128xbf16>
    %156 = vector.shape_cast %155 : vector<1x128x128xbf16> to vector<128x128xbf16>
    %cst_152 = arith.constant dense<0.000000e+00> : vector<256x128xf32>
    %157 = tpu.matmul %154, %156, %cst_152 {dimension_numbers = #tpu.dot_dimension_numbers<[1], [0], [0], [1], [0, 0, 1, 1], [], []>} : vector<256x128xbf16>, vector<128x128xbf16>, vector<256x128xf32> -> vector<256x128xf32>
    %158 = arith.addf %153, %157 : vector<256x128xf32>
    %c63 = arith.constant 63 : index
    %c0_153 = arith.constant 0 : index
    %159 = vector.load %arg8[%c63, %c0_153] : memref<384x128xbf16, #tpu.memory_space<vmem>>, vector<256x128xbf16>
    %c3_154 = arith.constant 3 : index
    %c0_155 = arith.constant 0 : index
    %c0_156 = arith.constant 0 : index
    %160 = vector.load %arg5[%c3_154, %c0_155, %c0_156] : memref<9x128x128xbf16, #tpu.memory_space<vmem>>, vector<1x128x128xbf16>
    %161 = vector.shape_cast %160 : vector<1x128x128xbf16> to vector<128x128xbf16>
    %cst_157 = arith.constant dense<0.000000e+00> : vector<256x128xf32>
    %162 = tpu.matmul %159, %161, %cst_157 {dimension_numbers = #tpu.dot_dimension_numbers<[1], [0], [0], [1], [0, 0, 1, 1], [], []>} : vector<256x128xbf16>, vector<128x128xbf16>, vector<256x128xf32> -> vector<256x128xf32>
    %163 = arith.addf %158, %162 : vector<256x128xf32>
    %c64_158 = arith.constant 64 : index
    %c0_159 = arith.constant 0 : index
    %164 = vector.load %arg8[%c64_158, %c0_159] : memref<384x128xbf16, #tpu.memory_space<vmem>>, vector<256x128xbf16>
    %c4_160 = arith.constant 4 : index
    %c0_161 = arith.constant 0 : index
    %c0_162 = arith.constant 0 : index
    %165 = vector.load %arg5[%c4_160, %c0_161, %c0_162] : memref<9x128x128xbf16, #tpu.memory_space<vmem>>, vector<1x128x128xbf16>
    %166 = vector.shape_cast %165 : vector<1x128x128xbf16> to vector<128x128xbf16>
    %cst_163 = arith.constant dense<0.000000e+00> : vector<256x128xf32>
    %167 = tpu.matmul %164, %166, %cst_163 {dimension_numbers = #tpu.dot_dimension_numbers<[1], [0], [0], [1], [0, 0, 1, 1], [], []>} : vector<256x128xbf16>, vector<128x128xbf16>, vector<256x128xf32> -> vector<256x128xf32>
    %168 = arith.addf %163, %167 : vector<256x128xf32>
    %c65_164 = arith.constant 65 : index
    %c0_165 = arith.constant 0 : index
    %169 = vector.load %arg8[%c65_164, %c0_165] : memref<384x128xbf16, #tpu.memory_space<vmem>>, vector<256x128xbf16>
    %c5_166 = arith.constant 5 : index
    %c0_167 = arith.constant 0 : index
    %c0_168 = arith.constant 0 : index
    %170 = vector.load %arg5[%c5_166, %c0_167, %c0_168] : memref<9x128x128xbf16, #tpu.memory_space<vmem>>, vector<1x128x128xbf16>
    %171 = vector.shape_cast %170 : vector<1x128x128xbf16> to vector<128x128xbf16>
    %cst_169 = arith.constant dense<0.000000e+00> : vector<256x128xf32>
    %172 = tpu.matmul %169, %171, %cst_169 {dimension_numbers = #tpu.dot_dimension_numbers<[1], [0], [0], [1], [0, 0, 1, 1], [], []>} : vector<256x128xbf16>, vector<128x128xbf16>, vector<256x128xf32> -> vector<256x128xf32>
    %173 = arith.addf %168, %172 : vector<256x128xf32>
    %c95 = arith.constant 95 : index
    %c0_170 = arith.constant 0 : index
    %174 = vector.load %arg8[%c95, %c0_170] : memref<384x128xbf16, #tpu.memory_space<vmem>>, vector<256x128xbf16>
    %c6_171 = arith.constant 6 : index
    %c0_172 = arith.constant 0 : index
    %c0_173 = arith.constant 0 : index
    %175 = vector.load %arg5[%c6_171, %c0_172, %c0_173] : memref<9x128x128xbf16, #tpu.memory_space<vmem>>, vector<1x128x128xbf16>
    %176 = vector.shape_cast %175 : vector<1x128x128xbf16> to vector<128x128xbf16>
    %cst_174 = arith.constant dense<0.000000e+00> : vector<256x128xf32>
    %177 = tpu.matmul %174, %176, %cst_174 {dimension_numbers = #tpu.dot_dimension_numbers<[1], [0], [0], [1], [0, 0, 1, 1], [], []>} : vector<256x128xbf16>, vector<128x128xbf16>, vector<256x128xf32> -> vector<256x128xf32>
    %178 = arith.addf %173, %177 : vector<256x128xf32>
    %c96 = arith.constant 96 : index
    %c0_175 = arith.constant 0 : index
    %179 = vector.load %arg8[%c96, %c0_175] : memref<384x128xbf16, #tpu.memory_space<vmem>>, vector<256x128xbf16>
    %c7_176 = arith.constant 7 : index
    %c0_177 = arith.constant 0 : index
    %c0_178 = arith.constant 0 : index
    %180 = vector.load %arg5[%c7_176, %c0_177, %c0_178] : memref<9x128x128xbf16, #tpu.memory_space<vmem>>, vector<1x128x128xbf16>
    %181 = vector.shape_cast %180 : vector<1x128x128xbf16> to vector<128x128xbf16>
    %cst_179 = arith.constant dense<0.000000e+00> : vector<256x128xf32>
    %182 = tpu.matmul %179, %181, %cst_179 {dimension_numbers = #tpu.dot_dimension_numbers<[1], [0], [0], [1], [0, 0, 1, 1], [], []>} : vector<256x128xbf16>, vector<128x128xbf16>, vector<256x128xf32> -> vector<256x128xf32>
    %183 = arith.addf %178, %182 : vector<256x128xf32>
    %c97 = arith.constant 97 : index
    %c0_180 = arith.constant 0 : index
    %184 = vector.load %arg8[%c97, %c0_180] : memref<384x128xbf16, #tpu.memory_space<vmem>>, vector<256x128xbf16>
    %c8_181 = arith.constant 8 : index
    %c0_182 = arith.constant 0 : index
    %c0_183 = arith.constant 0 : index
    %185 = vector.load %arg5[%c8_181, %c0_182, %c0_183] : memref<9x128x128xbf16, #tpu.memory_space<vmem>>, vector<1x128x128xbf16>
    %186 = vector.shape_cast %185 : vector<1x128x128xbf16> to vector<128x128xbf16>
    %cst_184 = arith.constant dense<0.000000e+00> : vector<256x128xf32>
    %187 = tpu.matmul %184, %186, %cst_184 {dimension_numbers = #tpu.dot_dimension_numbers<[1], [0], [0], [1], [0, 0, 1, 1], [], []>} : vector<256x128xbf16>, vector<128x128xbf16>, vector<256x128xf32> -> vector<256x128xf32>
    %188 = arith.addf %183, %187 : vector<256x128xf32>
    %189 = vector.broadcast %3 : vector<1x128xf32> to vector<256x128xf32>
    %190 = arith.addf %188, %189 : vector<256x128xf32>
    %cst_185 = arith.constant 0.000000e+00 : f32
    %191 = vector.broadcast %cst_185 : f32 to vector<256x128xf32>
    %192 = arith.maximumf %190, %191 : vector<256x128xf32>
    %193 = vector.shape_cast %192 : vector<256x128xf32> to vector<8x32x128xf32>
    %194 = vector.extract_strided_slice %193 {offsets = [0, 0, 0], sizes = [8, 16, 128], strides = [1, 1, 1]} : vector<8x32x128xf32> to vector<8x16x128xf32>
    %c0_186 = arith.constant 0 : index
    %c0_187 = arith.constant 0 : index
    %c0_188 = arith.constant 0 : index
    %c0_189 = arith.constant 0 : index
    %195 = vector.load %arg7[%c0_186, %c0_187, %c0_188, %c0_189] : memref<1x8x16x128xf32, #tpu.memory_space<vmem>>, vector<1x8x16x128xf32>
    %196 = vector.shape_cast %195 : vector<1x8x16x128xf32> to vector<8x16x128xf32>
    %197 = vector.shape_cast %194 : vector<8x16x128xf32> to vector<1x8x16x128xf32>
    tpu.vector_store %arg7[%c0_186, %c0_187, %c0_188, %c0_189], %197 {strides = array<i32>} : memref<1x8x16x128xf32, #tpu.memory_space<vmem>>, vector<1x8x16x128xf32>,
    return
  }
  func.func @transform_0(%arg0: i32, %arg1: i32) -> (i32, i32, i32, i32) {
    %c0_i32 = arith.constant 0 : i32
    %c0_i32_0 = arith.constant 0 : i32
    %c0_i32_1 = arith.constant 0 : i32
    return %arg0, %arg1, %c0_i32, %c0_i32_0 : i32, i32, i32, i32
  }
  func.func @transform_1(%arg0: i32, %arg1: i32) -> (i32, i32, i32) {
    %c0_i32 = arith.constant 0 : i32
    %c0_i32_0 = arith.constant 0 : i32
    %c0_i32_1 = arith.constant 0 : i32
    %c0_i32_2 = arith.constant 0 : i32
    return %c0_i32, %c0_i32_0, %c0_i32_1 : i32, i32, i32
  }
  func.func @transform_2(%arg0: i32, %arg1: i32) -> (i32, i32) {
    %c0_i32 = arith.constant 0 : i32
    %c0_i32_0 = arith.constant 0 : i32
    %c0_i32_1 = arith.constant 0 : i32
    return %c0_i32, %c0_i32_0 : i32, i32
  }
  func.func @transform_3(%arg0: i32, %arg1: i32) -> (i32, i32, i32) {
    %c0_i32 = arith.constant 0 : i32
    %c0_i32_0 = arith.constant 0 : i32
    %c0_i32_1 = arith.constant 0 : i32
    %c0_i32_2 = arith.constant 0 : i32
    return %c0_i32, %c0_i32_0, %c0_i32_1 : i32, i32, i32
  }
  func.func @transform_4(%arg0: i32, %arg1: i32) -> (i32, i32) {
    %c0_i32 = arith.constant 0 : i32
    %c0_i32_0 = arith.constant 0 : i32
    %c0_i32_1 = arith.constant 0 : i32
    return %c0_i32, %c0_i32_0 : i32, i32
  }
  func.func @transform_5(%arg0: i32, %arg1: i32) -> (i32, i32, i32, i32) {
    %c0_i32 = arith.constant 0 : i32
    %c0_i32_0 = arith.constant 0 : i32
    %c0_i32_1 = arith.constant 0 : i32
    return %arg0, %arg1, %c0_i32, %c0_i32_0 : i32, i32, i32, i32
  }
}

</mosaic_0001>

<bundles_post_ra>
// kernel: decoder_block_forward.1
= control target key start
LH: loop header
LB: loop body
LE: loop exit
PB: predicated region body
PF: predicated region fallthrough
CT: control target
= control target key end

     0   :  { %s11455_s18 = smov 0   ;;  %s11457_s19 = smov 0   ;;  %s13999_s0 = inlined_call_operand.vmem [shape: bf16[2,2,416,128], index: 0, kind: input, shape index: {}]   ;;  %s14000_s1 = inlined_call_operand.vmem [shape: bf16[9,128,128], index: 1, kind: input, shape index: {}]   ;;  %s14001_s2 = inlined_call_operand.vmem [shape: f32[1,128], index: 2, kind: input, shape index: {}]   ;;  %s14002_s3 = inlined_call_operand.vmem [shape: bf16[9,128,128], index: 3, kind: input, shape index: {}]   ;;  %s14003_s4 = inlined_call_operand.vmem [shape: f32[1,128], index: 4, kind: input, shape index: {}]   ;;  %s14004_s5 = inlined_call_operand.vmem [shape: f32[2,16,16,128], index: 5, kind: output, shape index: {}]  }
   0x1   :  { %s11459_s20 = smov 0   ;;  %s11461_s21 = smov 0  }
   0x2   :  { %s11463_s22 = smov 0  }
   0x3 LB: > { %s24_s23 = sadd.s32 1, %s11411_s20  ;;  %s27_s24 = sadd.s32 1, %s11415_s21  ;;  %s11419_s22 = sphi %s11463_s22, %s15_s22   ;;  %s11415_s21 = sphi %s11461_s21, %s14010_s21   ;;  %s11411_s20 = sphi %s11459_s20, %s14009_s20   ;;  %s11407_s19 = sphi %s11457_s19, %s14008_s19   ;;  %s11403_s18 = sphi %s11455_s18, %s14007_s18  }
   0x4   : > { %p25_p0 = scmp.ge.s32.totalorder %s24_s23, 2  ;;  %p8647_p1 = scmp.ge.s32.totalorder %s11419_s22, 1 }
   0x5   : > { %p207_p2 = scmp.lt.s32.totalorder %s11419_s22, 5 }
   0x6   : > { %s14012_s23 = smov (%p25_p0, %s24_s23), 0  ;;  %s14014_s24 = smov (!%p25_p0, %s27_s24), %s11415_s21 }
   0x7   : > { %p208_p3 = pnand %p8647_p1, %p207_p2  ;;  %p29_p4 = scmp.ge.s32.totalorder %s14014_s24, 2 }
   0x8   : > { %v11490_v0 = vld [vmem:[%s14003_s4] ss:$0 sm:$0xff] (!%p208_p3)  ;;  %v11421_v2 = vmov (!%p208_p3), 0   ;;  %p244_p5 = scmp.lt.s32.totalorder (!%p208_p3), %s11407_s19, 1  ;;  %v11055_v4 = vld [vmem:[%s14000_s1 + $0x48] sm:$0xff] (!%p208_p3)   ;;  %p246_p6 = scmp.lt.s32.totalorder (!%p208_p3), %s11403_s18, 1 }
   0x9   : > { %s14016_s24 = smov (%p29_p4, %s14014_s24), 0  ;;  %211 = sbr.rel (%p208_p3) target bundleno = 1251 (0x4e3), region = 40 }
   0xa   : > { %v11053_v1 = vld [vmem:[%s14000_s1 + $0x40] sm:$0xff] (!%p208_p3)   ;;  %266 = vst [vmem:[#allocation2 + $0x8] sm:$0xff] (!%p208_p3), %v11421_v2  ;;  %v11056_v5 = vld [vmem:[%s14000_s1 + $0x8] sm:$0xff] (!%p208_p3)   ;;  %v11057_v6 = vld [vmem:[%s14000_s1 + $0x50] sm:$0xff] (!%p208_p3)   ;;  %s8649_s26 = sshll.u32 (!%p208_p3), %s11403_s18, 3  ;;  %vm1031_vm1 = vcmask (!%p208_p3), 1046528  }
   0xb   : > { %9911 = vmatprep.subr.bf16.mxu0 (!%p208_p3), %v11053_v1  ;;  %v11054_v3 = vld [vmem:[%s14000_s1] sm:$0xff] (!%p208_p3)   ;;  %v11058_v7 = vld [vmem:[%s14000_s1 + $0x10] sm:$0xff] (!%p208_p3)   ;;  %v11059_v8 = vld [vmem:[%s14000_s1 + $0x58] sm:$0xff] (!%p208_p3)   ;;  %p256_p7 = scmp.lt.s32.totalorder (!%p208_p3), %s8649_s26, 15  ;;  %vm427_vm0 = vsmask.f32 (!%p208_p3), 7424 }
   0xc   : > { %9912 = vmatpush3.bf16.msra.mxu0 (!%p208_p3), %v11053_v1  ;;  %9959 = vmatprep.subr.bf16.mxu1 (!%p208_p3), %v11054_v3  ;;  %v11060_v9 = vld [vmem:[%s14000_s1 + $0x18] sm:$0xff] (!%p208_p3)   ;;  %v11061_v10 = vld [vmem:[%s14000_s1 + $0x60] sm:$0xff] (!%p208_p3)   ;;  %v11063_v12 = vld [vmem:[%s14000_s1 + $0x68] sm:$0xff] (!%p208_p3)   ;;  %p9166_p8 = scmp.ne.s32.totalorder (!%p208_p3), %s11403_s18, 0 }
   0xd   : > { %9960 = vmatpush3.bf16.msra.mxu1 (!%p208_p3), %v11054_v3  ;;  %9913 = vmatprep.subr.bf16.mxu0 (!%p208_p3), %v11055_v4  ;;  %v11062_v11 = vld [vmem:[%s14000_s1 + $0x20] sm:$0xff] (!%p208_p3)   ;;  %v11064_v13 = vld [vmem:[%s14000_s1 + $0x28] sm:$0xff] (!%p208_p3)   ;;  %v11065_v18 = vld [vmem:[%s14000_s1 + $0x70] sm:$0xff] (!%p208_p3)  }
   0xe   : > { %9961 = vmatprep.subr.bf16.mxu1 (!%p208_p3), %v11056_v5  ;;  %v11066_v26 = vld [vmem:[%s14000_s1 + $0x30] sm:$0xff] (!%p208_p3)   ;;  %v11067_v30 = vld [vmem:[%s14000_s1 + $0x78] sm:$0xff] (!%p208_p3)   ;;  %v11072_v38 = vld [vmem:[%s14000_s1 + $0x80] sm:$0xff] (!%p208_p3)  }
   0xf   : > { %v11068_v34 = vld [vmem:[%s14000_s1 + $0x38] sm:$0xff] (!%p208_p3)   ;;  %v11075_v46 = vld [vmem:[%s14000_s1 + $0x88] sm:$0xff] (!%p208_p3)   ;;  %v11082_v49 = vld [vmem:[%s14000_s1 + $0xc0] sm:$0xff] (!%p208_p3)  }
  0x10   : > { %s14018_s19 = smov (!%p244_p5, %s11407_s19), 1  ;;  %9914 = vmatpush3.bf16.msra.mxu0 %v11055_v4  ;;  %s14020_s26 = smov (!%p256_p7, %s8649_s26), 15  ;;  %v11086_v54 = vld [vmem:[%s14000_s1 + $0xc8] sm:$0xff]   ;;  %v11078_v57 = vld [vmem:[%s14000_s1 + $0x90] sm:$0xff]   ;;  %v11081_v2 = vld [vmem:[%s14000_s1 + $0x98] sm:$0xff]  }
  0x11   : > { %s247_s12 = scalar_select %p246_p6, %s11403_s18, 1  ;;  %9915 = vmatprep.subr.bf16.mxu0 %v11057_v6  ;;  %9962 = vmatpush3.bf16.msra.mxu1 %v11056_v5  ;;  %v11090_v5 = vld [vmem:[%s14000_s1 + $0xd0] sm:$0xff]  }
  0x12   : > { %s11008_s15 = smul.u32 104, %s14018_s19  ;;  %9963 = vmatprep.subr.bf16.mxu1 %v11058_v7  ;;  %s8651_s6 = sshll.u32 %s14018_s19, 5 }
  0x13   : > { %s11007_s16 = smul.u32 52, %s247_s12  ;;  %s8650_s19 = sshll.u32 %s14020_s26, 1 }
  0x14   : > { %9916 = vmatpush3.bf16.msra.mxu0 %v11057_v6 }
  0x15   : > { %s250_s27 = sadd.s32 %s11008_s15, %s11007_s16  ;;  %9917 = vmatprep.subr.bf16.mxu0 %v11059_v8  ;;  %9964 = vmatpush3.bf16.msra.mxu1 %v11058_v7  ;;  %s260_s16 = sadd.s32 %s8651_s6, %s8650_s19 }
  0x16   : > { %s8648_s30 = sshll.u32 %s250_s27, 2  ;;  %9965 = vmatprep.subr.bf16.mxu1 %v11060_v9  ;;  %s8652_s27 = sshll.u32 %s260_s16, 3 }
  0x17   : > { %s11529_s11 = scalar_lea.vmem %s13999_s0, %s8648_s30  ;;  %s11547_s26 = scalar_lea.vmem %s14004_s5, %s8652_s27 }
  0x18   : > { %9918 = vmatpush3.bf16.msra.mxu0 %v11059_v8  ;;  %v278_v14 = vld [vmem:[%s11529_s11] sm:$0xf]  ;;  %v11542_v15 = vld [vmem:[%s11529_s11 + $0x4] sm:$0xf]  ;;  %v11551_v17 = vld [vmem:[%s11529_s11 + $0x8] sm:$0xff]  }
  0x19   : > { %9919 = vmatprep.subr.bf16.mxu0 %v11061_v10  ;;  %9966 = vmatpush3.bf16.msra.mxu1 %v11060_v9  ;;  %v8669_v16 = vcombine.low %v278_v14, %v11542_v15  ;;  %v436_v21 = vshll.u32 %v11551_v17, 16  ;;  %v11558_v22 = vld [vmem:[%s11529_s11 + $0x10] sm:$0xff]   ;;  %v11561_v25 = vld [vmem:[%s11529_s11 + $0x18] sm:$0xff]   ;;  %v440_v29 = vshrl.u32 %v11551_v17, 16  ;;  %v11578_v36 = vld [vmem:[%s11529_s11 + $0x20] sm:$0xff]  }
  0x1a   : > { %9967 = vmatprep.subr.bf16.mxu1 %v11062_v11  ;;  %v444_v27 = vshll.u32 %v11558_v22, 16  ;;  %v448_v31 = vshrl.u32 %v11558_v22, 16  ;;  %v452_v32 = vshll.u32 %v11561_v25, 16  ;;  %v11584_v41 = vld [vmem:[%s11529_s11 + $0x28] sm:$0xff]   ;;  %v456_v42 = vshrl.u32 %v11561_v25, 16  ;;  %v11599_v50 = vld [vmem:[%s11529_s11 + $0x30] sm:$0xff]  }
  0x1b   : > { %v429_v19 = vshrl.u32 %v8669_v16, 16  ;;  %v431_v20 = vshll.u32 %v8669_v16, 16  ;;  %9975 = vmatprep.mubr.bf16.mxu1 %v8669_v16  ;;  %v438_v24 = vrot.slane %v436_v21, 1  ;;  %v460_v43 = vshll.u32 %v11578_v36, 16  ;;  %v11602_v52 = vld [vmem:[%s11529_s11 + $0x38] sm:$0xff]   ;;  %v11617_v62 = vld [vmem:[%s11529_s11 + $0x40] sm:$0xff]  }
  0x1c   : > { %9920 = vmatpush3.bf16.msra.mxu0 %v11061_v10  ;;  %v446_v35 = vrot.slane %v444_v27, 1  ;;  %v454_v40 = vrot.slane %v452_v32, 1  ;;  %v464_v47 = vshrl.u32 %v11578_v36, 16  ;;  %v468_v48 = vshll.u32 %v11584_v41, 16  ;;  %v11625_v4 = vld [vmem:[%s11529_s11 + $0x48] sm:$0xff]   ;;  %v11631_v7 = vld [vmem:[%s11529_s11 + $0x50] sm:$0xff]  }
  0x1d   : > { %9921 = vmatprep.subr.bf16.mxu0 %v11063_v12  ;;  %9968 = vmatpush3.bf16.msra.mxu1 %v11062_v11  ;;  %v433_v23 = vrot.slane %v431_v20, 1  ;;  %v442_v37 = vor.u32 %v440_v29, %v438_v24  ;;  %v462_v51 = vrot.slane %v460_v43, 1  ;;  %v476_v58 = vshll.u32 %v11599_v50, 16  ;;  %v11091_v9 = vld [vmem:[%s14000_s1 + $0xd8] sm:$0xff]   ;;  %v11662_v29 = vld [vmem:[%s11529_s11 + $0x60] sm:$0xff]  }
  0x1e   : > { %9969 = vmatprep.subr.bf16.mxu1 %v11064_v13  ;;  %v450_v39 = vor.u32 %v448_v31, %v446_v35  ;;  %v458_v53 = vor.u32 %v456_v42, %v454_v40  ;;  %v470_v56 = vrot.slane %v468_v48, 1  ;;  %v484_v59 = vshll.u32 %v11602_v52, 16  ;;  %v11645_v16 = vld [vmem:[%s11529_s11 + $0x58] sm:$0xff]  }
  0x1f   : > { %v434_v28 = vor.u32 %v433_v23, %v429_v19  ;;  %v447_v44 = vsel %vm427_vm0, %v442_v37, %v446_v35  ;;  %v466_v55 = vor.u32 %v464_v47, %v462_v51  ;;  %v472_v61 = vshrl.u32 %v11584_v41, 16  ;;  %v11096_v35 = vld [vmem:[%s14000_s1 + $0xe8] sm:$0xff]  }
  0x20   : > { %9922 = vmatpush3.bf16.msra.mxu0 %v11063_v12  ;;  %v455_v45 = vsel %vm427_vm0, %v450_v39, %v454_v40  ;;  %v463_v60 = vsel %vm427_vm0, %v458_v53, %v462_v51  ;;  %v480_v1 = vshrl.u32 %v11599_v50, 16  ;;  %v478_v3 = vrot.slane %v476_v58, 1  ;;  %v11085_v12 = vld [vmem:[%s14000_s1 + $0xa0] sm:$0xff]   ;;  %v11101_v58 = vld [vmem:[%s14000_s1 + $0xf8] sm:$0xff]  }
  0x21   : > { %9923 = vmatprep.subr.bf16.mxu0 %v11065_v18  ;;  %9970 = vmatpush3.bf16.msra.mxu1 %v11064_v13  ;;  %v439_v33 = vsel %vm427_vm0, %v434_v28, %v438_v24  ;;  %v471_v63 = vsel %vm427_vm0, %v466_v55, %v470_v56  ;;  %v486_v6 = vrot.slane %v484_v59, 1  ;;  %v474_v8 = vor.u32 %v472_v61, %v470_v56  ;;  %v11089_v24 = vld [vmem:[%s14000_s1 + $0xa8] sm:$0xff]  }
  0x22   : > { %9971 = vmatprep.subr.bf16.mxu1 %v11066_v26  ;;  %9927 = vmatprep.mubr.bf16.mxu0 %v439_v33  ;;  %v1033_v10 = vrot.slane %v11551_v17, 1  ;;  %v482_v11 = vor.u32 %v480_v1, %v478_v3  ;;  %v1035_v13 = vrot.slane %v11558_v22, 1  ;;  %v492_v14 = vshll.u32 %v11617_v62, 16  ;;  %v11700_v55 = vld [vmem:[%s11529_s11 + $0x68] sm:$0xff]  }
  0x23   : > { %v479_v19 = vsel %vm427_vm0, %v474_v8, %v478_v3  ;;  %v500_v20 = vshll.u32 %v11625_v4, 16  ;;  %v508_v21 = vshll.u32 %v11631_v7, 16  ;;  %v496_v23 = vshrl.u32 %v11617_v62, 16  ;;  %v11093_v3 = vld [vmem:[%s11529_s11 + $0x70] sm:$0xff]  }
  0x24   : > { %9924 = vmatpush3.bf16.msra.mxu0 %v11065_v18  ;;  %v11649_v18 = vsel %vm1031_vm1, %v1033_v10, %v1035_v13  ;;  %v504_v27 = vshrl.u32 %v11625_v4, 16  ;;  %v516_v28 = vshll.u32 %v11645_v16, 16  ;;  %v512_v39 = vshrl.u32 %v11631_v7, 16 }
  0x25   : > { %9925 = vmatprep.subr.bf16.mxu0 %v11067_v30  ;;  %9972 = vmatpush3.bf16.msra.mxu1 %v11066_v26  ;;  %v494_v26 = vrot.slane %v492_v14, 1  ;;  %v502_v32 = vrot.slane %v500_v20, 1  ;;  %v510_v33 = vrot.slane %v508_v21, 1  ;;  %v520_v40 = vshrl.u32 %v11645_v16, 16 }
  0x26   : > { %9973 = vmatprep.subr.bf16.mxu1 %v11068_v34  ;;  %v11679_v43 = vrot.slane %v516_v28, 1  ;;  %v1039_v51 = vrot.slane %v11578_v36, 1  ;;  %v528_v1 = vshrl.u32 %v11662_v29, 16  ;;  %v1057_v21 = vrot.slane %v11700_v55, 1 }
  0x27   : > { %v498_v37 = vor.u32 %v496_v23, %v494_v26 }
  0x28   : > { %9926 = vmatpush3.bf16.msra.mxu0 %v11067_v30  ;;  %v11095_v30 = vld [vmem:[%s14000_s1 + $0xe0] sm:$0xff]  }
  0x29   : > { %10007 = vmatprep.subr.bf16.mxu0 %v11072_v38  ;;  %9974 = vmatpush3.bf16.msra.mxu1 %v11068_v34  ;;  %v11094_v34 = vld [vmem:[%s14000_s1 + $0xb0] sm:$0xff]   ;;  %v503_v48 = vsel %vm427_vm0, %v498_v37, %v502_v32 }
  0x2a   : > { %10055 = vmatprep.subr.bf16.mxu1 %v11082_v49 }
  0x2b   : > { %9928 = vmatmul.mubr.bf16.vlgmr.msra.gmra.mrb[0].mxu0 %v447_v44  ;;  %v1037_v44 = vrot.slane %v11561_v25, 1 }
  0x2c   : > { %10008 = vmatpush3.bf16.msra.mxu0 %v11072_v38  ;;  %9931 = vmatprep.mubr.bf16.mxu0 %v455_v45  ;;  %v1010_v38 = vld [vmem:[%s11529_s11] sm:$0xe] }
  0x2d   : > { %9976 = vmatmul.mubr.bf16.vlgmr.msra.gmra.mrb[0].mxu1 %v11551_v17  ;;  %10009 = vmatprep.subr.bf16.mxu0 %v11075_v46  ;;  %v488_v17 = vshrl.u32 %v11602_v52, 16  ;;  %v8718_v42 = vcombine.low %v1010_v38, %v11542_v15  ;;  %v11099_v15 = vld [vmem:[%s14000_s1 + $0xb8] sm:$0xff]   ;;  %v11703_v56 = vsel %vm1031_vm1, %v1037_v44, %v1039_v51 }
  0x2e   : > { %9979 = vmatprep.mubr.bf16.mxu1 %v11558_v22  ;;  %10056 = vmatpush3.bf16.msra.mxu1 %v11082_v49  ;;  %v487_v22 = vsel %vm427_vm0, %v482_v11, %v486_v6  ;;  %v11689_v49 = vsel %vm1031_vm1, %v1035_v13, %v1037_v44  ;;  %v11098_v13 = vld [vmem:[%s11529_s11 + $0x80] ss:$0 sps:$4 sm:$0x11]  }
  0x2f   : > { %10057 = vmatprep.subr.bf16.mxu1 %v11086_v54  ;;  %v490_v31 = vor.u32 %v488_v17, %v486_v6  ;;  %v1032_v47 = vrot.slane %v8718_v42, 1  ;;  %v1051_v6 = vrot.slane %v11631_v7, 1  ;;  %v1055_v17 = vrot.slane %v11662_v29, 1 }
  0x30   : > { %10010 = vmatpush3.bf16.msra.mxu0 %v11075_v46  ;;  %v524_v46 = vshll.u32 %v11662_v29, 16 }
  0x31   : > { %10011 = vmatprep.subr.bf16.mxu0 %v11078_v57  ;;  %v495_v45 = vsel %vm427_vm0, %v490_v31, %v494_v26  ;;  %v11696_v53 = vsel %vm1031_vm1, %v1032_v47, %v1033_v10  ;;  %v1053_v10 = vrot.slane %v11645_v16, 1  ;;  %v522_v26 = vor.u32 %v520_v40, %v11679_v43 }
  0x32   : > { %10058 = vmatpush3.bf16.msra.mxu1 %v11086_v54  ;;  %v1041_v54 = vrot.slane %v11584_v41, 1  ;;  %v544_v40 = vshrl.u32 %v11093_v3, 16 }
  0x33   : > { %9932 = vmatmul.mubr.bf16.gmra.mrb[4].mxu0 %v463_v60  ;;  %10059 = vmatprep.subr.bf16.mxu1 %v11090_v5  ;;  %v514_v60 = vor.u32 %v512_v39, %v510_v33  ;;  %v11753_v20 = vsel %vm1031_vm1, %v1051_v6, %v1053_v10  ;;  %v11757_v23 = vsel %vm1031_vm1, %v1053_v10, %v1055_v17  ;;  %v536_v39 = vshrl.u32 %v11700_v55, 16  ;;  %v11849_v10 = vld [vmem:[%s14000_s1 + $0x180] sm:$0xff]  }
  0x34   : > { %9935 = vmatprep.mubr.bf16.mxu0 %v471_v63  ;;  %10012 = vmatpush3.bf16.msra.mxu0 %v11078_v57  ;;  %v1043_v57 = vrot.slane %v11599_v50, 1  ;;  %v11710_v59 = vsel %vm1031_vm1, %v1039_v51, %v1041_v54  ;;  %v1047_v63 = vrot.slane %v11617_v62, 1 }
  0x35   : > { %9980 = vmatmul.mubr.bf16.gmra.mrb[4].mxu1 %v11561_v25  ;;  %10013 = vmatprep.subr.bf16.mxu0 %v11081_v2  ;;  %v11100_v25 = vld [vmem:[%s14000_s1 + $0xf0] sm:$0xff]   ;;  %v519_v11 = vsel %vm427_vm0, %v514_v60, %v11679_v43  ;;  %v11124_v60 = vld [vmem:[%s14000_s1 + $0x158] sm:$0xff]  }
  0x36   : > { %9983 = vmatprep.mubr.bf16.mxu1 %v11578_v36  ;;  %10060 = vmatpush3.bf16.msra.mxu1 %v11090_v5  ;;  %v506_v36 = vor.u32 %v504_v27, %v502_v32  ;;  %v11720_v61 = vsel %vm1031_vm1, %v1041_v54, %v1043_v57  ;;  %v11763_v27 = vsel %vm1031_vm1, %v1055_v17, %v1057_v21  ;;  %v11103_v54 = vld [vmem:[%s11529_s11 + $0x10] sm:$0xff]   ;;  %v11121_v17 = vld [vmem:[%s11529_s11 + $0x68] sm:$0xff]  }
  0x37   : > { %10061 = vmatprep.subr.bf16.mxu1 %v11091_v9 }
  0x38   : > { %10014 = vmatpush3.bf16.msra.mxu0 %v11081_v2  ;;  %v1049_v2 = vrot.slane %v11625_v4, 1  ;;  %v511_v8 = vsel %vm427_vm0, %v506_v36, %v510_v33  ;;  %v1063_v33 = vrot.slane %v11098_v13, 1  ;;  %v11106_v36 = vld [vmem:[%s11529_s11 + $0x20] sm:$0xff]  }
  0x39   : > { %10015 = vmatprep.subr.bf16.mxu0 %v11085_v12 }
  0x3a   : > { %10062 = vmatpush3.bf16.msra.mxu1 %v11091_v9  ;;  %v11737_v9 = vsel %vm1031_vm1, %v1047_v63, %v1049_v2  ;;  %v11746_v14 = vsel %vm1031_vm1, %v1049_v2, %v1051_v6  ;;  %v11129_v2 = vld [vmem:[%s14000_s1 + $0x168] sm:$0xff]  }
  0x3b   : > { %9936 = vmatmul.mubr.bf16.gmra.mrb[8].mxu0 %v479_v19  ;;  %10063 = vmatprep.subr.bf16.mxu1 %v11095_v30  ;;  %v11115_v19 = vld [vmem:[%s14000_s1 + $0x140] sm:$0xff]   ;;  %v11113_v6 = vld [vmem:[%s11529_s11 + $0x48] sm:$0xff]  }
  0x3c   : > { %9939 = vmatprep.mubr.bf16.mxu0 %v487_v22  ;;  %10016 = vmatpush3.bf16.msra.mxu0 %v11085_v12  ;;  %v11097_v12 = vld [vmem:[%s11529_s11 + $0x78] sm:$0xff]   ;;  %v526_v22 = vrot.slane %v524_v46, 1 }
  0x3d   : > { %9984 = vmatmul.mubr.bf16.gmra.mrb[8].mxu1 %v11584_v41  ;;  %10017 = vmatprep.subr.bf16.mxu0 %v11089_v24  ;;  %v1045_v41 = vrot.slane %v11602_v52, 1  ;;  %v1061_v28 = vrot.slane %v11097_v12, 1  ;;  %v548_v42 = vshll.u32 %v11097_v12, 16  ;;  %v552_v47 = vshrl.u32 %v11097_v12, 16 }
  0x3e   : > { %9987 = vmatprep.mubr.bf16.mxu1 %v11599_v50  ;;  %10064 = vmatpush3.bf16.msra.mxu1 %v11095_v30  ;;  %v11717_v50 = vld [vmem:[%s14000_s1 + $0x100] sm:$0xff]   ;;  %v530_v30 = vor.u32 %v528_v1, %v526_v22  ;;  %v527_v38 = vsel %vm427_vm0, %v522_v26, %v526_v22 }
  0x3f   : > { %10065 = vmatprep.subr.bf16.mxu1 %v11096_v35  ;;  %v11731_v5 = vsel %vm1031_vm1, %v1045_v41, %v1047_v63  ;;  %v11774_v37 = vsel %vm1031_vm1, %v1061_v28, %v1063_v33  ;;  %v11110_v63 = vld [vmem:[%s11529_s11 + $0x38] sm:$0xff]   ;;  %v11112_v1 = vld [vmem:[%s11529_s11 + $0x40] sm:$0xff]  }
  0x40   : > { %10018 = vmatpush3.bf16.msra.mxu0 %v11089_v24  ;;  %v1059_v24 = vrot.slane %v11093_v3, 1 }
  0x41   : > { %10019 = vmatprep.subr.bf16.mxu0 %v11094_v34 }
  0x42   : > { %10066 = vmatpush3.bf16.msra.mxu1 %v11096_v35  ;;  %v11767_v32 = vsel %vm1031_vm1, %v1057_v21, %v1059_v24  ;;  %v540_v35 = vshll.u32 %v11093_v3, 16  ;;  %v11125_v21 = vld [vmem:[%s11529_s11 + $0x70] sm:$0xff]  }
  0x43   : > { %9940 = vmatmul.mubr.bf16.gmra.mrb[12].mxu0 %v495_v45  ;;  %10067 = vmatprep.subr.bf16.mxu1 %v11100_v25  ;;  %v550_v45 = vrot.slane %v548_v42, 1  ;;  %v11131_v42 = vld [vmem:[%s11529_s11 + $0x88] sm:$0xff]  }
  0x44   : > { %9943 = vmatprep.mubr.bf16.mxu0 %v503_v48  ;;  %10020 = vmatpush3.bf16.msra.mxu0 %v11094_v34  ;;  %v11771_v34 = vsel %vm1031_vm1, %v1059_v24, %v1061_v28  ;;  %v542_v43 = vrot.slane %v540_v35, 1  ;;  %v556_v48 = vshll.u32 %v11098_v13, 16  ;;  %v1709_v13 = vld [vmem:[%s11529_s11 + $0x14] sm:$0xf]  ;;  %v2230_v24 = vld [vmem:[%s11529_s11 + $0x10] sm:$0xe] }
  0x45   : > { %9988 = vmatmul.mubr.bf16.gmra.mrb[12].mxu1 %v11602_v52  ;;  %10021 = vmatprep.subr.bf16.mxu0 %v11099_v15  ;;  %v11726_v52 = vsel %vm1031_vm1, %v1043_v57, %v1045_v41  ;;  %v554_v51 = vor.u32 %v552_v47, %v550_v45  ;;  %v11108_v57 = vld [vmem:[%s14000_s1 + $0x108] sm:$0xff]   ;;  %v11109_v41 = vld [vmem:[%s11529_s11 + $0x30] sm:$0xff]   ;;  %v8824_v33 = vcombine.low %v2230_v24, %v1709_v13  ;;  %v11138_v35 = vld [vmem:[%s11529_s11 + $0x20] sm:$0xff]  }
  0x46   : > { %9991 = vmatprep.mubr.bf16.mxu1 %v11617_v62  ;;  %10068 = vmatpush3.bf16.msra.mxu1 %v11100_v25  ;;  %v532_v62 = vshll.u32 %v11700_v55, 16  ;;  %v558_v25 = vrot.slane %v556_v48, 1  ;;  %v11889_v47 = vld [vmem:[%s11529_s11 + $0x30] sm:$0xff]  }
  0x47   : > { %10069 = vmatprep.subr.bf16.mxu1 %v11101_v58  ;;  %v11949_v24 = vld [vmem:[%s11529_s11 + $0x30] sm:$0xff]  }
  0x48   : > { %10022 = vmatpush3.bf16.msra.mxu0 %v11099_v15  ;;  %v534_v31 = vrot.slane %v532_v62, 1  ;;  %v11134_v62 = vld [vmem:[%s14000_s1 + $0x178] sm:$0xff]  }
  0x49   : > { %10103 = vmatprep.subr.bf16.mxu0 %v11717_v50 }
  0x4a   : > { %10070 = vmatpush3.bf16.msra.mxu1 %v11101_v58  ;;  %v538_v44 = vor.u32 %v536_v39, %v534_v31  ;;  %v11107_v58 = vld [vmem:[%s11529_s11 + $0x28] sm:$0xff]   ;;  %v2251_v39 = vrot.slane %v8824_v33, 1 }
  0x4b   : > { %9944 = vmatmul.mubr.bf16.gmra.mrb[16].mxu0 %v511_v8  ;;  %10151 = vmatprep.subr.bf16.mxu1 %v11115_v19  ;;  %v11116_v8 = vld [vmem:[%s11529_s11 + $0x50] sm:$0xff]  }
  0x4c   : > { %9947 = vmatprep.mubr.bf16.mxu0 %v519_v11  ;;  %v543_v46 = vsel %vm427_vm0, %v538_v44, %v542_v43  ;;  %v11120_v11 = vld [vmem:[%s11529_s11 + $0x60] sm:$0xff]  }
  0x4d   : > { %9992 = vmatmul.mubr.bf16.gmra.mrb[16].mxu1 %v11625_v4  ;;  %v535_v4 = vsel %vm427_vm0, %v530_v30, %v534_v31  ;;  %v11130_v31 = vld [vmem:[%s11529_s11 + $0x80] sm:$0xff]  }
  0x4e   : > { %9995 = vmatprep.mubr.bf16.mxu1 %v11631_v7  ;;  %v546_v7 = vor.u32 %v544_v40, %v542_v43  ;;  %v1857_v40 = vshll.u32 %v11138_v35, 16 }
  0x50   : > { %v551_v15 = vsel %vm427_vm0, %v546_v7, %v550_v45  ;;  %v1861_v7 = vshrl.u32 %v11138_v35, 16 }
  0x53   : > { %9948 = vmatmul.mubr.bf16.gmra.mrb[20].mxu0 %v527_v38  ;;  %v11879_v38 = vld [vmem:[%s11529_s11 + $0x28] sm:$0xff]  }
  0x54   : > { %9951 = vmatprep.mubr.bf16.mxu0 %v535_v4 }
  0x55   : > { %9996 = vmatmul.mubr.bf16.gmra.mrb[20].mxu1 %v11645_v16  ;;  %v559_v16 = vsel %vm427_vm0, %v554_v51, %v558_v25  ;;  %v11892_v51 = vld [vmem:[%s11529_s11 + $0x38] sm:$0xff]  }
  0x56   : > { %9999 = vmatprep.mubr.bf16.mxu1 %v11662_v29  ;;  %v11104_v29 = vld [vmem:[%s11529_s11 + $0x18] sm:$0xff]  }
  0x5b   : > { %9952 = vmatmul.mubr.bf16.gmra.mrb[24].mxu0 %v543_v46  ;;  %v1859_v46 = vrot.slane %v1857_v40, 1 }
  0x5c   : > { %9955 = vmatprep.mubr.bf16.mxu0 %v551_v15  ;;  %v2254_v15 = vrot.slane %v11138_v35, 1  ;;  %v11158_v35 = vld [vmem:[%s14000_s1 + $0x1d8] sm:$0xff]  }
  0x5d   : > { %10000 = vmatmul.mubr.bf16.gmra.mrb[24].mxu1 %v11700_v55  ;;  %v11119_v55 = vld [vmem:[%s14000_s1 + $0x148] sm:$0xff]   ;;  %v1863_v25 = vor.u32 %v1861_v7, %v1859_v46 }
  0x5e   : > { %10003 = vmatprep.mubr.bf16.mxu1 %v11093_v3  ;;  %v11127_v3 = vld [vmem:[%s14000_s1 + $0x130] sm:$0xff]  }
  0x63   : > { %9956 = vmatmul.mubr.bf16.gmra.mrb[28].mxu0 %v559_v16 }
  0x64   : > { %10023 = vmatprep.mubr.bf16.mxu0 %v11696_v53  ;;  %v11111_v53 = vld [vmem:[%s14000_s1 + $0x110] sm:$0xff]  }
  0x65   : > { %10004 = vmatmul.mubr.bf16.gmra.mrb[28].mxu1 %v11097_v12  ;;  %v1708_v12 = vld [vmem:[%s11529_s11 + $0x10] sm:$0xf] }
  0x66   : > { %10071 = vmatprep.mubr.bf16.mxu1 %v11103_v54  ;;  %v11895_v54 = vld [vmem:[%s11529_s11 + $0x40] sm:$0xff]  }
  0x6b   : > { %10024 = vmatmul.mubr.bf16.vlgmr.msra.gmra.mrb[32].mxu0 %v11649_v18  ;;  %v11123_v18 = vld [vmem:[%s14000_s1 + $0x150] sm:$0xff]  }
  0x6c   : > { %10104 = vmatpush3.bf16.msra.mxu0 %v11717_v50  ;;  %10027 = vmatprep.mubr.bf16.mxu0 %v11689_v49  ;;  %v11114_v49 = vld [vmem:[%s14000_s1 + $0x118] sm:$0xff]   ;;  %v11118_v50 = vld [vmem:[%s14000_s1 + $0x120] sm:$0xff]  }
  0x6d   : > { %10072 = vmatmul.mubr.bf16.vlgmr.msra.gmra.mrb[32].mxu1 %v11104_v29  ;;  %10105 = vmatprep.subr.bf16.mxu0 %v11108_v57  ;;  %v2256_v29 = vrot.slane %v11879_v38, 1 }
  0x6e   : > { %10075 = vmatprep.mubr.bf16.mxu1 %v11106_v36  ;;  %10152 = vmatpush3.bf16.msra.mxu1 %v11115_v19  ;;  %v8783_v19 = vcombine.low %v1708_v12, %v1709_v13  ;;  %v2258_v36 = vrot.slane %v11889_v47, 1  ;;  %v11929_v12 = vld [vmem:[%s11529_s11 + $0x58] sm:$0xff]  }
  0x6f   : > { %10153 = vmatprep.subr.bf16.mxu1 %v11119_v55 }
  0x70   : > { %10106 = vmatpush3.bf16.msra.mxu0 %v11108_v57  ;;  %v1844_v22 = vshll.u32 %v8783_v19, 16  ;;  %v1842_v26 = vshrl.u32 %v8783_v19, 16  ;;  %v1873_v57 = vshll.u32 %v11889_v47, 16  ;;  %v11940_v19 = vld [vmem:[%s11529_s11 + $0x28] sm:$0xff]  }
  0x71   : > { %10107 = vmatprep.subr.bf16.mxu0 %v11111_v53 }
  0x72   : > { %10154 = vmatpush3.bf16.msra.mxu1 %v11119_v55  ;;  %v1846_v28 = vrot.slane %v1844_v22, 1  ;;  %v11142_v55 = vld [vmem:[%s14000_s1 + $0x188] sm:$0xff]   ;;  %v11945_v22 = vld [vmem:[%s11529_s11 + $0x60] sm:$0xff]  }
  0x73   : > { %10028 = vmatmul.mubr.bf16.gmra.mrb[36].mxu0 %v11703_v56  ;;  %10155 = vmatprep.subr.bf16.mxu1 %v11123_v18  ;;  %v11128_v56 = vld [vmem:[%s14000_s1 + $0x160] sm:$0xff]  }
  0x74   : > { %10031 = vmatprep.mubr.bf16.mxu0 %v11710_v59  ;;  %10108 = vmatpush3.bf16.msra.mxu0 %v11111_v53  ;;  %v11122_v59 = vld [vmem:[%s14000_s1 + $0x128] sm:$0xff]  }
  0x75   : > { %10076 = vmatmul.mubr.bf16.gmra.mrb[36].mxu1 %v11107_v58  ;;  %10109 = vmatprep.subr.bf16.mxu0 %v11114_v49  ;;  %v1881_v58 = vshll.u32 %v11892_v51, 16 }
  0x76   : > { %10079 = vmatprep.mubr.bf16.mxu1 %v11109_v41  ;;  %10156 = vmatpush3.bf16.msra.mxu1 %v11123_v18  ;;  %v1877_v18 = vshrl.u32 %v11889_v47, 16  ;;  %v2260_v41 = vrot.slane %v11892_v51, 1  ;;  %v11981_v47 = vld [vmem:[%s11529_s11 + $0x24] sm:$0xf] }
  0x77   : > { %10157 = vmatprep.subr.bf16.mxu1 %v11124_v60 }
  0x78   : > { %10110 = vmatpush3.bf16.msra.mxu0 %v11114_v49 }
  0x79   : > { %10111 = vmatprep.subr.bf16.mxu0 %v11118_v50 }
  0x7a   : > { %10158 = vmatpush3.bf16.msra.mxu1 %v11124_v60  ;;  %v1889_v60 = vshll.u32 %v11895_v54, 16 }
  0x7b   : > { %10032 = vmatmul.mubr.bf16.gmra.mrb[40].mxu0 %v11720_v61  ;;  %10159 = vmatprep.subr.bf16.mxu1 %v11128_v56  ;;  %v11133_v61 = vld [vmem:[%s14000_s1 + $0x170] sm:$0xff]  }
  0x7c   : > { %10035 = vmatprep.mubr.bf16.mxu0 %v11726_v52  ;;  %10112 = vmatpush3.bf16.msra.mxu0 %v11118_v50  ;;  %v11132_v52 = vld [vmem:[%s14000_s1 + $0x138] sm:$0xff]  }
  0x7d   : > { %10080 = vmatmul.mubr.bf16.gmra.mrb[40].mxu1 %v11110_v63  ;;  %10113 = vmatprep.subr.bf16.mxu0 %v11122_v59  ;;  %v11913_v63 = vld [vmem:[%s11529_s11 + $0x48] sm:$0xff]  }
  0x7e   : > { %10083 = vmatprep.mubr.bf16.mxu1 %v11112_v1  ;;  %10160 = vmatpush3.bf16.msra.mxu1 %v11128_v56  ;;  %v1885_v56 = vshrl.u32 %v11892_v51, 16  ;;  %v1875_v1 = vrot.slane %v1873_v57, 1  ;;  %v1897_v13 = vshll.u32 %v11913_v63, 16  ;;  %v11161_v51 = vld [vmem:[%s14000_s1 + $0x1b0] sm:$0xff]  }
  0x7f   : > { %10161 = vmatprep.subr.bf16.mxu1 %v11129_v2 }
  0x80   : > { %10114 = vmatpush3.bf16.msra.mxu0 %v11122_v59  ;;  %v2257_v59 = vsel %vm1031_vm1, %v2254_v15, %v2256_v29 }
  0x81   : > { %10115 = vmatprep.subr.bf16.mxu0 %v11127_v3 }
  0x82   : > { %10162 = vmatpush3.bf16.msra.mxu1 %v11129_v2  ;;  %v11145_v2 = vld [vmem:[%s14000_s1 + $0x190] sm:$0xff]  }
  0x83   : > { %10036 = vmatmul.mubr.bf16.gmra.mrb[44].mxu0 %v11731_v5  ;;  %10163 = vmatprep.subr.bf16.mxu1 %v11133_v61  ;;  %v11854_v5 = vld [vmem:[%s14000_s1 + $0x1c0] sm:$0xff]  }
  0x84   : > { %10039 = vmatprep.mubr.bf16.mxu0 %v11737_v9  ;;  %10116 = vmatpush3.bf16.msra.mxu0 %v11127_v3  ;;  %v11117_v9 = vld [vmem:[%s11529_s11 + $0x58] sm:$0xff]   ;;  %v11153_v3 = vld [vmem:[%s14000_s1 + $0x1c8] sm:$0xff]  }
  0x85   : > { %10084 = vmatmul.mubr.bf16.gmra.mrb[44].mxu1 %v11113_v6  ;;  %10117 = vmatprep.subr.bf16.mxu0 %v11132_v52  ;;  %v1883_v6 = vrot.slane %v1881_v58, 1  ;;  %v12003_v58 = vld [vmem:[%s11529_s11 + $0x38] sm:$0xff]  }
  0x86   : > { %10087 = vmatprep.mubr.bf16.mxu1 %v11116_v8  ;;  %10164 = vmatpush3.bf16.msra.mxu1 %v11133_v61  ;;  %v1879_v8 = vor.u32 %v1877_v18, %v1875_v1 }
  0x87   : > { %10165 = vmatprep.subr.bf16.mxu1 %v11134_v62  ;;  %v1887_v33 = vor.u32 %v1885_v56, %v1883_v6 }
  0x88   : > { %10118 = vmatpush3.bf16.msra.mxu0 %v11132_v52  ;;  %v11924_v52 = vld [vmem:[%s11529_s11 + $0x50] sm:$0xff]  }
  0x89   : > { %10199 = vmatprep.subr.bf16.mxu0 %v11849_v10  ;;  %v1909_v40 = vshrl.u32 %v11924_v52, 16 }
  0x8a   : > { %10166 = vmatpush3.bf16.msra.mxu1 %v11134_v62  ;;  %v1891_v62 = vrot.slane %v1889_v60, 1 }
  0x8b   : > { %10040 = vmatmul.mubr.bf16.gmra.mrb[48].mxu0 %v11746_v14  ;;  %10247 = vmatprep.subr.bf16.mxu1 %v11854_v5  ;;  %v11869_v14 = vld [vmem:[%s11529_s11 + $0x18] sm:$0xff]  }
  0x8c   : > { %10043 = vmatprep.mubr.bf16.mxu0 %v11753_v20  ;;  %v11126_v20 = vld [vmem:[%s11529_s11 + $0x78] sm:$0xff]   ;;  %v1849_v30 = vshll.u32 %v11869_v14, 16  ;;  %v2252_v4 = vrot.slane %v11869_v14, 1  ;;  %v1853_v43 = vshrl.u32 %v11869_v14, 16  ;;  %v1905_v14 = vshll.u32 %v11924_v52, 16 }
  0x8d   : > { %10088 = vmatmul.mubr.bf16.gmra.mrb[48].mxu1 %v11117_v9  ;;  %v2262_v9 = vrot.slane %v11895_v54, 1 }
  0x8e   : > { %10091 = vmatprep.mubr.bf16.mxu1 %v11120_v11  ;;  %v2253_v45 = vsel %vm1031_vm1, %v2251_v39, %v2252_v4  ;;  %v2255_v50 = vsel %vm1031_vm1, %v2252_v4, %v2254_v15  ;;  %v1893_v11 = vshrl.u32 %v11895_v54, 16  ;;  %v1913_v39 = vshll.u32 %v11929_v12, 16  ;;  %v12019_v54 = vld [vmem:[%s11529_s11 + $0x40] sm:$0xff]  }
  0x8f   : > { %v2263_v18 = vsel %vm1031_vm1, %v2260_v41, %v2262_v9 }
  0x90   : > { %v1895_v4 = vor.u32 %v1893_v11, %v1891_v62  ;;  %v1915_v15 = vrot.slane %v1913_v39, 1  ;;  %v3477_v11 = vrot.slane %v12019_v54, 1 }
  0x93   : > { %10044 = vmatmul.mubr.bf16.gmra.mrb[52].mxu0 %v11757_v23  ;;  %v11422_v23 = vmov 0.0|0.0  }
  0x94   : > { %10047 = vmatprep.mubr.bf16.mxu0 %v11763_v27  ;;  %3887 = vst [vmem:[#allocation2 + $0x18] sm:$0xff] %v11422_v23  ;;  %3889 = vst [vmem:[#allocation2 + $0x28] sm:$0xff] %v11422_v23  ;;  %v1847_v27 = vor.u32 %v1846_v28, %v1842_v26  ;;  %v2259_v26 = vsel %vm1031_vm1, %v2256_v29, %v2258_v36  ;;  %v2264_v28 = vrot.slane %v11913_v63, 1 }
  0x95   : > { %10092 = vmatmul.mubr.bf16.gmra.mrb[52].mxu1 %v11121_v17  ;;  %3891 = vst [vmem:[#allocation2 + $0x38] sm:$0xff] %v11422_v23  ;;  %3893 = vst [vmem:[#allocation2 + $0x48] sm:$0xff] %v11422_v23  ;;  %v11148_v17 = vld [vmem:[%s14000_s1 + $0x198] sm:$0xff]  }
  0x96   : > { %10095 = vmatprep.mubr.bf16.mxu1 %v11125_v21  ;;  %3895 = vst [vmem:[#allocation2 + $0x58] sm:$0xff] %v11422_v23  ;;  %3897 = vst [vmem:[#allocation2 + $0x68] sm:$0xff] %v11422_v23  ;;  %v2265_v60 = vsel %vm1031_vm1, %v2262_v9, %v2264_v28 }
  0x97   : > { %3899 = vst [vmem:[#allocation2 + $0x78] sm:$0xff] %v11422_v23  ;;  %3901 = vst [vmem:[#allocation2 + $0x88] sm:$0xff] %v11422_v23 }
  0x98   : > { %5483 = vst [vmem:[#allocation2 + $0x98] sm:$0xff] %v11422_v23  ;;  %5485 = vst [vmem:[#allocation2 + $0xa8] sm:$0xff] %v11422_v23  ;;  %v3473_v23 = vrot.slane %v11949_v24, 1 }
  0x9b   : > { %10048 = vmatmul.mubr.bf16.gmra.mrb[56].mxu0 %v11767_v32  ;;  %v1851_v32 = vrot.slane %v1849_v30, 1  ;;  %v1901_v30 = vshrl.u32 %v11913_v63, 16  ;;  %v11168_v63 = vld [vmem:[%s14000_s1 + $0x1f8] sm:$0xff]  }
  0x9c   : > { %10051 = vmatprep.mubr.bf16.mxu0 %v11771_v34  ;;  %v1865_v34 = vshll.u32 %v11879_v38, 16 }
  0x9d   : > { %10096 = vmatmul.mubr.bf16.gmra.mrb[56].mxu1 %v11126_v20  ;;  %v1852_v44 = vsel %vm427_vm0, %v1847_v27, %v1851_v32  ;;  %v1855_v48 = vor.u32 %v1853_v43, %v1851_v32  ;;  %v3471_v20 = vrot.slane %v11940_v19, 1  ;;  %v1899_v27 = vrot.slane %v1897_v13, 1  ;;  %v11152_v43 = vld [vmem:[%s14000_s1 + $0x1a0] sm:$0xff]  }
  0x9e   : > { %10099 = vmatprep.mubr.bf16.mxu1 %v11130_v31  ;;  %v1867_v16 = vrot.slane %v1865_v34, 1  ;;  %v2261_v31 = vsel %vm1031_vm1, %v2258_v36, %v2260_v41  ;;  %v1907_v32 = vrot.slane %v1905_v14, 1  ;;  %v2268_v34 = vrot.slane %v11929_v12, 1  ;;  %v11163_v41 = vld [vmem:[%s14000_s1 + $0x1e8] sm:$0xff]  }
  0x9f   : > { %v1860_v53 = vsel %vm427_vm0, %v1855_v48, %v1859_v46  ;;  %v11973_v7 = vsel %vm1031_vm1, %v3471_v20, %v3473_v23  ;;  %v1892_v46 = vsel %vm427_vm0, %v1887_v33, %v1891_v62  ;;  %v3449_v48 = vld [vmem:[%s11529_s11 + $0x20] sm:$0xe]  ;;  %v1925_v36 = vshrl.u32 %v11945_v22, 16  ;;  %v12033_v62 = vld [vmem:[%s11529_s11 + $0x50] sm:$0xff]  }
  0xa0   : > { %v1868_v49 = vsel %vm427_vm0, %v1863_v25, %v1867_v16  ;;  %v1917_v25 = vshrl.u32 %v11929_v12, 16  ;;  %v8930_v29 = vcombine.low %v3449_v48, %v11981_v47 }
  0xa2   : > { %v1919_v39 = vor.u32 %v1917_v25, %v1915_v15 }
  0xa3   : > { %10052 = vmatmul.mubr.bf16.gmra.mrb[60].mxu0 %v11774_v37  ;;  %v1869_v37 = vshrl.u32 %v11879_v38, 16  ;;  %v2266_v38 = vrot.slane %v11924_v52, 1 }
  0xa4   : > { %10119 = vmatprep.mubr.bf16.mxu0 %v1852_v44  ;;  %v11970_v44 = vld [vmem:[%s11529_s11 + $0x68] sm:$0xff]  }
  0xa5   : > { %10100 = vmatmul.mubr.bf16.gmra.mrb[60].mxu1 %v11131_v42  ;;  %v1871_v61 = vor.u32 %v1869_v37, %v1867_v16  ;;  %v1921_v42 = vshll.u32 %v11945_v22, 16  ;;  %v2270_v16 = vrot.slane %v11945_v22, 1  ;;  %v1900_v37 = vsel %vm427_vm0, %v1895_v4, %v1899_v27 }
  0xa6   : > { %10167 = vmatprep.mubr.bf16.mxu1 %v2253_v45  ;;  %v11162_v45 = vld [vmem:[%s14000_s1 + $0x1e0] sm:$0xff]   ;;  %v2272_v56 = vrot.slane %v11970_v44, 1  ;;  %v1933_v33 = vshrl.u32 %v11970_v44, 16 }
  0xa7   : > { %v1876_v21 = vsel %vm427_vm0, %v1871_v61, %v1875_v1  ;;  %v11988_v57 = vrot.slane %v1921_v42, 1 }
  0xa9   : > { %v1927_v4 = vor.u32 %v1925_v36, %v11988_v57  ;;  %v12104_v36 = vld [vmem:[%s14000_s1 + $0x40] sm:$0xff]  }
  0xab   : > { %10120 = vmatmul.mubr.bf16.vlgmr.msra.gmra.mrb[64].mxu0 %v1860_v53  ;;  %v11156_v53 = vld [vmem:[%s14000_s1 + $0x1a8] sm:$0xff]  }
  0xac   : > { %10200 = vmatpush3.bf16.msra.mxu0 %v11849_v10  ;;  %10123 = vmatprep.mubr.bf16.mxu0 %v1868_v49  ;;  %v11157_v10 = vld [vmem:[%s14000_s1 + $0x1d0] sm:$0xff]   ;;  %v3470_v49 = vrot.slane %v8930_v29, 1 }
  0xad   : > { %10168 = vmatmul.mubr.bf16.vlgmr.msra.gmra.mrb[64].mxu1 %v2255_v50  ;;  %10201 = vmatprep.subr.bf16.mxu0 %v11142_v55  ;;  %v1929_v50 = vshll.u32 %v11970_v44, 16 }
  0xae   : > { %10171 = vmatprep.mubr.bf16.mxu1 %v2257_v59  ;;  %10248 = vmatpush3.bf16.msra.mxu1 %v11854_v5  ;;  %v1884_v5 = vsel %vm427_vm0, %v1879_v8, %v1883_v6  ;;  %v1903_v59 = vor.u32 %v1901_v30, %v1899_v27  ;;  %v12022_v1 = vsel %vm1031_vm1, %v3470_v49, %v3471_v20  ;;  %v11167_v6 = vld [vmem:[%s14000_s1 + $0x1f0] sm:$0xff]   ;;  %v12030_v8 = vld [vmem:[%s11529_s11 + $0x48] sm:$0xff]   ;;  %v3481_v30 = vrot.slane %v12033_v62, 1 }
  0xaf   : > { %10249 = vmatprep.subr.bf16.mxu1 %v11153_v3  ;;  %v2269_v27 = vsel %vm1031_vm1, %v2266_v38, %v2268_v34 }
  0xb0   : > { %10202 = vmatpush3.bf16.msra.mxu0 %v11142_v55  ;;  %v11992_v55 = vld [vmem:[%s11529_s11 + $0x70] sm:$0xff]   ;;  %v1908_v13 = vsel %vm427_vm0, %v1903_v59, %v1907_v32 }
  0xb1   : > { %10203 = vmatprep.subr.bf16.mxu0 %v11145_v2  ;;  %v1937_v61 = vshll.u32 %v11992_v55, 16  ;;  %v1941_v48 = vshrl.u32 %v11992_v55, 16 }
  0xb2   : > { %10250 = vmatpush3.bf16.msra.mxu1 %v11153_v3  ;;  %v1911_v3 = vor.u32 %v1909_v40, %v1907_v32  ;;  %v2274_v40 = vrot.slane %v11992_v55, 1  ;;  %v1924_v55 = vsel %vm427_vm0, %v1919_v39, %v11988_v57  ;;  %v12126_v57 = vld [vmem:[%s11529_s11 + $0x90] ss:$0 sps:$4 sm:$0x11]  }
  0xb3   : > { %10124 = vmatmul.mubr.bf16.gmra.mrb[68].mxu0 %v1876_v21  ;;  %10251 = vmatprep.subr.bf16.mxu1 %v11157_v10  ;;  %v11166_v21 = vld [vmem:[%s14000_s1 + $0x1b8] sm:$0xff]   ;;  %v1939_v42 = vrot.slane %v1937_v61, 1 }
  0xb4   : > { %10127 = vmatprep.mubr.bf16.mxu0 %v1884_v5  ;;  %10204 = vmatpush3.bf16.msra.mxu0 %v11145_v2  ;;  %v3475_v2 = vrot.slane %v12003_v58, 1  ;;  %v3479_v5 = vrot.slane %v12030_v8, 1  ;;  %v1916_v20 = vsel %vm427_vm0, %v1911_v3, %v1915_v15  ;;  %v2273_v3 = vsel %vm1031_vm1, %v2270_v16, %v2272_v56 }
  0xb5   : > { %10172 = vmatmul.mubr.bf16.gmra.mrb[68].mxu1 %v2259_v26  ;;  %10205 = vmatprep.subr.bf16.mxu0 %v11148_v17  ;;  %v12055_v26 = vld [vmem:[%s11529_s11 + $0x58] sm:$0xff]  }
  0xb6   : > { %10175 = vmatprep.mubr.bf16.mxu1 %v2261_v31  ;;  %10252 = vmatpush3.bf16.msra.mxu1 %v11157_v10  ;;  %v12036_v9 = vsel %vm1031_vm1, %v3473_v23, %v3475_v2  ;;  %v12040_v10 = vld [vmem:[%s11529_s11 + $0x78] sm:$0xff]   ;;  %v12050_v14 = vsel %vm1031_vm1, %v3475_v2, %v3477_v11  ;;  %v2267_v31 = vsel %vm1031_vm1, %v2264_v28, %v2266_v38  ;;  %v3483_v32 = vrot.slane %v12055_v26, 1 }
  0xb7   : > { %10253 = vmatprep.subr.bf16.mxu1 %v11158_v35  ;;  %v12068_v23 = vsel %vm1031_vm1, %v3477_v11, %v3479_v5  ;;  %v12079_v28 = vsel %vm1031_vm1, %v3479_v5, %v3481_v30  ;;  %v1931_v38 = vrot.slane %v1929_v50, 1  ;;  %v2276_v29 = vrot.slane %v12040_v10, 1  ;;  %v12114_v50 = vld [vmem:[%s11529_s11 + $0x88] sm:$0xff]  }
  0xb8   : > { %10206 = vmatpush3.bf16.msra.mxu0 %v11148_v17  ;;  %v12044_v17 = vld [vmem:[%s11529_s11 + $0x80] sm:$0xff]   ;;  %v1943_v11 = vor.u32 %v1941_v48, %v1939_v42  ;;  %v2280_v22 = vrot.slane %v12114_v50, 1  ;;  %v1969_v5 = vshll.u32 %v12126_v57, 16 }
  0xb9   : > { %10207 = vmatprep.subr.bf16.mxu0 %v11152_v43  ;;  %v1953_v15 = vshll.u32 %v12044_v17, 16  ;;  %v1957_v61 = vshrl.u32 %v12044_v17, 16 }
  0xba   : > { %10254 = vmatpush3.bf16.msra.mxu1 %v11158_v35  ;;  %v12065_v35 = vld [vmem:[%s11529_s11 + $0x60] sm:$0xff]  }
  0xbb   : > { %10128 = vmatmul.mubr.bf16.gmra.mrb[72].mxu0 %v1892_v46  ;;  %10255 = vmatprep.subr.bf16.mxu1 %v11162_v45  ;;  %v3485_v52 = vrot.slane %v12065_v35, 1  ;;  %v12092_v46 = vsel %vm1031_vm1, %v3481_v30, %v3483_v32  ;;  %v1955_v59 = vrot.slane %v1953_v15, 1  ;;  %v12153_v30 = vld [vmem:[%s11529_s11 + $0x80] sm:$0xff]   ;;  %v3068_v15 = vshll.u32 %v11940_v19, 16 }
  0xbc   : > { %10131 = vmatprep.mubr.bf16.mxu0 %v1900_v37  ;;  %10208 = vmatpush3.bf16.msra.mxu0 %v11152_v43  ;;  %v1945_v43 = vshll.u32 %v12040_v10, 16  ;;  %v1949_v37 = vshrl.u32 %v12040_v10, 16  ;;  %v1961_v10 = vshll.u32 %v12114_v50, 16 }
  0xbd   : > { %10176 = vmatmul.mubr.bf16.gmra.mrb[72].mxu1 %v2263_v18  ;;  %10209 = vmatprep.subr.bf16.mxu0 %v11156_v53  ;;  %v12097_v25 = vsel %vm1031_vm1, %v3483_v32, %v3485_v52  ;;  %v1932_v18 = vsel %vm427_vm0, %v1927_v4, %v1931_v38  ;;  %v2277_v32 = vsel %vm1031_vm1, %v2274_v40, %v2276_v29  ;;  %v3493_v4 = vrot.slane %v12153_v30, 1 }
  0xbe   : > { %10179 = vmatprep.mubr.bf16.mxu1 %v2265_v60  ;;  %10256 = vmatpush3.bf16.msra.mxu1 %v11162_v45  ;;  %v12089_v45 = vld [vmem:[%s14000_s1 + $0x200] sm:$0xff]   ;;  %v1947_v49 = vrot.slane %v1945_v43, 1  ;;  %v2278_v60 = vrot.slane %v12044_v17, 1  ;;  %v12147_v17 = vld [vmem:[%s11529_s11 + $0x78] sm:$0xff]  }
  0xbf   : > { %10257 = vmatprep.subr.bf16.mxu1 %v11163_v41 }
  0xc0   : > { %10210 = vmatpush3.bf16.msra.mxu0 %v11156_v53  ;;  %v12107_v53 = vld [vmem:[%s11529_s11 + $0x68] sm:$0xff]   ;;  %v1951_v39 = vor.u32 %v1949_v37, %v1947_v49  ;;  %v12176_v37 = vld [vmem:[%s11529_s11 + $0x90] sm:$0xff]  }
  0xc1   : > { %10211 = vmatprep.subr.bf16.mxu0 %v11161_v51  ;;  %v3487_v2 = vrot.slane %v12107_v53, 1 }
  0xc2   : > { %10258 = vmatpush3.bf16.msra.mxu1 %v11163_v41  ;;  %v2271_v41 = vsel %vm1031_vm1, %v2268_v34, %v2270_v16  ;;  %v1935_v34 = vor.u32 %v1933_v33, %v1931_v38  ;;  %v2275_v33 = vsel %vm1031_vm1, %v2272_v56, %v2274_v40  ;;  %v1971_v38 = vrot.slane %v1969_v5, 1  ;;  %v12171_v40 = vld [vmem:[%s11529_s11 + $0x88] sm:$0xff]  }
  0xc3   : > { %10132 = vmatmul.mubr.bf16.gmra.mrb[76].mxu0 %v1908_v13  ;;  %10259 = vmatprep.subr.bf16.mxu1 %v11167_v6  ;;  %v2927_v13 = vld [vmem:[%s11529_s11 + $0x20] sm:$0xf]  ;;  %v1956_v48 = vsel %vm427_vm0, %v1951_v39, %v1955_v59 }
  0xc4   : > { %10135 = vmatprep.mubr.bf16.mxu0 %v1916_v20  ;;  %10212 = vmatpush3.bf16.msra.mxu0 %v11161_v51  ;;  %v12118_v51 = vld [vmem:[%s11529_s11 + $0x70] sm:$0xff]   ;;  %v8889_v20 = vcombine.low %v2927_v13, %v11981_v47  ;;  %v2282_v47 = vrot.slane %v12126_v57, 1  ;;  %v3084_v13 = vshll.u32 %v12003_v58, 16 }
  0xc5   : > { %10180 = vmatmul.mubr.bf16.gmra.mrb[76].mxu1 %v2267_v31  ;;  %10213 = vmatprep.subr.bf16.mxu0 %v11166_v21  ;;  %v3489_v12 = vrot.slane %v12118_v51, 1  ;;  %v1948_v31 = vsel %vm427_vm0, %v1943_v11, %v1947_v49 }
  0xc6   : > { %10183 = vmatprep.mubr.bf16.mxu1 %v2269_v27  ;;  %10260 = vmatpush3.bf16.msra.mxu1 %v11167_v6  ;;  %v12138_v6 = vsel %vm1031_vm1, %v3485_v52, %v3487_v2  ;;  %v1965_v27 = vshrl.u32 %v12114_v50, 16  ;;  %v1963_v52 = vrot.slane %v1961_v10, 1  ;;  %v3063_v44 = vshll.u32 %v8889_v20, 16 }
  0xc7   : > { %10261 = vmatprep.subr.bf16.mxu1 %v11168_v63  ;;  %v12144_v16 = vsel %vm1031_vm1, %v3487_v2, %v3489_v12  ;;  %v3061_v49 = vshrl.u32 %v8889_v20, 16  ;;  %v3495_v50 = vrot.slane %v12171_v40, 1  ;;  %v2283_v5 = vsel %vm1031_vm1, %v2280_v22, %v2282_v47  ;;  %v12211_v47 = vld [vmem:[%s11529_s11 + $0x84] sm:$0xf] }
  0xc8   : > { %10214 = vmatpush3.bf16.msra.mxu0 %v11166_v21  ;;  %v1940_v21 = vsel %vm427_vm0, %v1935_v34, %v1939_v42  ;;  %v1959_v42 = vor.u32 %v1957_v61, %v1955_v59  ;;  %v3065_v57 = vrot.slane %v3063_v44, 1  ;;  %v3497_v59 = vrot.slane %v12176_v37, 1  ;;  %v11169_v34 = vld [vmem:[%s11529_s11 + $0x20] sm:$0xff]  }
  0xc9   : > { %10295 = vmatprep.subr.bf16.mxu0 %v12089_v45  ;;  %v1967_v2 = vor.u32 %v1965_v27, %v1963_v52  ;;  %v3076_v61 = vshll.u32 %v11949_v24, 16  ;;  %v3072_v20 = vshrl.u32 %v11940_v19, 16  ;;  %v3080_v27 = vshrl.u32 %v11949_v24, 16  ;;  %v11172_v19 = vld [vmem:[%s11529_s11 + $0x28] sm:$0xff]  }
  0xca   : > { %10262 = vmatpush3.bf16.msra.mxu1 %v11168_v63  ;;  %v3491_v63 = vrot.slane %v12147_v17, 1  ;;  %v3066_v11 = vor.u32 %v3065_v57, %v3061_v49  ;;  %v3086_v39 = vrot.slane %v3084_v13, 1  ;;  %v11180_v13 = vld [vmem:[%s11529_s11 + $0x40] sm:$0xff]  }
  0xcb   : > { %10136 = vmatmul.mubr.bf16.gmra.mrb[80].mxu0 %v1924_v55  ;;  %10343 = vmatprep.subr.bf16.mxu1 %v12104_v36  ;;  %v1964_v55 = vsel %vm427_vm0, %v1959_v42, %v1963_v52  ;;  %v1972_v10 = vsel %vm427_vm0, %v1967_v2, %v1971_v38  ;;  %v11175_v38 = vld [vmem:[%s11529_s11 + $0x30] sm:$0xff]   ;;  %v11179_v42 = vld [vmem:[%s14000_s1 + $0x208] sm:$0xff]   ;;  %v3096_v2 = vshrl.u32 %v12019_v54, 16 }
  0xcc   : > { %10139 = vmatprep.mubr.bf16.mxu0 %v1932_v18  ;;  %v12165_v56 = vsel %vm1031_vm1, %v3489_v12, %v3491_v63  ;;  %v12168_v43 = vsel %vm1031_vm1, %v3491_v63, %v3493_v4  ;;  %v2279_v18 = vsel %vm1031_vm1, %v2276_v29, %v2278_v60  ;;  %v12185_v12 = vsel %vm1031_vm1, %v3493_v4, %v3495_v50 }
  0xcd   : > { %10184 = vmatmul.mubr.bf16.gmra.mrb[80].mxu1 %v2271_v41  ;;  %v2281_v41 = vsel %vm1031_vm1, %v2278_v60, %v2280_v22  ;;  %v12188_v29 = vsel %vm1031_vm1, %v3495_v50, %v3497_v59  ;;  %v12192_v60 = vld [vmem:[%s11529_s11 + $0xa0] ss:$0 sps:$4 sm:$0x11]   ;;  %v3092_v4 = vshll.u32 %v12019_v54, 16  ;;  %v3088_v50 = vshrl.u32 %v12003_v58, 16 }
  0xce   : > { %10187 = vmatprep.mubr.bf16.mxu1 %v2273_v3  ;;  %v3070_v3 = vrot.slane %v3068_v15, 1  ;;  %v3501_v63 = vrot.slane %v12192_v60, 1  ;;  %v3100_v15 = vshll.u32 %v12030_v8, 16  ;;  %v3104_v58 = vshrl.u32 %v12030_v8, 16  ;;  %v11199_v8 = vld [vmem:[%s14000_s1 + $0x50] sm:$0xff]  }
  0xd0   : > { %v3074_v24 = vor.u32 %v3072_v20, %v3070_v3 }
  0xd3   : > { %10140 = vmatmul.mubr.bf16.gmra.mrb[84].mxu0 %v1940_v21  ;;  %v12197_v21 = vld [vmem:[%s11529_s11 + $0x98] sm:$0xff]  }
  0xd4   : > { %10143 = vmatprep.mubr.bf16.mxu0 %v1948_v31  ;;  %v3499_v31 = vrot.slane %v12197_v21, 1 }
  0xd5   : > { %10188 = vmatmul.mubr.bf16.gmra.mrb[84].mxu1 %v2275_v33  ;;  %v3071_v33 = vsel %vm427_vm0, %v3066_v11, %v3070_v3  ;;  %v11196_v3 = vld [vmem:[%s14000_s1 + $0x48] sm:$0xff]   ;;  %v11184_v11 = vld [vmem:[%s14000_s1 + $0x210] sm:$0xff]  }
  0xd6   : > { %10191 = vmatprep.mubr.bf16.mxu1 %v2277_v32  ;;  %v3078_v32 = vrot.slane %v3076_v61, 1  ;;  %v12207_v22 = vsel %vm1031_vm1, %v3497_v59, %v3499_v31  ;;  %v12214_v52 = vsel %vm1031_vm1, %v3499_v31, %v3501_v63  ;;  %v3094_v61 = vrot.slane %v3092_v4, 1  ;;  %v11189_v31 = vld [vmem:[%s14000_s1 + $0x218] sm:$0xff]  }
  0xd7   : > { %v12259_v63 = vld [vmem:[%s11529_s11 + $0x98] sm:$0xff]  }
  0xd8   : > { %v3082_v44 = vor.u32 %v3080_v27, %v3078_v32  ;;  %v3079_v49 = vsel %vm427_vm0, %v3074_v24, %v3078_v32  ;;  %v3098_v20 = vor.u32 %v3096_v2, %v3094_v61  ;;  %v3116_v27 = vshll.u32 %v12055_v26, 16  ;;  %v11202_v2 = vld [vmem:[%s14000_s1 + $0x228] sm:$0xff]  }
  0xd9   : > { %v3112_v32 = vshrl.u32 %v12033_v62, 16 }
  0xda   : > { %v3087_v59 = vsel %vm427_vm0, %v3082_v44, %v3086_v39  ;;  %v3118_v44 = vrot.slane %v3116_v27, 1  ;;  %v11213_v27 = vld [vmem:[%s14000_s1 + $0x70] sm:$0xff]  }
  0xdb   : > { %10144 = vmatmul.mubr.bf16.gmra.mrb[88].mxu0 %v1956_v48  ;;  %v4236_v48 = vld [vmem:[%s11529_s11 + $0x80] sm:$0xe] }
  0xdc   : > { %10147 = vmatprep.mubr.bf16.mxu0 %v1964_v55  ;;  %v12223_v55 = vld [vmem:[%s11529_s11 + $0x88] sm:$0xff]  }
  0xdd   : > { %10192 = vmatmul.mubr.bf16.gmra.mrb[88].mxu1 %v2279_v18  ;;  %v8993_v18 = vcombine.low %v4236_v48, %v12211_v47  ;;  %v4257_v57 = vrot.slane %v12223_v55, 1  ;;  %v11182_v48 = vld [vmem:[%s11529_s11 + $0x48] sm:$0xff]  }
  0xde   : > { %10195 = vmatprep.mubr.bf16.mxu1 %v2281_v41 }
  0xdf   : > { %v4256_v41 = vrot.slane %v8993_v18, 1 }
  0xe1   : > { %v12242_v54 = vsel %vm1031_vm1, %v4256_v41, %v4257_v57 }
  0xe3   : > { %10148 = vmatmul.mubr.bf16.gmra.mrb[92].mxu0 %v1972_v10  ;;  %v11177_v10 = vld [vmem:[%s11529_s11 + $0x38] sm:$0xff]  }
  0xe4   : > { %10215 = vmatprep.mubr.bf16.mxu0 %v11169_v34  ;;  %v3102_v34 = vrot.slane %v3100_v15, 1 }
  0xe5   : > { %10196 = vmatmul.mubr.bf16.gmra.mrb[92].mxu1 %v2283_v5  ;;  %v3108_v5 = vshll.u32 %v12033_v62, 16  ;;  %v3120_v62 = vshrl.u32 %v12055_v26, 16  ;;  %v11206_v26 = vld [vmem:[%s14000_s1 + $0x60] sm:$0xff]  }
  0xe6   : > { %10263 = vmatprep.mubr.bf16.mxu1 %v3071_v33  ;;  %v12255_v33 = vld [vmem:[%s11529_s11 + $0xa0] ss:$0 sps:$4 sm:$0x11]   ;;  %v3103_v4 = vsel %vm427_vm0, %v3098_v20, %v3102_v34  ;;  %v3106_v18 = vor.u32 %v3104_v58, %v3102_v34  ;;  %v11210_v34 = vld [vmem:[%s14000_s1 + $0x68] sm:$0xff]  }
  0xe7   : > { %v4263_v24 = vrot.slane %v12255_v33, 1 }
  0xeb   : > { %10216 = vmatmul.mubr.bf16.vlgmr.msra.gmra.mrb[96].mxu0 %v11172_v19  ;;  %v11203_v19 = vld [vmem:[%s14000_s1 + $0x58] sm:$0xff]  }
  0xec   : > { %10296 = vmatpush3.bf16.msra.mxu0 %v12089_v45  ;;  %10219 = vmatprep.mubr.bf16.mxu0 %v11175_v38  ;;  %v3090_v45 = vor.u32 %v3088_v50, %v3086_v39  ;;  %v4261_v39 = vrot.slane %v12259_v63, 1  ;;  %v3110_v38 = vrot.slane %v3108_v5, 1  ;;  %v3124_v50 = vshll.u32 %v12065_v35, 16  ;;  %v11191_v5 = vld [vmem:[%s11529_s11 + $0x60] sm:$0xff]  }
  0xed   : > { %10264 = vmatmul.mubr.bf16.vlgmr.msra.gmra.mrb[96].mxu1 %v3079_v49  ;;  %10297 = vmatprep.subr.bf16.mxu0 %v11179_v42  ;;  %v11185_v49 = vld [vmem:[%s11529_s11 + $0x50] sm:$0xff]  }
  0xee   : > { %10267 = vmatprep.mubr.bf16.mxu1 %v3087_v59  ;;  %10344 = vmatpush3.bf16.msra.mxu1 %v12104_v36  ;;  %v3095_v36 = vsel %vm427_vm0, %v3090_v45, %v3094_v61  ;;  %v12277_v15 = vsel %vm1031_vm1, %v4261_v39, %v4263_v24  ;;  %v3114_v41 = vor.u32 %v3112_v32, %v3110_v38  ;;  %v3128_v59 = vshrl.u32 %v12065_v35, 16 }
  0xef   : > { %10345 = vmatprep.subr.bf16.mxu1 %v11196_v3  ;;  %v3132_v61 = vshll.u32 %v12107_v53, 16  ;;  %v3126_v35 = vrot.slane %v3124_v50, 1  ;;  %v3122_v45 = vor.u32 %v3120_v62, %v3118_v44 }
  0xf0   : > { %10298 = vmatpush3.bf16.msra.mxu0 %v11179_v42  ;;  %v11195_v42 = vld [vmem:[%s14000_s1 + $0x220] sm:$0xff]   ;;  %v3119_v58 = vsel %vm427_vm0, %v3114_v41, %v3118_v44  ;;  %v11217_v41 = vld [vmem:[%s14000_s1 + $0x78] sm:$0xff]  }
  0xf1   : > { %10299 = vmatprep.subr.bf16.mxu0 %v11184_v11  ;;  %v3127_v44 = vsel %vm427_vm0, %v3122_v45, %v3126_v35 }
  0xf2   : > { %10346 = vmatpush3.bf16.msra.mxu1 %v11196_v3  ;;  %v3111_v3 = vsel %vm427_vm0, %v3106_v18, %v3110_v38  ;;  %v3144_v18 = vshrl.u32 %v12118_v51, 16 }
  0xf3   : > { %10220 = vmatmul.mubr.bf16.gmra.mrb[100].mxu0 %v11177_v10  ;;  %10347 = vmatprep.subr.bf16.mxu1 %v11199_v8  ;;  %v11187_v10 = vld [vmem:[%s11529_s11 + $0x58] sm:$0xff]  }
  0xf4   : > { %10223 = vmatprep.mubr.bf16.mxu0 %v11180_v13  ;;  %10300 = vmatpush3.bf16.msra.mxu0 %v11184_v11  ;;  %v11209_v11 = vld [vmem:[%s14000_s1 + $0x230] sm:$0xff]  }
  0xf5   : > { %10268 = vmatmul.mubr.bf16.gmra.mrb[100].mxu1 %v3095_v36  ;;  %10301 = vmatprep.subr.bf16.mxu0 %v11189_v31 }
  0xf6   : > { %10271 = vmatprep.mubr.bf16.mxu1 %v3103_v4  ;;  %10348 = vmatpush3.bf16.msra.mxu1 %v11199_v8  ;;  %v3134_v8 = vrot.slane %v3132_v61, 1  ;;  %v3140_v4 = vshll.u32 %v12118_v51, 16  ;;  %v12321_v51 = vld [vmem:[%s14000_s1 + $0x80] sm:$0xff]  }
  0xf7   : > { %10349 = vmatprep.subr.bf16.mxu1 %v11203_v19 }
  0xf8   : > { %10302 = vmatpush3.bf16.msra.mxu0 %v11189_v31  ;;  %v3130_v31 = vor.u32 %v3128_v59, %v3126_v35 }
  0xf9   : > { %10303 = vmatprep.subr.bf16.mxu0 %v11195_v42 }
  0xfa   : > { %10350 = vmatpush3.bf16.msra.mxu1 %v11203_v19  ;;  %v11216_v19 = vld [vmem:[%s14000_s1 + $0x238] sm:$0xff]  }
  0xfb   : > { %10224 = vmatmul.mubr.bf16.gmra.mrb[104].mxu0 %v11182_v48  ;;  %10351 = vmatprep.subr.bf16.mxu1 %v11206_v26  ;;  %v3136_v48 = vshrl.u32 %v12107_v53, 16  ;;  %v3142_v53 = vrot.slane %v3140_v4, 1 }
  0xfc   : > { %10227 = vmatprep.mubr.bf16.mxu0 %v11185_v49  ;;  %10304 = vmatpush3.bf16.msra.mxu0 %v11195_v42  ;;  %v3148_v49 = vshll.u32 %v12147_v17, 16 }
  0xfd   : > { %10272 = vmatmul.mubr.bf16.gmra.mrb[104].mxu1 %v3111_v3  ;;  %10305 = vmatprep.subr.bf16.mxu0 %v11202_v2  ;;  %v3138_v3 = vor.u32 %v3136_v48, %v3134_v8 }
  0xfe   : > { %v9929_v13 = vpop.f32.mrb[0].mxu0  ;;  %10275 = vmatprep.mubr.bf16.mxu1 %v3119_v58  ;;  %10352 = vmatpush3.bf16.msra.mxu1 %v11206_v26  ;;  %v3135_v26 = vsel %vm427_vm0, %v3130_v31, %v3134_v8  ;;  %v3146_v58 = vor.u32 %v3144_v18, %v3142_v53  ;;  %v3150_v35 = vrot.slane %v3148_v49, 1  ;;  %v3156_v31 = vshll.u32 %v12153_v30, 16  ;;  %v11200_v49 = vld [vmem:[%s11529_s11 + $0x78] sm:$0xff]  }
  0xff   : > { %v658_v20 = vpop.f32.mrb[1].mxu0  ;;  %10353 = vmatprep.subr.bf16.mxu1 %v11210_v34  ;;  %v11197_v13 = vld [vmem:[%s11529_s11 + $0x70] sm:$0xff]  }
 0x100   : > { %v9977_v36 = vpop.f32.mrb[0].mxu1  ;;  %v9930_v32 = vpop.f32.mrb[2].mxu0  ;;  %10306 = vmatpush3.bf16.msra.mxu0 %v11202_v2 }
 0x101   : > { %v883_v24 = vpop.f32.mrb[1].mxu1  ;;  %v661_v38 = vpop.f32.mrb[3].mxu0  ;;  %10307 = vmatprep.subr.bf16.mxu0 %v11209_v11  ;;  %v3143_v36 = vsel %vm427_vm0, %v3138_v3, %v3142_v53  ;;  %v3152_v32 = vshrl.u32 %v12147_v17, 16  ;;  %v11204_v53 = vld [vmem:[%s11529_s11 + $0x80] sm:$0xff]  }
 0x102   : > { %v12307_v62 = vadd.f32 %v883_v24, %v658_v20  ;;  %v9978_v42 = vpop.f32.mrb[2].mxu1  ;;  %10354 = vmatpush3.bf16.msra.mxu1 %v11210_v34  ;;  %v11193_v34 = vld [vmem:[%s11529_s11 + $0x68] sm:$0xff]   ;;  %v3151_v24 = vsel %vm427_vm0, %v3146_v58, %v3150_v35 }
 0x103   : > { %v886_v50 = vpop.f32.mrb[3].mxu1  ;;  %10228 = vmatmul.mubr.bf16.gmra.mrb[108].mxu0 %v11187_v10  ;;  %10355 = vmatprep.subr.bf16.mxu1 %v11213_v27  ;;  %v3158_v42 = vrot.slane %v3156_v31, 1  ;;  %v3154_v48 = vor.u32 %v3152_v32, %v3150_v35  ;;  %v3168_v35 = vshrl.u32 %v12171_v40, 16  ;;  %v3180_v31 = vshll.u32 %v12197_v21, 16 }
 0x104   : > { %v12316_v59 = vadd.f32 %v886_v50, %v661_v38  ;;  %10231 = vmatprep.mubr.bf16.mxu0 %v11191_v5  ;;  %10308 = vmatpush3.bf16.msra.mxu0 %v11209_v11  ;;  %v12327_v11 = vld [vmem:[%s14000_s1] sm:$0xff]   ;;  %v3164_v38 = vshll.u32 %v12171_v40, 16 }
 0x105   : > { %10276 = vmatmul.mubr.bf16.gmra.mrb[108].mxu1 %v3127_v44  ;;  %10309 = vmatprep.subr.bf16.mxu0 %v11216_v19 }
 0x106   : > { %v9933_v2 = vpop.f32.mrb[4].mxu0  ;;  %10279 = vmatprep.mubr.bf16.mxu1 %v3135_v26  ;;  %10356 = vmatpush3.bf16.msra.mxu1 %v11213_v27  ;;  %v3166_v26 = vrot.slane %v3164_v38, 1 }
 0x107   : > { %v674_v61 = vpop.f32.mrb[5].mxu0  ;;  %10357 = vmatprep.subr.bf16.mxu1 %v11217_v41  ;;  %v3902_v2 = vld [vmem:[%s11529_s11 + $0x80] sm:$0xf] }
 0x108   : > { %v9981_v10 = vpop.f32.mrb[4].mxu1  ;;  %v9934_v45 = vpop.f32.mrb[6].mxu0  ;;  %10310 = vmatpush3.bf16.msra.mxu0 %v11216_v19  ;;  %v3160_v19 = vshrl.u32 %v12153_v30, 16  ;;  %v3170_v40 = vor.u32 %v3168_v35, %v3166_v26  ;;  %v12372_v35 = vld [vmem:[%s11529_s11 + $0x90] sm:$0xff]  }
 0x109   : > { %v899_v5 = vpop.f32.mrb[5].mxu1  ;;  %v677_v20 = vpop.f32.mrb[7].mxu0  ;;  %10391 = vmatprep.subr.bf16.mxu0 %v12321_v51  ;;  %v3159_v45 = vsel %vm427_vm0, %v3154_v48, %v3158_v42 }
 0x10a   : > { %v12332_v8 = vadd.f32 %v899_v5, %v674_v61  ;;  %v9982_v27 = vpop.f32.mrb[6].mxu1  ;;  %10358 = vmatpush3.bf16.msra.mxu1 %v11217_v41  ;;  %v3162_v50 = vor.u32 %v3160_v19, %v3158_v42  ;;  %v11207_v19 = vld [vmem:[%s11529_s11 + $0x88] sm:$0xff]   ;;  %v3182_v42 = vrot.slane %v3180_v31, 1 }
 0x10b   : > { %v902_v4 = vpop.f32.mrb[7].mxu1  ;;  %10232 = vmatmul.mubr.bf16.gmra.mrb[112].mxu0 %v11193_v34  ;;  %10367 = vmatprep.subr.bf16.mxu1 %v12327_v11  ;;  %v3172_v34 = vshll.u32 %v12176_v37, 16  ;;  %v12354_v27 = vcombine.low %v3902_v2, %v12211_v47 }
 0x10c   : > { %v12340_v44 = vadd.f32 %v902_v4, %v677_v20  ;;  %10235 = vmatprep.mubr.bf16.mxu0 %v11197_v13  ;;  %v3167_v5 = vsel %vm427_vm0, %v3162_v50, %v3166_v26  ;;  %v3176_v20 = vshrl.u32 %v12176_v37, 16  ;;  %v3188_v26 = vshll.u32 %v12192_v60, 16 }
 0x10d   : > { %10280 = vmatmul.mubr.bf16.gmra.mrb[112].mxu1 %v3143_v36  ;;  %v3174_v32 = vrot.slane %v3172_v34, 1  ;;  %v3969_v37 = vshll.u32 %v12354_v27, 16 }
 0x10e   : > { %v9937_v17 = vpop.f32.mrb[8].mxu0  ;;  %10283 = vmatprep.mubr.bf16.mxu1 %v3151_v24  ;;  %v3190_v60 = vrot.slane %v3188_v26, 1 }
 0x10f   : > { %v690_v18 = vpop.f32.mrb[9].mxu0  ;;  %v3178_v38 = vor.u32 %v3176_v20, %v3174_v32  ;;  %v3971_v34 = vrot.slane %v3969_v37, 1  ;;  %v11214_v20 = vld [vmem:[%s11529_s11 + $0x98] sm:$0xff]  }
 0x110   : > { %v9985_v41 = vpop.f32.mrb[8].mxu1  ;;  %v9938_v30 = vpop.f32.mrb[10].mxu0 }
 0x111   : > { %v915_v3 = vpop.f32.mrb[9].mxu1  ;;  %v693_v61 = vpop.f32.mrb[11].mxu0  ;;  %v3175_v30 = vsel %vm427_vm0, %v3170_v40, %v3174_v32 }
 0x112   : > { %v12346_v58 = vadd.f32 %v915_v3, %v690_v18  ;;  %v9986_v10 = vpop.f32.mrb[10].mxu1  ;;  %v11211_v18 = vld [vmem:[%s11529_s11 + $0x90] sm:$0xff]   ;;  %v3183_v3 = vsel %vm427_vm0, %v3178_v38, %v3182_v42  ;;  %v3982_v38 = vshll.u32 %v12372_v35, 16 }
 0x113   : > { %v918_v13 = vpop.f32.mrb[11].mxu1  ;;  %10236 = vmatmul.mubr.bf16.gmra.mrb[116].mxu0 %v11200_v49  ;;  %v3974_v10 = vshll.u32 %v12223_v55, 16 }
 0x114   : > { %v12356_v36 = vadd.f32 %v918_v13, %v693_v61  ;;  %10239 = vmatprep.mubr.bf16.mxu0 %v11204_v53  ;;  %v3184_v53 = vshrl.u32 %v12197_v21, 16  ;;  %v3967_v61 = vshrl.u32 %v12354_v27, 16 }
 0x115   : > { %10284 = vmatmul.mubr.bf16.gmra.mrb[116].mxu1 %v3159_v45  ;;  %v3976_v32 = vrot.slane %v3974_v10, 1 }
 0x116   : > { %v9941_v4 = vpop.f32.mrb[12].mxu0  ;;  %10287 = vmatprep.mubr.bf16.mxu1 %v3167_v5  ;;  %v3186_v21 = vor.u32 %v3184_v53, %v3182_v42  ;;  %v3972_v31 = vor.u32 %v3971_v34, %v3967_v61  ;;  %v3984_v53 = vrot.slane %v3982_v38, 1 }
 0x117   : > { %v706_v24 = vpop.f32.mrb[13].mxu0 }
 0x118   : > { %v9989_v17 = vpop.f32.mrb[12].mxu1  ;;  %v9942_v48 = vpop.f32.mrb[14].mxu0  ;;  %v3977_v42 = vsel %vm427_vm0, %v3972_v31, %v3976_v32 }
 0x119   : > { %v931_v49 = vpop.f32.mrb[13].mxu1  ;;  %v709_v47 = vpop.f32.mrb[15].mxu0  ;;  %v3191_v48 = vsel %vm427_vm0, %v3186_v21, %v3190_v60 }
 0x11a   : > { %v12361_v50 = vadd.f32 %v931_v49, %v706_v24  ;;  %v9990_v41 = vpop.f32.mrb[14].mxu1 }
 0x11b   : > { %v934_v2 = vpop.f32.mrb[15].mxu1  ;;  %10240 = vmatmul.mubr.bf16.gmra.mrb[120].mxu0 %v11207_v19  ;;  %v3990_v41 = vshll.u32 %v12259_v63, 16 }
 0x11c   : > { %v12369_v45 = vadd.f32 %v934_v2, %v709_v47  ;;  %10243 = vmatprep.mubr.bf16.mxu0 %v11211_v18  ;;  %v3978_v18 = vshrl.u32 %v12223_v55, 16  ;;  %v3986_v47 = vshrl.u32 %v12372_v35, 16 }
 0x11d   : > { %10288 = vmatmul.mubr.bf16.gmra.mrb[120].mxu1 %v3175_v30  ;;  %v3992_v34 = vrot.slane %v3990_v41, 1 }
 0x11e   : > { %v9945_v13 = vpop.f32.mrb[16].mxu0  ;;  %10291 = vmatprep.mubr.bf16.mxu1 %v3183_v3  ;;  %v3980_v2 = vor.u32 %v3978_v18, %v3976_v32  ;;  %v3988_v61 = vor.u32 %v3986_v47, %v3984_v53  ;;  %v3998_v32 = vshll.u32 %v12255_v33, 16  ;;  %v11229_v33 = vld [vmem:[%s14000_s1 + $0x90] sm:$0xff]  }
 0x11f   : > { %v722_v5 = vpop.f32.mrb[17].mxu0 }
 0x120   : > { %v9993_v4 = vpop.f32.mrb[16].mxu1  ;;  %v9946_v40 = vpop.f32.mrb[18].mxu0 }
 0x121   : > { %v947_v24 = vpop.f32.mrb[17].mxu1  ;;  %v725_v19 = vpop.f32.mrb[19].mxu0  ;;  %v3994_v4 = vshrl.u32 %v12259_v63, 16 }
 0x122   : > { %v12376_v37 = vadd.f32 %v947_v24, %v722_v5  ;;  %v9994_v17 = vpop.f32.mrb[18].mxu1  ;;  %v11226_v5 = vld [vmem:[%s14000_s1 + $0x88] sm:$0xff]  }
 0x123   : > { %v950_v49 = vpop.f32.mrb[19].mxu1  ;;  %10244 = vmatmul.mubr.bf16.gmra.mrb[124].mxu0 %v11214_v20  ;;  %v11224_v24 = vld [vmem:[%s14000_s1 + $0x8] sm:$0xff]   ;;  %v3996_v17 = vor.u32 %v3994_v4, %v3992_v34 }
 0x124   : > { %v12383_v30 = vadd.f32 %v950_v49, %v725_v19  ;;  %10311 = vmatprep.mubr.bf16.mxu0 %v12022_v1  ;;  %v3985_v1 = vsel %vm427_vm0, %v3980_v2, %v3984_v53  ;;  %v3993_v19 = vsel %vm427_vm0, %v3988_v61, %v3992_v34  ;;  %v11236_v34 = vld [vmem:[%s14000_s1 + $0xa0] sm:$0xff]  }
 0x125   : > { %10292 = vmatmul.mubr.bf16.gmra.mrb[124].mxu1 %v3191_v48  ;;  %v4000_v48 = vrot.slane %v3998_v32, 1  ;;  %v11230_v32 = vld [vmem:[%s14000_s1 + $0x28] sm:$0xff]  }
 0x126   : > { %v9949_v26 = vpop.f32.mrb[20].mxu0  ;;  %10359 = vmatprep.mubr.bf16.mxu1 %v3977_v42 }
 0x127   : > { %v738_v3 = vpop.f32.mrb[21].mxu0  ;;  %v4001_v26 = vsel %vm427_vm0, %v3996_v17, %v4000_v48 }
 0x128   : > { %v9997_v10 = vpop.f32.mrb[20].mxu1  ;;  %v9950_v13 = vpop.f32.mrb[22].mxu0 }
 0x129   : > { %v963_v21 = vpop.f32.mrb[21].mxu1  ;;  %v741_v60 = vpop.f32.mrb[23].mxu0  ;;  %v11228_v13 = vld [vmem:[%s14000_s1 + $0x20] sm:$0xff]  }
 0x12a   : > { %v12389_v20 = vadd.f32 %v963_v21, %v738_v3  ;;  %v9998_v31 = vpop.f32.mrb[22].mxu1  ;;  %v11227_v3 = vld [vmem:[%s14000_s1 + $0x18] sm:$0xff]  }
 0x12b   : > { %v966_v40 = vpop.f32.mrb[23].mxu1  ;;  %10312 = vmatmul.mubr.bf16.vlgmr.msra.gmra.mrb[128].mxu0 %v11973_v7  ;;  %v11239_v31 = vld [vmem:[%s14000_s1 + $0xa8] sm:$0xff]  }
 0x12c   : > { %v12399_v38 = vadd.f32 %v966_v40, %v741_v60  ;;  %10392 = vmatpush3.bf16.msra.mxu0 %v12321_v51  ;;  %10315 = vmatprep.mubr.bf16.mxu0 %v12036_v9  ;;  %v11225_v51 = vld [vmem:[%s14000_s1 + $0x10] sm:$0xff]  }
 0x12d   : > { %10360 = vmatmul.mubr.bf16.vlgmr.msra.gmra.mrb[128].mxu1 %v3985_v1  ;;  %10393 = vmatprep.subr.bf16.mxu0 %v11226_v5 }
 0x12e   : > { %10368 = vmatpush3.bf16.msra.mxu1 %v12327_v11  ;;  %v9953_v7 = vpop.f32.mrb[24].mxu0  ;;  %10363 = vmatprep.mubr.bf16.mxu1 %v3993_v19  ;;  %v11234_v11 = vld [vmem:[%s14000_s1 + $0x98] sm:$0xff]  }
 0x12f   : > { %10369 = vmatprep.subr.bf16.mxu1 %v11224_v24  ;;  %v754_v18 = vpop.f32.mrb[25].mxu0 }
 0x130   : > { %v10001_v49 = vpop.f32.mrb[24].mxu1  ;;  %v9954_v9 = vpop.f32.mrb[26].mxu0  ;;  %10394 = vmatpush3.bf16.msra.mxu0 %v11226_v5 }
 0x131   : > { %v979_v42 = vpop.f32.mrb[25].mxu1  ;;  %v757_v47 = vpop.f32.mrb[27].mxu0  ;;  %10395 = vmatprep.subr.bf16.mxu0 %v11229_v33 }
 0x132   : > { %v12413_v41 = vadd.f32 %v979_v42, %v754_v18  ;;  %10370 = vmatpush3.bf16.msra.mxu1 %v11224_v24  ;;  %v10002_v53 = vpop.f32.mrb[26].mxu1  ;;  %v11242_v24 = vld [vmem:[%s14000_s1 + $0xb0] sm:$0xff]  }
 0x133   : > { %v982_v2 = vpop.f32.mrb[27].mxu1  ;;  %10371 = vmatprep.subr.bf16.mxu1 %v11225_v51  ;;  %10316 = vmatmul.mubr.bf16.gmra.mrb[132].mxu0 %v12050_v14 }
 0x134   : > { %v12420_v61 = vadd.f32 %v982_v2, %v757_v47  ;;  %10319 = vmatprep.mubr.bf16.mxu0 %v12068_v23  ;;  %10396 = vmatpush3.bf16.msra.mxu0 %v11229_v33 }
 0x135   : > { %10364 = vmatmul.mubr.bf16.gmra.mrb[132].mxu1 %v4001_v26  ;;  %10397 = vmatprep.subr.bf16.mxu0 %v11234_v11 }
 0x136   : > { %10372 = vmatpush3.bf16.msra.mxu1 %v11225_v51  ;;  %v9957_v10 = vpop.f32.mrb[28].mxu0  ;;  %10383 = vmatprep.mubr.bf16.mxu1 %v12354_v27  ;;  %v11245_v51 = vld [vmem:[%s14000_s1 + $0xb8] sm:$0xff]  }
 0x137   : > { %10373 = vmatprep.subr.bf16.mxu1 %v11227_v3  ;;  %v770_v14 = vpop.f32.mrb[29].mxu0 }
 0x138   : > { %v10005_v21 = vpop.f32.mrb[28].mxu1  ;;  %v9958_v60 = vpop.f32.mrb[30].mxu0  ;;  %10398 = vmatpush3.bf16.msra.mxu0 %v11234_v11 }
 0x139   : > { %v995_v23 = vpop.f32.mrb[29].mxu1  ;;  %v773_v5 = vpop.f32.mrb[31].mxu0  ;;  %10399 = vmatprep.subr.bf16.mxu0 %v11236_v34 }
 0x13a   : > { %v12433_v1 = vadd.f32 %v995_v23, %v770_v14  ;;  %10374 = vmatpush3.bf16.msra.mxu1 %v11227_v3  ;;  %v10006_v27 = vpop.f32.mrb[30].mxu1 }
 0x13b   : > { %v998_v4 = vpop.f32.mrb[31].mxu1  ;;  %10375 = vmatprep.subr.bf16.mxu1 %v11228_v13  ;;  %10320 = vmatmul.mubr.bf16.gmra.mrb[136].mxu0 %v12079_v28  ;;  %v11233_v28 = vld [vmem:[%s14000_s1 + $0x30] sm:$0xff]  }
 0x13c   : > { %v12439_v40 = vadd.f32 %v998_v4, %v773_v5  ;;  %10323 = vmatprep.mubr.bf16.mxu0 %v12092_v46  ;;  %10400 = vmatpush3.bf16.msra.mxu0 %v11236_v34 }
 0x13d   : > { %10401 = vmatprep.subr.bf16.mxu0 %v11239_v31 }
 0x13e   : > { %10376 = vmatpush3.bf16.msra.mxu1 %v11228_v13  ;;  %v10025_v19 = vpop.f32.mrb[32].mxu0 }
 0x13f   : > { %10377 = vmatprep.subr.bf16.mxu1 %v11230_v32  ;;  %v1163_v33 = vpop.f32.mrb[33].mxu0 }
 0x140   : > { %v1290_v7 = vadd.f32 %v1163_v33, %v12307_v62  ;;  %v10026_v17 = vpop.f32.mrb[34].mxu0  ;;  %v10073_v48 = vpop.f32.mrb[32].mxu1  ;;  %10402 = vmatpush3.bf16.msra.mxu0 %v11239_v31  ;;  %v11235_v62 = vld [vmem:[%s14000_s1 + $0x38] sm:$0xff]  }
 0x141   : > { %v1166_v46 = vpop.f32.mrb[35].mxu0  ;;  %v1549_v18 = vpop.f32.mrb[33].mxu1  ;;  %10403 = vmatprep.subr.bf16.mxu0 %v11242_v24  ;;  %v11241_v17 = vld [vmem:[%s14000_s1 + $0xd8] sm:$0xff]  }
 0x142   : > { %10378 = vmatpush3.bf16.msra.mxu1 %v11230_v32  ;;  %v1291_v49 = vadd.f32 %v1166_v46, %v12316_v59  ;;  %v12453_v9 = vadd.f32 %v1549_v18, %v1290_v7  ;;  %v10074_v42 = vpop.f32.mrb[34].mxu1  ;;  %v12465_v59 = vld [vmem:[%s14000_s1 + $0x100] sm:$0xff]  }
 0x143   : > { %10379 = vmatprep.subr.bf16.mxu1 %v11233_v28  ;;  %v1552_v47 = vpop.f32.mrb[35].mxu1  ;;  %10324 = vmatmul.mubr.bf16.gmra.mrb[140].mxu0 %v12097_v25  ;;  %v11237_v25 = vld [vmem:[%s14000_s1 + $0xc0] sm:$0xff]  }
 0x144   : > { %v12459_v11 = vadd.f32 %v1552_v47, %v1291_v49  ;;  %10327 = vmatprep.mubr.bf16.mxu0 %v12138_v6  ;;  %10404 = vmatpush3.bf16.msra.mxu0 %v11242_v24 }
 0x145   : > { %10405 = vmatprep.subr.bf16.mxu0 %v11245_v51 }
 0x146   : > { %10380 = vmatpush3.bf16.msra.mxu1 %v11233_v28  ;;  %v10029_v53 = vpop.f32.mrb[36].mxu0  ;;  %v11250_v28 = vld [vmem:[%s11529_s11 + $0x90] sm:$0xff]  }
 0x147   : > { %10381 = vmatprep.subr.bf16.mxu1 %v11235_v62  ;;  %v1179_v26 = vpop.f32.mrb[37].mxu0 }
 0x148   : > { %v1294_v2 = vadd.f32 %v1179_v26, %v12332_v8  ;;  %v10030_v3 = vpop.f32.mrb[38].mxu0  ;;  %v10077_v34 = vpop.f32.mrb[36].mxu1  ;;  %10406 = vmatpush3.bf16.msra.mxu0 %v11245_v51  ;;  %v11238_v8 = vld [vmem:[%s14000_s1 + $0xc8] sm:$0xff]  }
 0x149   : > { %v1182_v6 = vpop.f32.mrb[39].mxu0  ;;  %v1565_v10 = vpop.f32.mrb[37].mxu1  ;;  %10439 = vmatprep.subr.bf16.mxu0 %v12465_v59 }
 0x14a   : > { %10382 = vmatpush3.bf16.msra.mxu1 %v11235_v62  ;;  %v1295_v14 = vadd.f32 %v1182_v6, %v12340_v44  ;;  %v12473_v13 = vadd.f32 %v1565_v10, %v1294_v2  ;;  %v10078_v21 = vpop.f32.mrb[38].mxu1  ;;  %v4559_v2 = vld [vmem:[%s11529_s11 + $0x90] sm:$0xf] }
 0x14b   : > { %v1568_v60 = vpop.f32.mrb[39].mxu1  ;;  %10328 = vmatmul.mubr.bf16.gmra.mrb[144].mxu0 %v12144_v16  ;;  %10415 = vmatprep.subr.bf16.mxu1 %v11237_v25  ;;  %v11240_v16 = vld [vmem:[%s14000_s1 + $0xd0] sm:$0xff]  }
 0x14c   : > { %v12479_v23 = vadd.f32 %v1568_v60, %v1295_v14  ;;  %10331 = vmatprep.mubr.bf16.mxu0 %v12165_v56 }
 0x14d   : > { %10384 = vmatmul.mubr.bf16.vlgmr.msra.gmra.mrb[136].mxu1 %v12223_v55 }
 0x14e   : > { %10416 = vmatpush3.bf16.msra.mxu1 %v11237_v25  ;;  %v10033_v44 = vpop.f32.mrb[40].mxu0  ;;  %10387 = vmatprep.mubr.bf16.mxu1 %v12372_v35 }
 0x14f   : > { %v1195_v5 = vpop.f32.mrb[41].mxu0  ;;  %10417 = vmatprep.subr.bf16.mxu1 %v11238_v8 }
 0x150   : > { %v1298_v31 = vadd.f32 %v1195_v5, %v12346_v58  ;;  %v10034_v27 = vpop.f32.mrb[42].mxu0  ;;  %v10081_v4 = vpop.f32.mrb[40].mxu1 }
 0x151   : > { %v1198_v32 = vpop.f32.mrb[43].mxu0  ;;  %v1581_v24 = vpop.f32.mrb[41].mxu1 }
 0x152   : > { %v1299_v56 = vadd.f32 %v1198_v32, %v12356_v36  ;;  %v12489_v19 = vadd.f32 %v1581_v24, %v1298_v31  ;;  %10418 = vmatpush3.bf16.msra.mxu1 %v11238_v8  ;;  %v10082_v33 = vpop.f32.mrb[42].mxu1  ;;  %v12535_v31 = vld [vmem:[%s11529_s11 + $0x98] sm:$0xff]  }
 0x153   : > { %v1584_v7 = vpop.f32.mrb[43].mxu1  ;;  %10332 = vmatmul.mubr.bf16.gmra.mrb[148].mxu0 %v12168_v43  ;;  %10419 = vmatprep.subr.bf16.mxu1 %v11240_v16  ;;  %v11243_v43 = vld [vmem:[%s14000_s1 + $0xe0] sm:$0xff]  }
 0x154   : > { %v12496_v58 = vadd.f32 %v1584_v7, %v1299_v56  ;;  %10335 = vmatprep.mubr.bf16.mxu0 %v12185_v12 }
 0x155   : > { %10388 = vmatmul.mubr.bf16.gmra.mrb[140].mxu1 %v12259_v63  ;;  %v11254_v63 = vld [vmem:[%s14000_s1 + $0x148] sm:$0xff]  }
 0x156   : > { %10420 = vmatpush3.bf16.msra.mxu1 %v11240_v16  ;;  %v10037_v36 = vpop.f32.mrb[44].mxu0  ;;  %10431 = vmatprep.mubr.bf16.mxu1 %v11250_v28  ;;  %v4768_v28 = vld [vmem:[%s11529_s11 + $0x90] sm:$0xe] }
 0x157   : > { %v1211_v48 = vpop.f32.mrb[45].mxu0  ;;  %10421 = vmatprep.subr.bf16.mxu1 %v11241_v17  ;;  %v11253_v36 = vld [vmem:[%s14000_s1 + $0x108] sm:$0xff]  }
 0x158   : > { %v1302_v46 = vadd.f32 %v1211_v48, %v12361_v50  ;;  %v10038_v18 = vpop.f32.mrb[46].mxu0  ;;  %v10085_v51 = vpop.f32.mrb[44].mxu1  ;;  %v11244_v50 = vld [vmem:[%s14000_s1 + $0xe8] sm:$0xff]  }
 0x159   : > { %v1214_v49 = vpop.f32.mrb[47].mxu0  ;;  %v1597_v42 = vpop.f32.mrb[45].mxu1  ;;  %v11256_v51 = vld [vmem:[%s11529_s11 + $0xa0] sm:$0xff]  }
 0x15a   : > { %v1303_v12 = vadd.f32 %v1214_v49, %v12369_v45  ;;  %v12505_v47 = vadd.f32 %v1597_v42, %v1302_v46  ;;  %10422 = vmatpush3.bf16.msra.mxu1 %v11241_v17  ;;  %v10086_v62 = vpop.f32.mrb[46].mxu1  ;;  %v12516_v45 = vld [vmem:[%s11529_s11 + $0x94] sm:$0xf]  ;;  %v4615_v46 = vshll.u32 %v12535_v31, 16 }
 0x15b   : > { %v1600_v53 = vpop.f32.mrb[47].mxu1  ;;  %10336 = vmatmul.mubr.bf16.gmra.mrb[152].mxu0 %v12188_v29  ;;  %10423 = vmatprep.subr.bf16.mxu1 %v11243_v43  ;;  %v11246_v29 = vld [vmem:[%s14000_s1 + $0xf0] sm:$0xff]  }
 0x15c   : > { %v12511_v26 = vadd.f32 %v1600_v53, %v1303_v12  ;;  %10339 = vmatprep.mubr.bf16.mxu0 %v12207_v22  ;;  %v9046_v22 = vcombine.low %v4559_v2, %v12516_v45  ;;  %v12567_v62 = vrot.slane %v4615_v46, 1  ;;  %v4789_v2 = vrot.slane %v12535_v31, 1 }
 0x15e   : > { %10424 = vmatpush3.bf16.msra.mxu1 %v11243_v43  ;;  %v10041_v25 = vpop.f32.mrb[48].mxu0  ;;  %v4610_v27 = vshll.u32 %v9046_v22, 16 }
 0x15f   : > { %v1227_v3 = vpop.f32.mrb[49].mxu0  ;;  %10425 = vmatprep.subr.bf16.mxu1 %v11244_v50 }
 0x160   : > { %v1306_v34 = vadd.f32 %v1227_v3, %v12376_v37  ;;  %v10042_v6 = vpop.f32.mrb[50].mxu0  ;;  %v10089_v10 = vpop.f32.mrb[48].mxu1  ;;  %v11247_v37 = vld [vmem:[%s14000_s1 + $0xf8] sm:$0xff]   ;;  %v4612_v43 = vrot.slane %v4610_v27, 1 }
 0x161   : > { %v1230_v14 = vpop.f32.mrb[51].mxu0  ;;  %v1613_v21 = vpop.f32.mrb[49].mxu1  ;;  %v11258_v10 = vld [vmem:[%s11529_s11 + $0xa8] sm:$0xff]  }
 0x162   : > { %v1307_v60 = vadd.f32 %v1230_v14, %v12383_v30  ;;  %v12524_v8 = vadd.f32 %v1613_v21, %v1306_v34  ;;  %10426 = vmatpush3.bf16.msra.mxu1 %v11244_v50  ;;  %v10090_v44 = vpop.f32.mrb[50].mxu1  ;;  %v4259_v30 = vrot.slane %v12372_v35, 1  ;;  %v11252_v35 = vld [vmem:[%s11529_s11 + $0x98] sm:$0xff]  }
 0x163   : > { %v1616_v5 = vpop.f32.mrb[51].mxu1  ;;  %10340 = vmatmul.mubr.bf16.gmra.mrb[156].mxu0 %v12214_v52  ;;  %10427 = vmatprep.subr.bf16.mxu1 %v11246_v29  ;;  %v11251_v52 = vld [vmem:[%s14000_s1 + $0x140] sm:$0xff]   ;;  %v11259_v14 = vld [vmem:[%s14000_s1 + $0x118] sm:$0xff]  }
 0x164   : > { %v12530_v16 = vadd.f32 %v1616_v5, %v1307_v60  ;;  %10407 = vmatprep.mubr.bf16.mxu0 %v12242_v54  ;;  %v4260_v54 = vsel %vm1031_vm1, %v4257_v57, %v4259_v30  ;;  %v4262_v48 = vsel %vm1031_vm1, %v4259_v30, %v4261_v39  ;;  %v9075_v39 = vcombine.low %v4768_v28, %v12516_v45  ;;  %v11260_v5 = vld [vmem:[%s14000_s1 + $0x158] sm:$0xff]  }
 0x166   : > { %10428 = vmatpush3.bf16.msra.mxu1 %v11246_v29  ;;  %v10045_v4 = vpop.f32.mrb[52].mxu0  ;;  %v4788_v25 = vrot.slane %v9075_v39, 1 }
 0x167   : > { %v1243_v32 = vpop.f32.mrb[53].mxu0  ;;  %10429 = vmatprep.subr.bf16.mxu1 %v11247_v37  ;;  %v11262_v4 = vld [vmem:[%s14000_s1 + $0x160] sm:$0xff]  }
 0x168   : > { %v1310_v24 = vadd.f32 %v1243_v32, %v12389_v20  ;;  %v10046_v56 = vpop.f32.mrb[54].mxu0  ;;  %v10093_v33 = vpop.f32.mrb[52].mxu1  ;;  %v4608_v20 = vshrl.u32 %v9046_v22, 16 }
 0x169   : > { %v1246_v7 = vpop.f32.mrb[55].mxu0  ;;  %v1629_v17 = vpop.f32.mrb[53].mxu1 }
 0x16a   : > { %v1311_v55 = vadd.f32 %v1246_v7, %v12399_v38  ;;  %v12554_v18 = vadd.f32 %v1629_v17, %v1310_v24  ;;  %10430 = vmatpush3.bf16.msra.mxu1 %v11247_v37  ;;  %v10094_v57 = vpop.f32.mrb[54].mxu1  ;;  %v11255_v38 = vld [vmem:[%s14000_s1 + $0x110] sm:$0xff]   ;;  %v4613_v12 = vor.u32 %v4612_v43, %v4608_v20  ;;  %v4790_v37 = vsel %vm1031_vm1, %v4788_v25, %v4789_v2  ;;  %v12617_v20 = vld [vmem:[%s11529_s11 + $0xa8] sm:$0xff]  }
 0x16b   : > { %v1632_v49 = vpop.f32.mrb[55].mxu1  ;;  %10408 = vmatmul.mubr.bf16.vlgmr.msra.gmra.mrb[160].mxu0 %v4260_v54  ;;  %10463 = vmatprep.subr.bf16.mxu1 %v11251_v52  ;;  %v11263_v54 = vld [vmem:[%s14000_s1 + $0x128] sm:$0xff]   ;;  %v4619_v57 = vshrl.u32 %v12535_v31, 16 }
 0x16c   : > { %v12561_v42 = vadd.f32 %v1632_v49, %v1311_v55  ;;  %10440 = vmatpush3.bf16.msra.mxu0 %v12465_v59  ;;  %10411 = vmatprep.mubr.bf16.mxu0 %v4262_v48  ;;  %v11257_v59 = vld [vmem:[%s14000_s1 + $0x150] sm:$0xff]   ;;  %v4618_v21 = vsel %vm427_vm0, %v4613_v12, %v12567_v62  ;;  %v12627_v12 = vld [vmem:[%s11529_s11 + $0xa4] sm:$0xf] }
 0x16d   : > { %10432 = vmatmul.mubr.bf16.vlgmr.msra.gmra.mrb[144].mxu1 %v11252_v35  ;;  %10441 = vmatprep.subr.bf16.mxu0 %v11253_v36  ;;  %v11266_v55 = vld [vmem:[%s14000_s1 + $0x170] sm:$0xff]  }
 0x16e   : > { %10464 = vmatpush3.bf16.msra.mxu1 %v11251_v52  ;;  %v10049_v53 = vpop.f32.mrb[56].mxu0  ;;  %10435 = vmatprep.mubr.bf16.mxu1 %v11256_v51 }
 0x16f   : > { %v1259_v50 = vpop.f32.mrb[57].mxu0  ;;  %10465 = vmatprep.subr.bf16.mxu1 %v11254_v63 }
 0x170   : > { %v1314_v45 = vadd.f32 %v1259_v50, %v12413_v41  ;;  %10442 = vmatpush3.bf16.msra.mxu0 %v11253_v36  ;;  %v10050_v3 = vpop.f32.mrb[58].mxu0  ;;  %v10097_v29 = vpop.f32.mrb[56].mxu1  ;;  %v12609_v36 = vld [vmem:[%s11529_s11 + $0xa0] sm:$0xff]  }
 0x171   : > { %v1262_v34 = vpop.f32.mrb[59].mxu0  ;;  %v1645_v6 = vpop.f32.mrb[57].mxu1  ;;  %10443 = vmatprep.subr.bf16.mxu0 %v11255_v38  ;;  %v4623_v51 = vshll.u32 %v12609_v36, 16  ;;  %v4627_v25 = vshrl.u32 %v12609_v36, 16 }
 0x172   : > { %v1315_v22 = vadd.f32 %v1262_v34, %v12420_v61  ;;  %v12581_v60 = vadd.f32 %v1645_v6, %v1314_v45  ;;  %10466 = vmatpush3.bf16.msra.mxu1 %v11254_v63  ;;  %v10098_v41 = vpop.f32.mrb[58].mxu1  ;;  %v11261_v61 = vld [vmem:[%s14000_s1 + $0x120] sm:$0xff]   ;;  %v4631_v45 = vshll.u32 %v12617_v20, 16  ;;  %v11268_v6 = vld [vmem:[%s14000_s1 + $0x178] sm:$0xff]  }
 0x173   : > { %v1648_v44 = vpop.f32.mrb[59].mxu1  ;;  %10412 = vmatmul.mubr.bf16.gmra.mrb[164].mxu0 %v12277_v15  ;;  %10467 = vmatprep.subr.bf16.mxu1 %v11257_v59  ;;  %v11272_v41 = vld [vmem:[%s14000_s1 + $0x180] sm:$0xff]  }
 0x174   : > { %v12590_v30 = vadd.f32 %v1648_v44, %v1315_v22  ;;  %10444 = vmatpush3.bf16.msra.mxu0 %v11255_v38  ;;  %10455 = vmatprep.mubr.bf16.mxu0 %v4618_v21  ;;  %v5091_v38 = vld [vmem:[%s11529_s11 + $0xa0] sm:$0xf]  ;;  %v4621_v22 = vor.u32 %v4619_v57, %v12567_v62  ;;  %v4793_v62 = vrot.slane %v12617_v20, 1 }
 0x175   : > { %10436 = vmatmul.mubr.bf16.gmra.mrb[148].mxu1 %v11258_v10  ;;  %10445 = vmatprep.subr.bf16.mxu0 %v11259_v14  ;;  %v4625_v10 = vrot.slane %v4623_v51, 1 }
 0x176   : > { %10468 = vmatpush3.bf16.msra.mxu1 %v11257_v59  ;;  %v10053_v15 = vpop.f32.mrb[60].mxu0  ;;  %10479 = vmatprep.mubr.bf16.mxu1 %v4790_v37  ;;  %v11267_v59 = vld [vmem:[%s14000_s1 + $0x138] sm:$0xff]  }
 0x177   : > { %v1275_v27 = vpop.f32.mrb[61].mxu0  ;;  %10469 = vmatprep.subr.bf16.mxu1 %v11260_v5  ;;  %v4629_v44 = vor.u32 %v4627_v25, %v4625_v10 }
 0x178   : > { %v1318_v32 = vadd.f32 %v1275_v27, %v12433_v1  ;;  %10446 = vmatpush3.bf16.msra.mxu0 %v11259_v14  ;;  %v10054_v52 = vpop.f32.mrb[62].mxu0  ;;  %v10101_v24 = vpop.f32.mrb[60].mxu1  ;;  %v11264_v1 = vld [vmem:[%s14000_s1 + $0x168] sm:$0xff]   ;;  %v9128_v14 = vcombine.low %v5091_v38, %v12627_v12  ;;  %v11274_v27 = vld [vmem:[%s14000_s1 + $0x1c0] sm:$0xff]  }
 0x179   : > { %v1278_v56 = vpop.f32.mrb[63].mxu0  ;;  %v1661_v33 = vpop.f32.mrb[61].mxu1  ;;  %10447 = vmatprep.subr.bf16.mxu0 %v11261_v61 }
 0x17a   : > { %v1319_v35 = vadd.f32 %v1278_v56, %v12439_v40  ;;  %v12603_v28 = vadd.f32 %v1661_v33, %v1318_v32  ;;  %10470 = vmatpush3.bf16.msra.mxu1 %v11260_v5  ;;  %v10102_v7 = vpop.f32.mrb[62].mxu1  ;;  %v11265_v40 = vld [vmem:[%s14000_s1 + $0x130] sm:$0xff]   ;;  %v4633_v5 = vrot.slane %v4631_v45, 1  ;;  %v5142_v32 = vshll.u32 %v9128_v14, 16 }
 0x17b   : > { %v1664_v17 = vpop.f32.mrb[63].mxu1  ;;  %10471 = vmatprep.subr.bf16.mxu1 %v11262_v4  ;;  %v4626_v33 = vsel %vm427_vm0, %v4621_v22, %v4625_v10  ;;  %v5140_v51 = vshrl.u32 %v9128_v14, 16  ;;  %v11291_v10 = vld [vmem:[%s11529_s11 + $0xa0] sm:$0xff]  }
 0x17c   : > { %v12611_v48 = vadd.f32 %v1664_v17, %v1319_v35  ;;  %10448 = vmatpush3.bf16.msra.mxu0 %v11261_v61  ;;  %v4791_v61 = vrot.slane %v12609_v36, 1  ;;  %v4634_v36 = vsel %vm427_vm0, %v4629_v44, %v4633_v5 }
 0x17d   : > { %10449 = vmatprep.subr.bf16.mxu0 %v11263_v54 }
 0x17e   : > { %10472 = vmatpush3.bf16.msra.mxu1 %v11262_v4  ;;  %v10121_v43 = vpop.f32.mrb[64].mxu0  ;;  %v12656_v4 = vld [vmem:[%s11529_s11 + $0xa8] sm:$0xff]   ;;  %v4794_v57 = vsel %vm1031_vm1, %v4791_v61, %v4793_v62 }
 0x17f   : > { %v2071_v46 = vpop.f32.mrb[65].mxu0  ;;  %10473 = vmatprep.subr.bf16.mxu1 %v11264_v1 }
 0x180   : > { %v2198_v49 = vadd.f32 %v2071_v46, %v12453_v9  ;;  %10450 = vmatpush3.bf16.msra.mxu0 %v11263_v54  ;;  %v10122_v63 = vpop.f32.mrb[66].mxu0  ;;  %v10169_v39 = vpop.f32.mrb[64].mxu1  ;;  %v4635_v54 = vshrl.u32 %v12617_v20, 16  ;;  %v4792_v20 = vsel %vm1031_vm1, %v4789_v2, %v4791_v61  ;;  %v11279_v2 = vld [vmem:[%s14000_s1 + $0x190] sm:$0xff]   ;;  %v11282_v61 = vld [vmem:[%s14000_s1 + $0x1d8] sm:$0xff]  }
 0x181   : > { %v2074_v53 = vpop.f32.mrb[67].mxu0  ;;  %v2382_v50 = vpop.f32.mrb[65].mxu1  ;;  %10451 = vmatprep.subr.bf16.mxu0 %v11265_v40 }
 0x182   : > { %v2199_v9 = vadd.f32 %v2074_v53, %v12459_v11  ;;  %v12635_v3 = vadd.f32 %v2382_v50, %v2198_v49  ;;  %10474 = vmatpush3.bf16.msra.mxu1 %v11264_v1  ;;  %v10170_v29 = vpop.f32.mrb[66].mxu1  ;;  %v12645_v11 = vld [vmem:[%s11529_s11 + $0xb0] ss:$0 sps:$4 sm:$0x11]   ;;  %v11275_v1 = vld [vmem:[%s14000_s1 + $0x188] sm:$0xff]   ;;  %v5144_v49 = vrot.slane %v5142_v32, 1  ;;  %v4637_v31 = vor.u32 %v4635_v54, %v4633_v5 }
 0x183   : > { %v2385_v34 = vpop.f32.mrb[67].mxu1  ;;  %10475 = vmatprep.subr.bf16.mxu1 %v11266_v55  ;;  %v4639_v35 = vshll.u32 %v12645_v11, 16  ;;  %v4795_v53 = vrot.slane %v12645_v11, 1  ;;  %v11281_v11 = vld [vmem:[%s14000_s1 + $0x198] sm:$0xff]  }
 0x184   : > { %v12641_v21 = vadd.f32 %v2385_v34, %v2199_v9  ;;  %10452 = vmatpush3.bf16.msra.mxu0 %v11265_v40  ;;  %v5145_v25 = vor.u32 %v5144_v49, %v5140_v51  ;;  %v12733_v51 = vld [vmem:[%s11529_s11 + $0xb8] sm:$0xff]  }
 0x185   : > { %10453 = vmatprep.subr.bf16.mxu0 %v11267_v59  ;;  %v4641_v39 = vrot.slane %v4639_v35, 1 }
 0x186   : > { %10476 = vmatpush3.bf16.msra.mxu1 %v11266_v55  ;;  %v10125_v37 = vpop.f32.mrb[68].mxu0  ;;  %v11276_v55 = vld [vmem:[%s14000_s1 + $0x1c8] sm:$0xff]  }
 0x187   : > { %v2087_v15 = vpop.f32.mrb[69].mxu0  ;;  %10477 = vmatprep.subr.bf16.mxu1 %v11268_v6 }
 0x188   : > { %v2202_v52 = vadd.f32 %v2087_v15, %v12473_v13  ;;  %10454 = vmatpush3.bf16.msra.mxu0 %v11267_v59  ;;  %v10126_v24 = vpop.f32.mrb[70].mxu0  ;;  %v10173_v56 = vpop.f32.mrb[68].mxu1  ;;  %v11280_v59 = vld [vmem:[%s14000_s1 + $0x1d0] sm:$0xff]  }
 0x189   : > { %v2090_v7 = vpop.f32.mrb[71].mxu0  ;;  %v2398_v17 = vpop.f32.mrb[69].mxu1  ;;  %10487 = vmatprep.subr.bf16.mxu0 %v11272_v41 }
 0x18a   : > { %v2203_v13 = vadd.f32 %v2090_v7, %v12479_v23  ;;  %v12667_v40 = vadd.f32 %v2398_v17, %v2202_v52  ;;  %10478 = vmatpush3.bf16.msra.mxu1 %v11268_v6  ;;  %v10174_v43 = vpop.f32.mrb[70].mxu1  ;;  %v5147_v23 = vshll.u32 %v12656_v4, 16  ;;  %v4642_v6 = vsel %vm427_vm0, %v4637_v31, %v4641_v39  ;;  %v11284_v52 = vld [vmem:[%s14000_s1 + $0x1e0] sm:$0xff]   ;;  %v11285_v7 = vld [vmem:[%s14000_s1 + $0x1a8] sm:$0xff]  }
 0x18b   : > { %10456 = vmatmul.mubr.bf16.vlgmr.msra.gmra.mrb[168].mxu0 %v4626_v33  ;;  %v2401_v46 = vpop.f32.mrb[71].mxu1  ;;  %10511 = vmatprep.subr.bf16.mxu1 %v11274_v27 }
 0x18c   : > { %v12677_v63 = vadd.f32 %v2401_v46, %v2203_v13  ;;  %10488 = vmatpush3.bf16.msra.mxu0 %v11272_v41  ;;  %10459 = vmatprep.mubr.bf16.mxu0 %v4634_v36  ;;  %v12686_v45 = vrot.slane %v5147_v23, 1 }
 0x18d   : > { %10480 = vmatmul.mubr.bf16.vlgmr.msra.gmra.mrb[152].mxu1 %v4792_v20  ;;  %10489 = vmatprep.subr.bf16.mxu0 %v11275_v1  ;;  %v11287_v20 = vld [vmem:[%s14000_s1 + $0x1b0] sm:$0xff]  }
 0x18e   : > { %10512 = vmatpush3.bf16.msra.mxu1 %v11274_v27  ;;  %v10129_v38 = vpop.f32.mrb[72].mxu0  ;;  %10483 = vmatprep.mubr.bf16.mxu1 %v4794_v57  ;;  %v5150_v15 = vsel %vm427_vm0, %v5145_v25, %v12686_v45  ;;  %v11288_v57 = vld [vmem:[%s14000_s1 + $0x1f0] sm:$0xff]  }
 0x18f   : > { %v2103_v50 = vpop.f32.mrb[73].mxu0  ;;  %10513 = vmatprep.subr.bf16.mxu1 %v11276_v55  ;;  %v11289_v38 = vld [vmem:[%s14000_s1 + $0x1b8] sm:$0xff]  }
 0x190   : > { %v2206_v9 = vadd.f32 %v2103_v50, %v12489_v19  ;;  %10490 = vmatpush3.bf16.msra.mxu0 %v11275_v1  ;;  %v10130_v29 = vpop.f32.mrb[74].mxu0  ;;  %v10177_v34 = vpop.f32.mrb[72].mxu1  ;;  %v4796_v19 = vsel %vm1031_vm1, %v4793_v62, %v4795_v53  ;;  %v5151_v53 = vshrl.u32 %v12656_v4, 16 }
 0x191   : > { %v2106_v14 = vpop.f32.mrb[75].mxu0  ;;  %v2414_v22 = vpop.f32.mrb[73].mxu1  ;;  %10491 = vmatprep.subr.bf16.mxu0 %v11279_v2  ;;  %v11290_v29 = vld [vmem:[%s14000_s1 + $0x1f8] sm:$0xff]  }
 0x192   : > { %v2207_v41 = vadd.f32 %v2106_v14, %v12496_v58  ;;  %v12695_v44 = vadd.f32 %v2414_v22, %v2206_v9  ;;  %10514 = vmatpush3.bf16.msra.mxu1 %v11276_v55  ;;  %v10178_v5 = vpop.f32.mrb[74].mxu1  ;;  %v11283_v58 = vld [vmem:[%s14000_s1 + $0x1a0] sm:$0xff]   ;;  %v5153_v14 = vor.u32 %v5151_v53, %v12686_v45 }
 0x193   : > { %10460 = vmatmul.mubr.bf16.gmra.mrb[172].mxu0 %v4642_v6  ;;  %v2417_v37 = vpop.f32.mrb[75].mxu1  ;;  %10515 = vmatprep.subr.bf16.mxu1 %v11280_v59  ;;  %v5163_v6 = vshll.u32 %v12733_v51, 16  ;;  %v5300_v5 = vld [vmem:[%s11529_s11 + $0xa0] sm:$0xe] }
 0x194   : > { %v12703_v27 = vadd.f32 %v2417_v37, %v2207_v41  ;;  %10492 = vmatpush3.bf16.msra.mxu0 %v11279_v2  ;;  %10503 = vmatprep.mubr.bf16.mxu0 %v11291_v10  ;;  %v12756_v41 = vld [vmem:[%s11529_s11 + $0xc0] ss:$0 sps:$4 sm:$0x11]   ;;  %v11292_v37 = vld [vmem:[%s11529_s11 + $0xa8] sm:$0xff]  }
 0x195   : > { %10484 = vmatmul.mubr.bf16.gmra.mrb[156].mxu1 %v4796_v19  ;;  %10493 = vmatprep.subr.bf16.mxu0 %v11281_v11 }
 0x196   : > { %10516 = vmatpush3.bf16.msra.mxu1 %v11280_v59  ;;  %v10133_v62 = vpop.f32.mrb[76].mxu0  ;;  %10527 = vmatprep.mubr.bf16.mxu1 %v5150_v15  ;;  %v5165_v15 = vrot.slane %v5163_v6, 1 }
 0x197   : > { %v2119_v32 = vpop.f32.mrb[77].mxu0  ;;  %10517 = vmatprep.subr.bf16.mxu1 %v11282_v61 }
 0x198   : > { %v2210_v24 = vadd.f32 %v2119_v32, %v12505_v47  ;;  %10494 = vmatpush3.bf16.msra.mxu0 %v11281_v11  ;;  %v10134_v56 = vpop.f32.mrb[78].mxu0  ;;  %v10181_v33 = vpop.f32.mrb[76].mxu1  ;;  %v11286_v47 = vld [vmem:[%s14000_s1 + $0x1e8] sm:$0xff]  }
 0x199   : > { %v2122_v54 = vpop.f32.mrb[79].mxu0  ;;  %v2430_v35 = vpop.f32.mrb[77].mxu1  ;;  %10495 = vmatprep.subr.bf16.mxu0 %v11283_v58  ;;  %v11297_v33 = vld [vmem:[%s14000_s1 + $0x208] sm:$0xff]  }
 0x19a   : > { %v2211_v17 = vadd.f32 %v2122_v54, %v12511_v26  ;;  %v12716_v1 = vadd.f32 %v2430_v35, %v2210_v24  ;;  %10518 = vmatpush3.bf16.msra.mxu1 %v11282_v61  ;;  %v10182_v36 = vpop.f32.mrb[78].mxu1  ;;  %v12727_v26 = vld [vmem:[%s11529_s11 + $0xb0] sm:$0xff]   ;;  %v9157_v54 = vcombine.low %v5300_v5, %v12627_v12 }
 0x19b   : > { %v2433_v13 = vpop.f32.mrb[79].mxu1  ;;  %10519 = vmatprep.subr.bf16.mxu1 %v11284_v52  ;;  %v5155_v50 = vshll.u32 %v12727_v26, 16  ;;  %v5159_v34 = vshrl.u32 %v12727_v26, 16  ;;  %v5171_v36 = vshll.u32 %v12756_v41, 16 }
 0x19c   : > { %v12721_v43 = vadd.f32 %v2433_v13, %v2211_v17  ;;  %10496 = vmatpush3.bf16.msra.mxu0 %v11283_v58  ;;  %v5167_v17 = vshrl.u32 %v12733_v51, 16  ;;  %v5320_v12 = vrot.slane %v9157_v54, 1 }
 0x19d   : > { %10497 = vmatprep.subr.bf16.mxu0 %v11285_v7  ;;  %v5157_v22 = vrot.slane %v5155_v50, 1 }
 0x19e   : > { %10520 = vmatpush3.bf16.msra.mxu1 %v11284_v52  ;;  %v10137_v46 = vpop.f32.mrb[80].mxu0  ;;  %v11298_v52 = vld [vmem:[%s11529_s11 + $0xb0] sm:$0xff]  }
 0x19f   : > { %v2135_v55 = vpop.f32.mrb[81].mxu0  ;;  %10521 = vmatprep.subr.bf16.mxu1 %v11286_v47  ;;  %v5161_v61 = vor.u32 %v5159_v34, %v5157_v22  ;;  %v5158_v45 = vsel %vm427_vm0, %v5153_v14, %v5157_v22  ;;  %v5321_v46 = vrot.slane %v12656_v4, 1  ;;  %v11304_v14 = vld [vmem:[%s14000_s1 + $0x220] sm:$0xff]  }
 0x1a0   : > { %v2214_v49 = vadd.f32 %v2135_v55, %v12524_v8  ;;  %10498 = vmatpush3.bf16.msra.mxu0 %v11285_v7  ;;  %v10138_v23 = vpop.f32.mrb[82].mxu0  ;;  %v10185_v31 = vpop.f32.mrb[80].mxu1 }
 0x1a1   : > { %v2138_v39 = vpop.f32.mrb[83].mxu0  ;;  %v2446_v2 = vpop.f32.mrb[81].mxu1  ;;  %10499 = vmatprep.subr.bf16.mxu0 %v11287_v20  ;;  %v11299_v31 = vld [vmem:[%s11529_s11 + $0xb8] sm:$0xff]  }
 0x1a2   : > { %v2215_v59 = vadd.f32 %v2138_v39, %v12530_v16  ;;  %v12742_v25 = vadd.f32 %v2446_v2, %v2214_v49  ;;  %10522 = vmatpush3.bf16.msra.mxu1 %v11286_v47  ;;  %v10186_v8 = vpop.f32.mrb[82].mxu1  ;;  %v11293_v16 = vld [vmem:[%s14000_s1 + $0x200] sm:$0xff]   ;;  %v5166_v47 = vsel %vm427_vm0, %v5161_v61, %v5165_v15  ;;  %v5173_v49 = vrot.slane %v5171_v36, 1 }
 0x1a3   : > { %v2449_v9 = vpop.f32.mrb[83].mxu1  ;;  %10523 = vmatprep.subr.bf16.mxu1 %v11288_v57  ;;  %v5322_v8 = vsel %vm1031_vm1, %v5320_v12, %v5321_v46 }
 0x1a4   : > { %v12749_v10 = vadd.f32 %v2449_v9, %v2215_v59  ;;  %10500 = vmatpush3.bf16.msra.mxu0 %v11287_v20  ;;  %v11303_v59 = vld [vmem:[%s14000_s1 + $0x218] sm:$0xff]  }
 0x1a5   : > { %10501 = vmatprep.subr.bf16.mxu0 %v11289_v38 }
 0x1a6   : > { %10524 = vmatpush3.bf16.msra.mxu1 %v11288_v57  ;;  %v10141_v11 = vpop.f32.mrb[84].mxu0  ;;  %v5169_v57 = vor.u32 %v5167_v17, %v5165_v15  ;;  %v11305_v15 = vld [vmem:[%s14000_s1 + $0x228] sm:$0xff]   ;;  %v11307_v17 = vld [vmem:[%s14000_s1 + $0x238] sm:$0xff]  }
 0x1a7   : > { %v2151_v19 = vpop.f32.mrb[85].mxu0  ;;  %10525 = vmatprep.subr.bf16.mxu1 %v11290_v29 }
 0x1a8   : > { %v2218_v58 = vadd.f32 %v2151_v19, %v12554_v18  ;;  %10502 = vmatpush3.bf16.msra.mxu0 %v11289_v38  ;;  %v10142_v62 = vpop.f32.mrb[86].mxu0  ;;  %v10189_v32 = vpop.f32.mrb[84].mxu1 }
 0x1a9   : > { %v2154_v24 = vpop.f32.mrb[87].mxu0  ;;  %v2462_v56 = vpop.f32.mrb[85].mxu1  ;;  %10535 = vmatprep.subr.bf16.mxu0 %v11293_v16 }
 0x1aa   : > { %v2219_v35 = vadd.f32 %v2154_v24, %v12561_v42  ;;  %v12768_v7 = vadd.f32 %v2462_v56, %v2218_v58  ;;  %10526 = vmatpush3.bf16.msra.mxu1 %v11290_v29  ;;  %v10190_v18 = vpop.f32.mrb[86].mxu1  ;;  %v11300_v42 = vld [vmem:[%s14000_s1 + $0x210] sm:$0xff]  }
 0x1ab   : > { %10504 = vmatmul.mubr.bf16.vlgmr.msra.gmra.mrb[176].mxu0 %v11292_v37  ;;  %v2465_v13 = vpop.f32.mrb[87].mxu1 }
 0x1ac   : > { %v12773_v20 = vadd.f32 %v2465_v13, %v2219_v35  ;;  %10536 = vmatpush3.bf16.msra.mxu0 %v11293_v16  ;;  %10507 = vmatprep.mubr.bf16.mxu0 %v11298_v52 }
 0x1ad   : > { %10528 = vmatmul.mubr.bf16.vlgmr.msra.gmra.mrb[160].mxu1 %v5158_v45  ;;  %10537 = vmatprep.subr.bf16.mxu0 %v11297_v33 }
 0x1ae   : > { %v10145_v55 = vpop.f32.mrb[88].mxu0  ;;  %10531 = vmatprep.mubr.bf16.mxu1 %v5166_v47 }
 0x1af   : > { %v2167_v23 = vpop.f32.mrb[89].mxu0  ;;  %v5325_v55 = vrot.slane %v12733_v51, 1 }
 0x1b0   : > { %v2222_v39 = vadd.f32 %v2167_v23, %v12581_v60  ;;  %10538 = vmatpush3.bf16.msra.mxu0 %v11297_v33  ;;  %v10146_v2 = vpop.f32.mrb[90].mxu0  ;;  %v10193_v38 = vpop.f32.mrb[88].mxu1  ;;  %v5174_v60 = vsel %vm427_vm0, %v5169_v57, %v5173_v49 }
 0x1b1   : > { %v2170_v53 = vpop.f32.mrb[91].mxu0  ;;  %v2478_v50 = vpop.f32.mrb[89].mxu1  ;;  %10539 = vmatprep.subr.bf16.mxu0 %v11300_v42 }
 0x1b2   : > { %v2223_v9 = vadd.f32 %v2170_v53, %v12590_v30  ;;  %v12788_v29 = vadd.f32 %v2478_v50, %v2222_v39  ;;  %v10194_v34 = vpop.f32.mrb[90].mxu1 }
 0x1b3   : > { %10508 = vmatmul.mubr.bf16.gmra.mrb[180].mxu0 %v11299_v31  ;;  %v2481_v6 = vpop.f32.mrb[91].mxu1 }
 0x1b4   : > { %v12791_v16 = vadd.f32 %v2481_v6, %v2223_v9  ;;  %10540 = vmatpush3.bf16.msra.mxu0 %v11300_v42  ;;  %10551 = vmatprep.mubr.bf16.mxu0 %v5322_v8 }
 0x1b5   : > { %10532 = vmatmul.mubr.bf16.gmra.mrb[164].mxu1 %v5174_v60  ;;  %10541 = vmatprep.subr.bf16.mxu0 %v11303_v59 }
 0x1b6   : > { %v10149_v22 = vpop.f32.mrb[92].mxu0 }
 0x1b7   : > { %v2183_v11 = vpop.f32.mrb[93].mxu0 }
 0x1b8   : > { %v2226_v30 = vadd.f32 %v2183_v11, %v12603_v28  ;;  %10542 = vmatpush3.bf16.msra.mxu0 %v11303_v59  ;;  %v10150_v5 = vpop.f32.mrb[94].mxu0  ;;  %v10197_v19 = vpop.f32.mrb[92].mxu1  ;;  %v11306_v28 = vld [vmem:[%s14000_s1 + $0x230] sm:$0xff]  }
 0x1b9   : > { %v2186_v37 = vpop.f32.mrb[95].mxu0  ;;  %v2494_v61 = vpop.f32.mrb[93].mxu1  ;;  %10543 = vmatprep.subr.bf16.mxu0 %v11304_v14 }
 0x1ba   : > { %v2227_v58 = vadd.f32 %v2186_v37, %v12611_v48  ;;  %v12801_v62 = vadd.f32 %v2494_v61, %v2226_v30  ;;  %v10198_v32 = vpop.f32.mrb[94].mxu1 }
 0x1bb   : > { %v2497_v52 = vpop.f32.mrb[95].mxu1 }
 0x1bc   : > { %v12803_v24 = vadd.f32 %v2497_v52, %v2227_v58  ;;  %10544 = vmatpush3.bf16.msra.mxu0 %v11304_v14 }
 0x1bd   : > { %10545 = vmatprep.subr.bf16.mxu0 %v11305_v15 }
 0x1be   : > { %v10217_v56 = vpop.f32.mrb[96].mxu0 }
 0x1bf   : > { %v2768_v45 = vpop.f32.mrb[97].mxu0 }
 0x1c0   : > { %v2895_v33 = vadd.f32 %v2768_v45, %v12635_v3  ;;  %10546 = vmatpush3.bf16.msra.mxu0 %v11305_v15  ;;  %v10218_v54 = vpop.f32.mrb[98].mxu0  ;;  %v10265_v35 = vpop.f32.mrb[96].mxu1  ;;  %v5323_v3 = vrot.slane %v12727_v26, 1 }
 0x1c1   : > { %v2771_v48 = vpop.f32.mrb[99].mxu0  ;;  %v3290_v18 = vpop.f32.mrb[97].mxu1  ;;  %10547 = vmatprep.subr.bf16.mxu0 %v11306_v28 }
 0x1c2   : > { %v2896_v36 = vadd.f32 %v2771_v48, %v12641_v21  ;;  %v12813_v13 = vadd.f32 %v3290_v18, %v2895_v33  ;;  %v10266_v47 = vpop.f32.mrb[98].mxu1  ;;  %v5324_v21 = vsel %vm1031_vm1, %v5321_v46, %v5323_v3  ;;  %v5326_v53 = vsel %vm1031_vm1, %v5323_v3, %v5325_v55 }
 0x1c3   : > { %v3293_v42 = vpop.f32.mrb[99].mxu1 }
 0x1c4   : > { %v12815_v12 = vadd.f32 %v3293_v42, %v2896_v36  ;;  %10548 = vmatpush3.bf16.msra.mxu0 %v11306_v28 }
 0x1c5   : > { %10549 = vmatprep.subr.bf16.mxu0 %v11307_v17 }
 0x1c6   : > { %v10221_v57 = vpop.f32.mrb[100].mxu0 }
 0x1c7   : > { %v2784_v49 = vpop.f32.mrb[101].mxu0 }
 0x1c8   : > { %v2899_v23 = vadd.f32 %v2784_v49, %v12667_v40  ;;  %10550 = vmatpush3.bf16.msra.mxu0 %v11307_v17  ;;  %v10222_v31 = vpop.f32.mrb[102].mxu0  ;;  %v10269_v39 = vpop.f32.mrb[100].mxu1  ;;  %v5327_v40 = vrot.slane %v12756_v41, 1 }
 0x1c9   : > { %v2787_v2 = vpop.f32.mrb[103].mxu0  ;;  %v3306_v38 = vpop.f32.mrb[101].mxu1 }
 0x1ca   : > { %v2900_v26 = vadd.f32 %v2787_v2, %v12677_v63  ;;  %v12825_v50 = vadd.f32 %v3306_v38, %v2899_v23  ;;  %v10270_v51 = vpop.f32.mrb[102].mxu1  ;;  %v5328_v6 = vsel %vm1031_vm1, %v5325_v55, %v5327_v40 }
 0x1cb   : > { %10552 = vmatmul.mubr.bf16.vlgmr.msra.gmra.mrb[184].mxu0 %v5324_v21  ;;  %v3309_v59 = vpop.f32.mrb[103].mxu1 }
 0x1cc   : > { %v12827_v8 = vadd.f32 %v3309_v59, %v2900_v26  ;;  %10555 = vmatprep.mubr.bf16.mxu0 %v5326_v53 }
 0x1ce   : > { %v10225_v9 = vpop.f32.mrb[104].mxu0 }
 0x1cf   : > { %v2800_v4 = vpop.f32.mrb[105].mxu0 }
 0x1d0   : > { %v2903_v46 = vadd.f32 %v2800_v4, %v12695_v44  ;;  %v10226_v34 = vpop.f32.mrb[106].mxu0  ;;  %v10273_v60 = vpop.f32.mrb[104].mxu1 }
 0x1d1   : > { %v2803_v14 = vpop.f32.mrb[107].mxu0  ;;  %v3322_v63 = vpop.f32.mrb[105].mxu1 }
 0x1d2   : > { %v2904_v22 = vadd.f32 %v2803_v14, %v12703_v27  ;;  %v12833_v11 = vadd.f32 %v3322_v63, %v2903_v46  ;;  %v10274_v30 = vpop.f32.mrb[106].mxu1 }
 0x1d3   : > { %10556 = vmatmul.mubr.bf16.gmra.mrb[188].mxu0 %v5328_v6  ;;  %v3325_v5 = vpop.f32.mrb[107].mxu1 }
 0x1d4   : > { %v12835_v19 = vadd.f32 %v3325_v5, %v2904_v22 }
 0x1d6   : > { %v10229_v41 = vpop.f32.mrb[108].mxu0 }
 0x1d7   : > { %v2816_v37 = vpop.f32.mrb[109].mxu0 }
 0x1d8   : > { %v2907_v61 = vadd.f32 %v2816_v37, %v12716_v1  ;;  %v10230_v44 = vpop.f32.mrb[110].mxu0  ;;  %v10277_v15 = vpop.f32.mrb[108].mxu1 }
 0x1d9   : > { %v2819_v58 = vpop.f32.mrb[111].mxu0  ;;  %v3338_v32 = vpop.f32.mrb[109].mxu1 }
 0x1da   : > { %v2908_v52 = vadd.f32 %v2819_v58, %v12721_v43  ;;  %v12839_v28 = vadd.f32 %v3338_v32, %v2907_v61  ;;  %v10278_v27 = vpop.f32.mrb[110].mxu1  ;;  %v12870_v32 = vld [vmem:[%s14001_s2] ss:$0 sm:$0xff] }
 0x1db   : > { %v3341_v56 = vpop.f32.mrb[111].mxu1 }
 0x1dc   : > { %v12841_v45 = vadd.f32 %v3341_v56, %v2908_v52 }
 0x1de   : > { %v10233_v33 = vpop.f32.mrb[112].mxu0 }
 0x1df   : > { %v2832_v54 = vpop.f32.mrb[113].mxu0 }
 0x1e0   : > { %v2911_v35 = vadd.f32 %v2832_v54, %v12742_v25  ;;  %v10234_v48 = vpop.f32.mrb[114].mxu0  ;;  %v10281_v18 = vpop.f32.mrb[112].mxu1 }
 0x1e1   : > { %v2835_v17 = vpop.f32.mrb[115].mxu0  ;;  %v3354_v1 = vpop.f32.mrb[113].mxu1 }
 0x1e2   : > { %v2912_v36 = vadd.f32 %v2835_v17, %v12749_v10  ;;  %v12845_v47 = vadd.f32 %v3354_v1, %v2911_v35  ;;  %v10282_v42 = vpop.f32.mrb[114].mxu1 }
 0x1e3   : > { %v3357_v43 = vpop.f32.mrb[115].mxu1 }
 0x1e4   : > { %v12847_v3 = vadd.f32 %v3357_v43, %v2912_v36 }
 0x1e6   : > { %v10237_v55 = vpop.f32.mrb[116].mxu0 }
 0x1e7   : > { %v2848_v57 = vpop.f32.mrb[117].mxu0 }
 0x1e8   : > { %v2915_v49 = vadd.f32 %v2848_v57, %v12768_v7  ;;  %v10238_v23 = vpop.f32.mrb[118].mxu0  ;;  %v10285_v31 = vpop.f32.mrb[116].mxu1 }
 0x1e9   : > { %v2851_v39 = vpop.f32.mrb[119].mxu0  ;;  %v3370_v25 = vpop.f32.mrb[117].mxu1 }
 0x1ea   : > { %v2916_v21 = vadd.f32 %v2851_v39, %v12773_v20  ;;  %v12851_v2 = vadd.f32 %v3370_v25, %v2915_v49  ;;  %v10286_v38 = vpop.f32.mrb[118].mxu1 }
 0x1eb   : > { %v3373_v10 = vpop.f32.mrb[119].mxu1 }
 0x1ec   : > { %v12853_v53 = vadd.f32 %v3373_v10, %v2916_v21 }
 0x1ee   : > { %v10241_v26 = vpop.f32.mrb[120].mxu0 }
 0x1ef   : > { %v2864_v51 = vpop.f32.mrb[121].mxu0 }
 0x1f0   : > { %v2919_v59 = vadd.f32 %v2864_v51, %v12788_v29  ;;  %v10242_v40 = vpop.f32.mrb[122].mxu0  ;;  %v10289_v9 = vpop.f32.mrb[120].mxu1 }
 0x1f1   : > { %v2867_v4 = vpop.f32.mrb[123].mxu0  ;;  %v3386_v7 = vpop.f32.mrb[121].mxu1 }
 0x1f2   : > { %v2920_v46 = vadd.f32 %v2867_v4, %v12791_v16  ;;  %v12857_v34 = vadd.f32 %v3386_v7, %v2919_v59  ;;  %v10290_v60 = vpop.f32.mrb[122].mxu1 }
 0x1f3   : > { %v3389_v20 = vpop.f32.mrb[123].mxu1 }
 0x1f4   : > { %v12859_v6 = vadd.f32 %v3389_v20, %v2920_v46 }
 0x1f6   : > { %v10245_v14 = vpop.f32.mrb[124].mxu0 }
 0x1f7   : > { %v2880_v63 = vpop.f32.mrb[125].mxu0 }
 0x1f8   : > { %v2923_v22 = vadd.f32 %v2880_v63, %v12801_v62  ;;  %v10246_v30 = vpop.f32.mrb[126].mxu0  ;;  %v10293_v5 = vpop.f32.mrb[124].mxu1 }
 0x1f9   : > { %v2883_v41 = vpop.f32.mrb[127].mxu0  ;;  %v3402_v29 = vpop.f32.mrb[125].mxu1 }
 0x1fa   : > { %v2924_v37 = vadd.f32 %v2883_v41, %v12803_v24  ;;  %v12863_v61 = vadd.f32 %v3402_v29, %v2923_v22  ;;  %v10294_v44 = vpop.f32.mrb[126].mxu1 }
 0x1fb   : > { %v3405_v16 = vpop.f32.mrb[127].mxu1 }
 0x1fc   : > { %v12865_v15 = vadd.f32 %v3405_v16, %v2924_v37 }
 0x1fe   : > { %v10313_v58 = vpop.f32.mrb[128].mxu0 }
 0x1ff   : > { %v3601_v52 = vpop.f32.mrb[129].mxu0 }
 0x200   : > { %v3728_v62 = vadd.f32 %v3601_v52, %v12813_v13  ;;  %v10314_v27 = vpop.f32.mrb[130].mxu0  ;;  %v10361_v56 = vpop.f32.mrb[128].mxu1 }
 0x201   : > { %v3604_v33 = vpop.f32.mrb[131].mxu0  ;;  %v4088_v54 = vpop.f32.mrb[129].mxu1 }
 0x202   : > { %v3766_v24 = vadd.f32 %v12870_v32, %v3728_v62  ;;  %v3729_v35 = vadd.f32 %v3604_v33, %v12815_v12  ;;  %v10362_v48 = vpop.f32.mrb[130].mxu1 }
 0x203   : > { %v4091_v18 = vpop.f32.mrb[131].mxu1 }
 0x204   : > { %v3767_v17 = vadd.f32 %v12870_v32, %v3729_v35  ;;  %v3798_v1 = vmax.f32 %v3766_v24, 0.0 }
 0x206   : > { %v3799_v36 = vmax.f32 %v3767_v17, 0.0  ;;  %v10317_v42 = vpop.f32.mrb[132].mxu0 }
 0x207   : > { %v3617_v43 = vpop.f32.mrb[133].mxu0 }
 0x208   : > { %v3870_v55 = vpack.c.bf16 %v3799_v36, %v3798_v1  ;;  %v3732_v57 = vadd.f32 %v3617_v43, %v12825_v50  ;;  %v10318_v13 = vpop.f32.mrb[134].mxu0  ;;  %v10365_v49 = vpop.f32.mrb[132].mxu1 }
 0x209   : > { %v3620_v23 = vpop.f32.mrb[135].mxu0  ;;  %v4104_v31 = vpop.f32.mrb[133].mxu1 }
 0x20a   : > { %3886 = vst [vmem:[#allocation2 + $0x10] sm:$0xff] %v3870_v55  ;;  %v3770_v39 = vadd.f32 %v12870_v32, %v3732_v57  ;;  %v3733_v12 = vadd.f32 %v3620_v23, %v12827_v8  ;;  %v10366_v25 = vpop.f32.mrb[134].mxu1 }
 0x20b   : > { %v4107_v21 = vpop.f32.mrb[135].mxu1 }
 0x20c   : > { %v3771_v38 = vadd.f32 %v12870_v32, %v3733_v12  ;;  %v3802_v10 = vmax.f32 %v3770_v39, 0.0 }
 0x20e   : > { %v3803_v26 = vmax.f32 %v3771_v38, 0.0  ;;  %v10321_v51 = vpop.f32.mrb[136].mxu0 }
 0x20f   : > { %v3633_v59 = vpop.f32.mrb[137].mxu0 }
 0x210   : > { %v3872_v40 = vpack.c.bf16 %v3803_v26, %v3802_v10  ;;  %v3736_v50 = vadd.f32 %v3633_v59, %v12833_v11  ;;  %v10322_v9 = vpop.f32.mrb[138].mxu0 }
 0x211   : > { %v3636_v4 = vpop.f32.mrb[139].mxu0 }
 0x212   : > { %3888 = vst [vmem:[#allocation2 + $0x20] sm:$0xff] %v3872_v40  ;;  %v3774_v7 = vadd.f32 %v12870_v32, %v3736_v50  ;;  %v3737_v46 = vadd.f32 %v3636_v4, %v12835_v19 }
 0x214   : > { %v3775_v8 = vadd.f32 %v12870_v32, %v3737_v46  ;;  %v3806_v60 = vmax.f32 %v3774_v7, 0.0 }
 0x216   : > { %v3807_v20 = vmax.f32 %v3775_v8, 0.0  ;;  %v10325_v14 = vpop.f32.mrb[140].mxu0 }
 0x217   : > { %v3649_v63 = vpop.f32.mrb[141].mxu0 }
 0x218   : > { %v3874_v22 = vpack.c.bf16 %v3807_v20, %v3806_v60  ;;  %v3740_v30 = vadd.f32 %v3649_v63, %v12839_v28  ;;  %v10326_v5 = vpop.f32.mrb[142].mxu0 }
 0x219   : > { %v3652_v41 = vpop.f32.mrb[143].mxu0 }
 0x21a   : > { %3890 = vst [vmem:[#allocation2 + $0x30] sm:$0xff] %v3874_v22  ;;  %v3778_v11 = vadd.f32 %v12870_v32, %v3740_v30  ;;  %v3741_v29 = vadd.f32 %v3652_v41, %v12841_v45 }
 0x21c   : > { %v3779_v37 = vadd.f32 %v12870_v32, %v3741_v29  ;;  %v3810_v44 = vmax.f32 %v3778_v11, 0.0 }
 0x21e   : > { %v3811_v19 = vmax.f32 %v3779_v37, 0.0  ;;  %v10329_v16 = vpop.f32.mrb[144].mxu0 }
 0x21f   : > { %v3665_v58 = vpop.f32.mrb[145].mxu0 }
 0x220   : > { %v3876_v52 = vpack.c.bf16 %v3811_v19, %v3810_v44  ;;  %v10385_v62 = vpop.f32.mrb[136].mxu1  ;;  %v3744_v27 = vadd.f32 %v3665_v58, %v12845_v47  ;;  %v10330_v56 = vpop.f32.mrb[146].mxu0 }
 0x221   : > { %v4205_v33 = vpop.f32.mrb[137].mxu1  ;;  %v3668_v28 = vpop.f32.mrb[147].mxu0 }
 0x222   : > { %3892 = vst [vmem:[#allocation2 + $0x40] sm:$0xff] %v3876_v52  ;;  %v4206_v24 = vadd.f32 %v4205_v33, %v4088_v54  ;;  %v3782_v35 = vadd.f32 %v12870_v32, %v3744_v27  ;;  %v10386_v48 = vpop.f32.mrb[138].mxu1  ;;  %v3745_v45 = vadd.f32 %v3668_v28, %v12847_v3 }
 0x223   : > { %v4208_v17 = vpop.f32.mrb[139].mxu1 }
 0x224   : > { %v4209_v1 = vadd.f32 %v4208_v17, %v4091_v18  ;;  %v3783_v36 = vadd.f32 %v12870_v32, %v3745_v45  ;;  %v3814_v42 = vmax.f32 %v3782_v35, 0.0 }
 0x226   : > { %v3815_v43 = vmax.f32 %v3783_v36, 0.0  ;;  %v10333_v55 = vpop.f32.mrb[148].mxu0 }
 0x227   : > { %v3681_v57 = vpop.f32.mrb[149].mxu0 }
 0x228   : > { %v3878_v13 = vpack.c.bf16 %v3815_v43, %v3814_v42  ;;  %v3748_v47 = vadd.f32 %v3681_v57, %v12851_v2  ;;  %v10334_v49 = vpop.f32.mrb[150].mxu0  ;;  %v10389_v23 = vpop.f32.mrb[140].mxu1 }
 0x229   : > { %v3684_v39 = vpop.f32.mrb[151].mxu0  ;;  %v4221_v54 = vpop.f32.mrb[141].mxu1 }
 0x22a   : > { %3894 = vst [vmem:[#allocation2 + $0x50] sm:$0xff] %v3878_v13  ;;  %v3786_v12 = vadd.f32 %v12870_v32, %v3748_v47  ;;  %v3749_v3 = vadd.f32 %v3684_v39, %v12853_v53  ;;  %v4222_v25 = vadd.f32 %v4221_v54, %v4104_v31  ;;  %v10390_v18 = vpop.f32.mrb[142].mxu1 }
 0x22b   : > { %v4224_v38 = vpop.f32.mrb[143].mxu1 }
 0x22c   : > { %v3787_v10 = vadd.f32 %v12870_v32, %v3749_v3  ;;  %v4225_v26 = vadd.f32 %v4224_v38, %v4107_v21  ;;  %v3818_v51 = vmax.f32 %v3786_v12, 0.0 }
 0x22e   : > { %v3819_v59 = vmax.f32 %v3787_v10, 0.0  ;;  %v10337_v40 = vpop.f32.mrb[152].mxu0 }
 0x22f   : > { %v3697_v50 = vpop.f32.mrb[153].mxu0 }
 0x230   : > { %v3880_v2 = vpack.c.bf16 %v3819_v59, %v3818_v51  ;;  %v3752_v9 = vadd.f32 %v3697_v50, %v12857_v34  ;;  %v10338_v4 = vpop.f32.mrb[154].mxu0 }
 0x231   : > { %v3700_v7 = vpop.f32.mrb[155].mxu0 }
 0x232   : > { %3896 = vst [vmem:[#allocation2 + $0x60] sm:$0xff] %v3880_v2  ;;  %v3790_v46 = vadd.f32 %v12870_v32, %v3752_v9  ;;  %v3753_v53 = vadd.f32 %v3700_v7, %v12859_v6 }
 0x234   : > { %v3791_v31 = vadd.f32 %v12870_v32, %v3753_v53  ;;  %v3822_v8 = vmax.f32 %v3790_v46, 0.0 }
 0x236   : > { %v3823_v60 = vmax.f32 %v3791_v31, 0.0  ;;  %v10341_v20 = vpop.f32.mrb[156].mxu0 }
 0x237   : > { %v3713_v21 = vpop.f32.mrb[157].mxu0 }
 0x238   : > { %v3882_v14 = vpack.c.bf16 %v3823_v60, %v3822_v8  ;;  %v3756_v63 = vadd.f32 %v3713_v21, %v12863_v61  ;;  %v10342_v22 = vpop.f32.mrb[158].mxu0 }
 0x239   : > { %v3716_v30 = vpop.f32.mrb[159].mxu0 }
 0x23a   : > { %3898 = vst [vmem:[#allocation2 + $0x70] sm:$0xff] %v3882_v14  ;;  %v3794_v34 = vadd.f32 %v12870_v32, %v3756_v63  ;;  %v3757_v5 = vadd.f32 %v3716_v30, %v12865_v15 }
 0x23c   : > { %v3795_v41 = vadd.f32 %v12870_v32, %v3757_v5  ;;  %v3826_v11 = vmax.f32 %v3794_v34, 0.0 }
 0x23e   : > { %v3827_v6 = vmax.f32 %v3795_v41, 0.0  ;;  %v10409_v29 = vpop.f32.mrb[160].mxu0 }
 0x23f   : > { %v4351_v37 = vpop.f32.mrb[161].mxu0 }
 0x240   : > { %v3884_v44 = vpack.c.bf16 %v3827_v6, %v3826_v11  ;;  %v4382_v19 = vadd.f32 %v4351_v37, %v4206_v24  ;;  %v10410_v16 = vpop.f32.mrb[162].mxu0  ;;  %v10433_v58 = vpop.f32.mrb[144].mxu1 }
 0x241   : > { %v4354_v52 = vpop.f32.mrb[163].mxu0  ;;  %v4520_v62 = vpop.f32.mrb[145].mxu1 }
 0x242   : > { %3900 = vst [vmem:[#allocation2 + $0x80] sm:$0xff] %v3884_v44  ;;  %v4383_v61 = vadd.f32 %v4354_v52, %v4209_v1  ;;  %v4551_v27 = vadd.f32 %v4520_v62, %v4382_v19  ;;  %v10434_v56 = vpop.f32.mrb[146].mxu1 }
 0x243   : > { %v4523_v33 = vpop.f32.mrb[147].mxu1 }
 0x244   : > { %v4552_v28 = vadd.f32 %v4523_v33, %v4383_v61 }
 0x246   : > { %v10413_v35 = vpop.f32.mrb[164].mxu0 }
 0x247   : > { %v4367_v15 = vpop.f32.mrb[165].mxu0 }
 0x248   : > { %v4386_v48 = vadd.f32 %v4367_v15, %v4222_v25  ;;  %v10414_v45 = vpop.f32.mrb[166].mxu0  ;;  %v10437_v17 = vpop.f32.mrb[148].mxu1 }
 0x249   : > { %v4370_v36 = vpop.f32.mrb[167].mxu0  ;;  %v4536_v42 = vpop.f32.mrb[149].mxu1 }
 0x24a   : > { %v4387_v43 = vadd.f32 %v4370_v36, %v4225_v26  ;;  %v4555_v55 = vadd.f32 %v4536_v42, %v4386_v48  ;;  %v10438_v24 = vpop.f32.mrb[150].mxu1 }
 0x24b   : > { %v4539_v57 = vpop.f32.mrb[151].mxu1 }
 0x24c   : > { %v4556_v13 = vadd.f32 %v4539_v57, %v4387_v43 }
 0x25e   : > { %v10457_v47 = vpop.f32.mrb[168].mxu0 }
 0x25f   : > { %v4729_v49 = vpop.f32.mrb[169].mxu0 }
 0x260   : > { %v4760_v23 = vadd.f32 %v4729_v49, %v4551_v27  ;;  %v10458_v1 = vpop.f32.mrb[170].mxu0  ;;  %v10481_v39 = vpop.f32.mrb[152].mxu1 }
 0x261   : > { %v4732_v54 = vpop.f32.mrb[171].mxu0  ;;  %v4883_v12 = vpop.f32.mrb[153].mxu1 }
 0x262   : > { %v4761_v3 = vadd.f32 %v4732_v54, %v4552_v28  ;;  %v4914_v18 = vadd.f32 %v4883_v12, %v4760_v23  ;;  %v10482_v38 = vpop.f32.mrb[154].mxu1 }
 0x263   : > { %v4886_v25 = vpop.f32.mrb[155].mxu1 }
 0x264   : > { %v4915_v10 = vadd.f32 %v4886_v25, %v4761_v3 }
 0x266   : > { %v10461_v51 = vpop.f32.mrb[172].mxu0 }
 0x267   : > { %v4745_v59 = vpop.f32.mrb[173].mxu0 }
 0x268   : > { %v4764_v40 = vadd.f32 %v4745_v59, %v4555_v55  ;;  %v10462_v26 = vpop.f32.mrb[174].mxu0  ;;  %v10485_v50 = vpop.f32.mrb[156].mxu1 }
 0x269   : > { %v4748_v2 = vpop.f32.mrb[175].mxu0  ;;  %v4899_v9 = vpop.f32.mrb[157].mxu1 }
 0x26a   : > { %v4765_v4 = vadd.f32 %v4748_v2, %v4556_v13  ;;  %v4918_v7 = vadd.f32 %v4899_v9, %v4764_v40  ;;  %v10486_v46 = vpop.f32.mrb[158].mxu1 }
 0x26b   : > { %v4902_v53 = vpop.f32.mrb[159].mxu1 }
 0x26c   : > { %v4919_v31 = vadd.f32 %v4902_v53, %v4765_v4 }
 0x27e   : > { %v10505_v8 = vpop.f32.mrb[176].mxu0 }
 0x27f   : > { %v5052_v60 = vpop.f32.mrb[177].mxu0 }
 0x280   : > { %v5083_v20 = vadd.f32 %v5052_v60, %v4914_v18  ;;  %v10506_v21 = vpop.f32.mrb[178].mxu0  ;;  %v10529_v14 = vpop.f32.mrb[160].mxu1  ;;  %v11423_v18 = vmov (!%p9166_p8), 0  }
 0x281   : > { %v5055_v63 = vpop.f32.mrb[179].mxu0  ;;  %v5261_v22 = vpop.f32.mrb[161].mxu1  ;;  %5490 = vst [vmem:[#allocation2 + $0x10] sm:$0xff] (!%p9166_p8), %v11423_v18  ;;  %5491 = vst [vmem:[#allocation2 + $0x18] sm:$0xff] (!%p9166_p8), %v11423_v18 }
 0x282   : > { %v5084_v30 = vadd.f32 %v5055_v63, %v4915_v10  ;;  %v5292_v34 = vadd.f32 %v5261_v22, %v5083_v20  ;;  %v10530_v5 = vpop.f32.mrb[162].mxu1 }
 0x283   : > { %v5264_v41 = vpop.f32.mrb[163].mxu1 }
 0x284   : > { %v5293_v11 = vadd.f32 %v5264_v41, %v5084_v30 }
 0x286   : > { %v10509_v6 = vpop.f32.mrb[180].mxu0 }
 0x287   : > { %v5068_v29 = vpop.f32.mrb[181].mxu0 }
 0x288   : > { %v5087_v37 = vadd.f32 %v5068_v29, %v4918_v7  ;;  %v10510_v44 = vpop.f32.mrb[182].mxu0  ;;  %v10533_v19 = vpop.f32.mrb[164].mxu1 }
 0x289   : > { %v5071_v16 = vpop.f32.mrb[183].mxu0  ;;  %v5277_v58 = vpop.f32.mrb[165].mxu1 }
 0x28a   : > { %v5088_v52 = vadd.f32 %v5071_v16, %v4919_v31  ;;  %v5296_v62 = vadd.f32 %v5277_v58, %v5087_v37  ;;  %v10534_v61 = vpop.f32.mrb[166].mxu1 }
 0x28b   : > { %v5280_v27 = vpop.f32.mrb[167].mxu1 }
 0x28c   : > { %v5297_v56 = vadd.f32 %v5280_v27, %v5088_v52 }
 0x29e   : > { %v10553_v33 = vpop.f32.mrb[184].mxu0 }
 0x29f   : > { %v5415_v28 = vpop.f32.mrb[185].mxu0 }
 0x2a0   : > { %v5446_v35 = vadd.f32 %v5415_v28, %v5292_v34  ;;  %v10554_v15 = vpop.f32.mrb[186].mxu0 }
 0x2a1   : > { %v5418_v48 = vpop.f32.mrb[187].mxu0 }
 0x2a2   : > { %v5454_v45 = vadd.f32 %v12870_v32, %v5446_v35  ;;  %v5447_v17 = vadd.f32 %v5418_v48, %v5293_v11 }
 0x2a4   : > { %v5455_v36 = vadd.f32 %v12870_v32, %v5447_v17  ;;  %v5462_v42 = vmax.f32 %v5454_v45, 0.0 }
 0x2a6   : > { %v5463_v43 = vmax.f32 %v5455_v36, 0.0  ;;  %v10557_v55 = vpop.f32.mrb[188].mxu0 }
 0x2a7   : > { %v5431_v24 = vpop.f32.mrb[189].mxu0 }
 0x2a8   : > { %v5478_v57 = vpack.c.bf16 %v5463_v43, %v5462_v42  ;;  %v5450_v13 = vadd.f32 %v5431_v24, %v5296_v62  ;;  %v10558_v47 = vpop.f32.mrb[190].mxu0 }
 0x2a9   : > { %v5434_v49 = vpop.f32.mrb[191].mxu0 }
 0x2aa   : > { %5482 = vst [vmem:[#allocation2 + $0x90] sm:$0xff] %v5478_v57  ;;  %v5458_v23 = vadd.f32 %v12870_v32, %v5450_v13  ;;  %v5451_v1 = vadd.f32 %v5434_v49, %v5297_v56 }
 0x2ac   : > { %v5459_v39 = vadd.f32 %v12870_v32, %v5451_v1  ;;  %v5466_v54 = vmax.f32 %v5458_v23, 0.0  ;;  %5489 = sbr.rel (%p9166_p8) target bundleno = 691 (0x2b3), region = 44 }
 0x2ae   : > { %v5467_v12 = vmax.f32 %v5459_v39, 0.0 }
 0x2b0   : > { %v5480_v3 = vpack.c.bf16 %v5467_v12, %v5466_v54 }
 0x2b2   : > { %5484 = vst [vmem:[#allocation2 + $0xa0] sm:$0xff] %v5480_v3 }
 0x2b3 PF: > { %p9167_p9 = scmp.ne.s32.totalorder %s11403_s18, 1 }
 0x2b4   : > { %v11424_v38 = vmov (!%p9167_p9), 0  }
 0x2b5   : > { %5495 = sbr.rel (%p9167_p9) target bundleno = 700 (0x2bc), region = 48  ;;  %5496 = vst [vmem:[#allocation2 + $0xa0] sm:$0xff] (!%p9167_p9), %v11424_v38  ;;  %5497 = vst [vmem:[#allocation2 + $0xa8] sm:$0xff] (!%p9167_p9), %v11424_v38 }
 0x2bc PF: > { %v11309_v32 = vld [vmem:[%s14002_s3 + $0x40] sm:$0xff]   ;;  %v11311_v10 = vld [vmem:[%s14002_s3 + $0x48] sm:$0xff]   ;;  %v11313_v59 = vld [vmem:[%s14002_s3 + $0x50] sm:$0xff]   ;;  %vm5741_vm2 = vsmask.f32 256 }
 0x2bd   : > { %v11310_v25 = vld [vmem:[%s14002_s3] sm:$0xff]   ;;  %10559 = vmatprep.subr.bf16.mxu1 %v11309_v32  ;;  %v11312_v51 = vld [vmem:[%s14002_s3 + $0x8] sm:$0xff]   ;;  %v11314_v40 = vld [vmem:[%s14002_s3 + $0x10] sm:$0xff]  }
 0x2be   : > { %10607 = vmatprep.subr.bf16.mxu0 %v11310_v25  ;;  %10560 = vmatpush3.bf16.msra.mxu1 %v11309_v32  ;;  %v11315_v26 = vld [vmem:[%s14002_s3 + $0x58] sm:$0xff]   ;;  %v11317_v2 = vld [vmem:[%s14002_s3 + $0x60] sm:$0xff]   ;;  %v11319_v4 = vld [vmem:[%s14002_s3 + $0x68] sm:$0xff]  }
 0x2bf   : > { %10608 = vmatpush3.bf16.msra.mxu0 %v11310_v25  ;;  %10561 = vmatprep.subr.bf16.mxu1 %v11311_v10  ;;  %v11316_v50 = vld [vmem:[%s14002_s3 + $0x18] sm:$0xff]   ;;  %v11318_v9 = vld [vmem:[%s14002_s3 + $0x20] sm:$0xff]   ;;  %v11320_v7 = vld [vmem:[%s14002_s3 + $0x28] sm:$0xff]  }
 0x2c0   : > { %10609 = vmatprep.subr.bf16.mxu0 %v11312_v51  ;;  %v12946_v46 = vld [vmem:[#allocation2 + $0x10] sm:$0xff]  ;;  %v5498_v53 = vld [vmem:[#allocation2 + $0x8] sm:$0x80]  ;;  %v12951_v20 = vld [vmem:[#allocation2 + $0x18] sm:$0xff] }
 0x2c1   : > { %10575 = vmatprep.mubr.bf16.mxu1 %v12946_v46  ;;  %v5747_v31 = vshrl.u32 %v12946_v46, 16  ;;  %v5750_v8 = vshll.u32 %v12946_v46, 16  ;;  %v5743_v60 = vshrl.u32 %v5498_v53, 16  ;;  %v12953_v21 = vld [vmem:[#allocation2 + $0x20] sm:$0xff]  ;;  %v11321_v22 = vld [vmem:[%s14002_s3 + $0x70] sm:$0xff]   ;;  %v5755_v30 = vshrl.u32 %v12951_v20, 16 }
 0x2c2   : > { %10562 = vmatpush3.bf16.msra.mxu1 %v11311_v10  ;;  %v11322_v34 = vld [vmem:[%s14002_s3 + $0x30] sm:$0xff]   ;;  %v5763_v41 = vshrl.u32 %v12953_v21, 16  ;;  %v11323_v6 = vld [vmem:[%s14002_s3 + $0x78] sm:$0xff]   ;;  %v5758_v37 = vshll.u32 %v12951_v20, 16  ;;  %v5766_v16 = vshll.u32 %v12953_v21, 16  ;;  %v12976_v58 = vld [vmem:[#allocation2 + $0x28] sm:$0xff] }
 0x2c3   : > { %10610 = vmatpush3.bf16.msra.mxu0 %v11312_v51  ;;  %10563 = vmatprep.subr.bf16.mxu1 %v11313_v59  ;;  %v5749_v14 = vrot.slane %v5747_v31, 7  ;;  %v5745_v63 = vrot.slane %v5743_v60, 7  ;;  %v5757_v29 = vrot.slane %v5755_v30, 7  ;;  %v11324_v44 = vld [vmem:[%s14002_s3 + $0x38] sm:$0xff]   ;;  %v12978_v52 = vld [vmem:[#allocation2 + $0x30] sm:$0xff]  ;;  %v11325_v61 = vld [vmem:[%s14002_s3 + $0x80] sm:$0xff]  }
 0x2c4   : > { %10611 = vmatprep.subr.bf16.mxu0 %v11314_v40  ;;  %v5765_v19 = vrot.slane %v5763_v41, 7  ;;  %v5771_v27 = vshrl.u32 %v12976_v58, 16  ;;  %v5779_v33 = vshrl.u32 %v12978_v52, 16  ;;  %v11330_v28 = vld [vmem:[%s14002_s3 + $0xc0] sm:$0xff]   ;;  %v11326_v35 = vld [vmem:[%s14002_s3 + $0x88] sm:$0xff]   ;;  %v5774_v45 = vshll.u32 %v12976_v58, 16 }
 0x2c5   : > { %v5752_v5 = vor.u32 %v5750_v8, %v5749_v14  ;;  %v5760_v62 = vor.u32 %v5758_v37, %v5757_v29  ;;  %v5782_v42 = vshll.u32 %v12978_v52, 16  ;;  %v13006_v43 = vld [vmem:[#allocation2 + $0x38] sm:$0xff]  ;;  %v6122_v55 = vrot.slane %v5750_v8, 1  ;;  %v13009_v24 = vld [vmem:[#allocation2 + $0x40] sm:$0xff]  ;;  %v11331_v57 = vld [vmem:[%s14002_s3 + $0xc8] sm:$0xff]  }
 0x2c6   : > { %10564 = vmatpush3.bf16.msra.mxu1 %v11313_v59  ;;  %v12988_v56 = vor.u32 %v5766_v16, %v5765_v19  ;;  %v5773_v48 = vrot.slane %v5771_v27, 7  ;;  %v5781_v36 = vrot.slane %v5779_v33, 7  ;;  %v5787_v49 = vshrl.u32 %v13006_v43, 16  ;;  %v11327_v23 = vld [vmem:[%s14002_s3 + $0x90] sm:$0xff]   ;;  %v13035_v38 = vld [vmem:[#allocation2 + $0x48] sm:$0xff]  ;;  %v11328_v51 = vld [vmem:[%s14002_s3 + $0x98] sm:$0xff]  }
 0x2c7   : > { %10612 = vmatpush3.bf16.msra.mxu0 %v11314_v40  ;;  %10565 = vmatprep.subr.bf16.mxu1 %v11315_v26  ;;  %v5753_v11 = vsel %vm5741_vm2, %v5745_v63, %v5752_v5  ;;  %v5761_v15 = vsel %vm5741_vm2, %v5749_v14, %v5760_v62  ;;  %v13014_v13 = vor.u32 %v6122_v55, %v5747_v31  ;;  %v5795_v39 = vshrl.u32 %v13009_v24, 16  ;;  %v11333_v54 = vld [vmem:[%s14002_s3 + $0xd0] sm:$0xff]   ;;  %v11334_v40 = vld [vmem:[%s14002_s3 + $0xd8] sm:$0xff]   ;;  %v13066_v46 = vld [vmem:[#allocation2 + $0x60] sm:$0xff] }
 0x2c8   : > { %10613 = vmatprep.subr.bf16.mxu0 %v11316_v50  ;;  %10623 = vmatprep.mubr.bf16.mxu0 %v5753_v11  ;;  %v5769_v17 = vsel %vm5741_vm2, %v5757_v29, %v12988_v56  ;;  %v5776_v47 = vor.u32 %v5774_v45, %v5773_v48  ;;  %v5784_v1 = vor.u32 %v5782_v42, %v5781_v36  ;;  %v5790_v12 = vshll.u32 %v13006_v43, 16  ;;  %v13046_v59 = vld [vmem:[#allocation2 + $0x50] sm:$0xff]  ;;  %v11336_v31 = vld [vmem:[%s14002_s3 + $0xe0] sm:$0xff]   ;;  %v13084_v5 = vld [vmem:[#allocation2 + $0x68] sm:$0xff] }
 0x2c9   : > { %v5789_v18 = vrot.slane %v5787_v49, 7  ;;  %v5797_v25 = vrot.slane %v5795_v39, 7  ;;  %v5798_v10 = vshll.u32 %v13009_v24, 16  ;;  %v5806_v60 = vshll.u32 %v13035_v38, 16  ;;  %v11332_v29 = vld [vmem:[%s14002_s3 + $0xa8] sm:$0xff]   ;;  %v11339_v55 = vld [vmem:[%s14002_s3 + $0xf0] sm:$0xff]  }
 0x2ca   : > { %10566 = vmatpush3.bf16.msra.mxu1 %v11315_v26  ;;  %v13031_v3 = vsel %vm5741_vm2, %v5765_v19, %v5776_v47  ;;  %v13038_v32 = vsel %vm5741_vm2, %v5773_v48, %v5784_v1  ;;  %v5803_v26 = vshrl.u32 %v13035_v38, 16  ;;  %v11337_v19 = vld [vmem:[%s14002_s3 + $0xe8] sm:$0xff]   ;;  %v7143_v1 = vrot.slane %v5782_v42, 1 }
 0x2cb   : > { %10614 = vmatpush3.bf16.msra.mxu0 %v11316_v50  ;;  %10567 = vmatprep.subr.bf16.mxu1 %v11317_v2  ;;  %v13055_v50 = vld [vmem:[#allocation2 + $0x58] sm:$0xff] }
 0x2cc   : > { %10615 = vmatprep.subr.bf16.mxu0 %v11318_v9  ;;  %v5819_v53 = vshrl.u32 %v13055_v50, 16  ;;  %v5805_v8 = vrot.slane %v5803_v26, 7 }
 0x2ce   : > { %10568 = vmatpush3.bf16.msra.mxu1 %v11317_v2  ;;  %v5792_v2 = vor.u32 %v5790_v12, %v5789_v18  ;;  %v5808_v62 = vor.u32 %v5806_v60, %v5805_v8 }
 0x2cf   : > { %10616 = vmatpush3.bf16.msra.mxu0 %v11318_v9  ;;  %10569 = vmatprep.subr.bf16.mxu1 %v11319_v4  ;;  %v5811_v9 = vshrl.u32 %v13046_v59, 16 }
 0x2d0   : > { %10617 = vmatprep.subr.bf16.mxu0 %v11320_v7  ;;  %v13076_v14 = vsel %vm5741_vm2, %v5781_v36, %v5792_v2  ;;  %v13122_v36 = vrot.slane %v5766_v16, 1  ;;  %v13130_v47 = vsel %vm5741_vm2, %v5797_v25, %v5808_v62 }
 0x2d1   : > { %v13080_v63 = vrot.slane %v5811_v9, 7 }
 0x2d2   : > { %10570 = vmatpush3.bf16.msra.mxu1 %v11319_v4  ;;  %v11329_v4 = vld [vmem:[%s14002_s3 + $0xa0] sm:$0xff]  }
 0x2d3   : > { %10618 = vmatpush3.bf16.msra.mxu0 %v11320_v7  ;;  %10571 = vmatprep.subr.bf16.mxu1 %v11321_v22  ;;  %v5800_v7 = vor.u32 %v5798_v10, %v5797_v25  ;;  %v7151_v25 = vrot.slane %v5790_v12, 1  ;;  %v11340_v12 = vld [vmem:[%s14002_s3 + $0xf8] sm:$0xff]  }
 0x2d4   : > { %10619 = vmatprep.subr.bf16.mxu0 %v11322_v34 }
 0x2d5   : > { %v13087_v11 = vsel %vm5741_vm2, %v5789_v18, %v5800_v7  ;;  %v13141_v18 = vld [vmem:[#allocation2 + $0x78] sm:$0xff]  ;;  %v7147_v7 = vor.u32 %v7143_v1, %v5779_v33  ;;  %v7155_v62 = vor.u32 %v7151_v25, %v5787_v49  ;;  %v13183_v33 = vld [vmem:[#allocation2 + $0x80] sm:$0xff] }
 0x2d6   : > { %10572 = vmatpush3.bf16.msra.mxu1 %v11321_v22  ;;  %v5814_v22 = vshll.u32 %v13046_v59, 16  ;;  %v13199_v49 = vld [vmem:[%s14002_s3 + $0x100] sm:$0xff]  }
 0x2d7   : > { %10620 = vmatpush3.bf16.msra.mxu0 %v11322_v34  ;;  %10573 = vmatprep.subr.bf16.mxu1 %v11323_v6  ;;  %v5827_v34 = vshrl.u32 %v13066_v46, 16 }
 0x2d8   : > { %10621 = vmatprep.subr.bf16.mxu0 %v11324_v44  ;;  %v5816_v48 = vor.u32 %v5814_v22, %v13080_v63 }
 0x2da   : > { %10574 = vmatpush3.bf16.msra.mxu1 %v11323_v6  ;;  %v5822_v6 = vshll.u32 %v13055_v50, 16 }
 0x2db   : > { %10622 = vmatpush3.bf16.msra.mxu0 %v11324_v44  ;;  %10655 = vmatprep.subr.bf16.mxu1 %v11325_v61  ;;  %v13096_v44 = vrot.slane %v5819_v53, 7 }
 0x2dc   : > { %10703 = vmatprep.subr.bf16.mxu0 %v11330_v28 }
 0x2dd   : > { %10576 = vmatmul.mubr.bf16.vlgmr.msra.gmra.mrb[168].mxu1 %v12951_v20  ;;  %v5824_v16 = vor.u32 %v5822_v6, %v13096_v44  ;;  %v11343_v20 = vld [vmem:[%s14002_s3 + $0x110] sm:$0xff]  }
 0x2de   : > { %10624 = vmatmul.mubr.bf16.vlgmr.msra.gmra.mrb[192].mxu0 %v5761_v15  ;;  %10656 = vmatpush3.bf16.msra.mxu1 %v11325_v61  ;;  %v5830_v61 = vshll.u32 %v13066_v46, 16  ;;  %v13112_v15 = vld [vmem:[#allocation2 + $0x70] sm:$0xff] }
 0x2df   : > { %10579 = vmatprep.mubr.bf16.mxu1 %v12953_v21  ;;  %10627 = vmatprep.mubr.bf16.mxu0 %v5769_v17  ;;  %v11335_v17 = vld [vmem:[%s14002_s3 + $0xb0] sm:$0xff]  }
 0x2e0   : > { %10657 = vmatprep.subr.bf16.mxu1 %v11326_v35  ;;  %10704 = vmatpush3.bf16.msra.mxu0 %v11330_v28  ;;  %v5835_v28 = vshrl.u32 %v13084_v5, 16 }
 0x2e1   : > { %10705 = vmatprep.subr.bf16.mxu0 %v11331_v57 }
 0x2e2   : > { %10658 = vmatpush3.bf16.msra.mxu1 %v11326_v35  ;;  %v13110_v35 = vrot.slane %v5827_v34, 7 }
 0x2e3   : > { %10659 = vmatprep.subr.bf16.mxu1 %v11327_v23 }
 0x2e4   : > { %10706 = vmatpush3.bf16.msra.mxu0 %v11331_v57  ;;  %v7135_v57 = vrot.slane %v5774_v45, 1  ;;  %v5832_v42 = vor.u32 %v5830_v61, %v13110_v35 }
 0x2e5   : > { %10580 = vmatmul.mubr.bf16.gmra.mrb[172].mxu1 %v12976_v58  ;;  %10707 = vmatprep.subr.bf16.mxu0 %v11333_v54 }
 0x2e6   : > { %10628 = vmatmul.mubr.bf16.gmra.mrb[196].mxu0 %v13031_v3  ;;  %10583 = vmatprep.mubr.bf16.mxu1 %v12978_v52  ;;  %v7139_v45 = vor.u32 %v7135_v57, %v5771_v27  ;;  %v11338_v27 = vld [vmem:[%s14002_s3 + $0xb8] sm:$0xff]  }
 0x2e7   : > { %10631 = vmatprep.mubr.bf16.mxu0 %v13038_v32  ;;  %10660 = vmatpush3.bf16.msra.mxu1 %v11327_v23  ;;  %v7131_v23 = vor.u32 %v13122_v36, %v5763_v41  ;;  %v13148_v41 = vsel %vm5741_vm2, %v5805_v8, %v5816_v48  ;;  %v5846_v8 = vshll.u32 %v13112_v15, 16 }
 0x2e8   : > { %10661 = vmatprep.subr.bf16.mxu1 %v11328_v51  ;;  %10708 = vmatpush3.bf16.msra.mxu0 %v11333_v54  ;;  %v5838_v54 = vshll.u32 %v13084_v5, 16 }
 0x2e9   : > { %10709 = vmatprep.subr.bf16.mxu0 %v11334_v40  ;;  %v13166_v2 = vsel %vm427_vm0, %v7131_v23, %v7135_v57  ;;  %v7167_v57 = vrot.slane %v5806_v60, 1  ;;  %v13194_v23 = vsel %vm5741_vm2, %v13080_v63, %v5824_v16 }
 0x2eb   : > { %10662 = vmatpush3.bf16.msra.mxu1 %v11328_v51  ;;  %v13155_v51 = vrot.slane %v5835_v28, 7 }
 0x2ec   : > { %10663 = vmatprep.subr.bf16.mxu1 %v11329_v4  ;;  %10710 = vmatpush3.bf16.msra.mxu0 %v11334_v40  ;;  %v5843_v40 = vshrl.u32 %v13112_v15, 16 }
 0x2ed   : > { %10584 = vmatmul.mubr.bf16.gmra.mrb[176].mxu1 %v13006_v43  ;;  %10711 = vmatprep.subr.bf16.mxu0 %v11336_v31 }
 0x2ee   : > { %10632 = vmatmul.mubr.bf16.gmra.mrb[200].mxu0 %v13076_v14  ;;  %10587 = vmatprep.mubr.bf16.mxu1 %v13009_v24  ;;  %v5845_v16 = vrot.slane %v5843_v40, 7 }
 0x2ef   : > { %10635 = vmatprep.mubr.bf16.mxu0 %v13087_v11  ;;  %10664 = vmatpush3.bf16.msra.mxu1 %v11329_v4  ;;  %v13169_v4 = vsel %vm427_vm0, %v7139_v45, %v7143_v1  ;;  %v7183_v1 = vrot.slane %v5822_v6, 1  ;;  %v7199_v6 = vrot.slane %v5838_v54, 1 }
 0x2f0   : > { %10665 = vmatprep.subr.bf16.mxu1 %v11332_v29  ;;  %10712 = vmatpush3.bf16.msra.mxu0 %v11336_v31  ;;  %v7159_v31 = vrot.slane %v5798_v10, 1  ;;  %v13186_v10 = vsel %vm427_vm0, %v7147_v7, %v7151_v25  ;;  %v7191_v25 = vrot.slane %v5830_v61, 1 }
 0x2f1   : > { %10713 = vmatprep.subr.bf16.mxu0 %v11337_v19 }
 0x2f2   : > { %v7163_v48 = vor.u32 %v7159_v31, %v5795_v39  ;;  %v13206_v39 = vld [vmem:[%s14002_s3 + $0x140] sm:$0xff]   ;;  %v13209_v60 = vsel %vm427_vm0, %v7155_v62, %v7159_v31  ;;  %v7195_v61 = vor.u32 %v7191_v25, %v5827_v34 }
 0x2f3   : > { %10666 = vmatpush3.bf16.msra.mxu1 %v11332_v29  ;;  %v5851_v29 = vshrl.u32 %v13141_v18, 16 }
 0x2f4   : > { %10667 = vmatprep.subr.bf16.mxu1 %v11335_v17  ;;  %10714 = vmatpush3.bf16.msra.mxu0 %v11337_v19  ;;  %v5854_v19 = vshll.u32 %v13141_v18, 16  ;;  %v13212_v63 = vsel %vm427_vm0, %v7163_v48, %v7167_v57  ;;  %v13251_v62 = vsel %vm427_vm0, %v7195_v61, %v7199_v6 }
 0x2f5   : > { %10588 = vmatmul.mubr.bf16.gmra.mrb[180].mxu1 %v13035_v38  ;;  %10715 = vmatprep.subr.bf16.mxu0 %v11339_v55  ;;  %v5853_v7 = vrot.slane %v5851_v29, 7 }
 0x2f6   : > { %10636 = vmatmul.mubr.bf16.gmra.mrb[204].mxu0 %v13130_v47  ;;  %10591 = vmatprep.mubr.bf16.mxu1 %v13046_v59  ;;  %v7215_v48 = vrot.slane %v5854_v19, 1 }
 0x2f7   : > { %10639 = vmatprep.mubr.bf16.mxu0 %v13148_v41  ;;  %10668 = vmatpush3.bf16.msra.mxu1 %v11335_v17  ;;  %v7175_v17 = vrot.slane %v5814_v22, 1  ;;  %v13220_v22 = vsel %vm5741_vm2, %v13096_v44, %v5832_v42  ;;  %v5859_v44 = vshrl.u32 %v13183_v33, 16  ;;  %v7207_v42 = vrot.slane %v5846_v8, 1 }
 0x2f8   : > { %10669 = vmatprep.subr.bf16.mxu1 %v11338_v27  ;;  %10716 = vmatpush3.bf16.msra.mxu0 %v11339_v55  ;;  %v7171_v55 = vor.u32 %v7167_v57, %v5803_v26  ;;  %v7187_v26 = vor.u32 %v7183_v1, %v5819_v53  ;;  %v5840_v57 = vor.u32 %v5838_v54, %v13155_v51 }
 0x2f9   : > { %10717 = vmatprep.subr.bf16.mxu0 %v11340_v12  ;;  %v7179_v45 = vor.u32 %v7175_v17, %v5811_v9  ;;  %v7211_v34 = vor.u32 %v7207_v42, %v5843_v40  ;;  %v13269_v40 = vld [vmem:[#allocation2 + $0x88] sm:$0xff]  ;;  %v5861_v54 = vrot.slane %v5859_v44, 7 }
 0x2fa   : > { %v13227_v31 = vsel %vm427_vm0, %v7171_v55, %v7175_v17  ;;  %v13243_v53 = vsel %vm427_vm0, %v7187_v26, %v7191_v25  ;;  %v5848_v17 = vor.u32 %v5846_v8, %v5845_v16 }
 0x2fb   : > { %10670 = vmatpush3.bf16.msra.mxu1 %v11338_v27  ;;  %v13236_v9 = vsel %vm427_vm0, %v7179_v45, %v7183_v1  ;;  %v7203_v27 = vor.u32 %v7199_v6, %v5835_v28  ;;  %v13263_v55 = vsel %vm427_vm0, %v7211_v34, %v7215_v48  ;;  %v13267_v1 = vsel %vm5741_vm2, %v13110_v35, %v5840_v57 }
 0x2fc   : > { %10718 = vmatpush3.bf16.msra.mxu0 %v11340_v12  ;;  %10751 = vmatprep.subr.bf16.mxu1 %v13199_v49  ;;  %v5862_v12 = vshll.u32 %v13183_v33, 16  ;;  %v7219_v45 = vor.u32 %v7215_v48, %v5851_v29  ;;  %v13273_v26 = vsel %vm5741_vm2, %v13155_v51, %v5848_v17  ;;  %v5870_v6 = vshll.u32 %v13269_v40, 16 }
 0x2fd   : > { %10592 = vmatmul.mubr.bf16.gmra.mrb[184].mxu1 %v13055_v50  ;;  %10799 = vmatprep.subr.bf16.mxu0 %v13206_v39  ;;  %v13260_v28 = vsel %vm427_vm0, %v7203_v27, %v7207_v42  ;;  %v5867_v35 = vshrl.u32 %v13269_v40, 16  ;;  %v5856_v51 = vor.u32 %v5854_v19, %v5853_v7  ;;  %v6474_v42 = vld [vmem:[#allocation2 + $0x18] sm:$0x80] }
 0x2fe   : > { %10640 = vmatmul.mubr.bf16.gmra.mrb[208].mxu0 %v13194_v23  ;;  %10595 = vmatprep.mubr.bf16.mxu1 %v13066_v46  ;;  %v7223_v25 = vrot.slane %v5862_v12, 1  ;;  %v7231_v61 = vrot.slane %v5870_v6, 1  ;;  %v5864_v27 = vor.u32 %v5862_v12, %v5861_v54 }
 0x2ff   : > { %10643 = vmatprep.mubr.bf16.mxu0 %v13220_v22  ;;  %v13290_v48 = vsel %vm5741_vm2, %v5845_v16, %v5856_v51  ;;  %v13292_v57 = vrot.slane %v5867_v35, 7  ;;  %v6127_v16 = vrot.slane %v5758_v37, 1 }
 0x300   : > { %v13278_v8 = vsel %vm427_vm0, %v7219_v45, %v7223_v25  ;;  %v7227_v29 = vor.u32 %v7223_v25, %v5859_v44  ;;  %v13294_v17 = vor.u32 %v7231_v61, %v5867_v35  ;;  %v13297_v44 = vsel %vm5741_vm2, %v5853_v7, %v5864_v27  ;;  %v13394_v27 = vld [vmem:[#allocation2 + $0x98] sm:$0xff] }
 0x301   : > { %v6509_v45 = vshrl.u32 %v6474_v42, 16  ;;  %v5872_v19 = vor.u32 %v5870_v6, %v13292_v57  ;;  %v6128_v7 = vsel %vm427_vm0, %v13014_v13, %v6127_v16  ;;  %v6131_v6 = vor.u32 %v6127_v16, %v5755_v30  ;;  %v11349_v30 = vld [vmem:[%s14002_s3 + $0x150] sm:$0xff]   ;;  %v11344_v13 = vld [vmem:[%s14002_s3 + $0x118] sm:$0xff]  }
 0x302   : > { %v13287_v34 = vsel %vm427_vm0, %v7227_v29, %v7231_v61  ;;  %v11357_v29 = vld [vmem:[%s14002_s3 + $0x180] sm:$0xff]  }
 0x303   : > { %v6511_v12 = vrot.slane %v6509_v45, 7  ;;  %v13307_v25 = vsel %vm5741_vm2, %v5861_v54, %v5872_v19  ;;  %v6136_v37 = vsel %vm427_vm0, %v6131_v6, %v13122_v36  ;;  %v11342_v54 = vld [vmem:[%s14002_s3 + $0x108] sm:$0xff]   ;;  %v11352_v36 = vld [vmem:[%s14002_s3 + $0x160] sm:$0xff]  }
 0x304   : > { %v11362_v61 = vld [vmem:[%s14002_s3 + $0x1c0] sm:$0xff]  }
 0x305   : > { %10596 = vmatmul.mubr.bf16.gmra.mrb[188].mxu1 %v13084_v5  ;;  %v6519_v35 = vsel %vm5741_vm2, %v6511_v12, %v12988_v56  ;;  %v11347_v56 = vld [vmem:[%s14002_s3 + $0x148] sm:$0xff]   ;;  %v6636_v12 = vshll.u32 %v13394_v27, 16 }
 0x306   : > { %10644 = vmatmul.mubr.bf16.gmra.mrb[212].mxu0 %v13267_v1  ;;  %10599 = vmatprep.mubr.bf16.mxu1 %v13112_v15 }
 0x307   : > { %10647 = vmatprep.mubr.bf16.mxu0 %v13273_v26 }
 0x30d   : > { %10600 = vmatmul.mubr.bf16.gmra.mrb[192].mxu1 %v13141_v18 }
 0x30e   : > { %10648 = vmatmul.mubr.bf16.gmra.mrb[216].mxu0 %v13290_v48  ;;  %10603 = vmatprep.mubr.bf16.mxu1 %v13183_v33 }
 0x30f   : > { %10651 = vmatprep.mubr.bf16.mxu0 %v13297_v44 }
 0x315   : > { %10604 = vmatmul.mubr.bf16.gmra.mrb[196].mxu1 %v13269_v40 }
 0x316   : > { %10652 = vmatmul.mubr.bf16.gmra.mrb[220].mxu0 %v13307_v25  ;;  %10671 = vmatprep.mubr.bf16.mxu1 %v6128_v7 }
 0x317   : > { %10719 = vmatprep.mubr.bf16.mxu0 %v6519_v35 }
 0x31d   : > { %10672 = vmatmul.mubr.bf16.vlgmr.msra.gmra.mrb[200].mxu1 %v6136_v37 }
 0x31e   : > { %10720 = vmatmul.mubr.bf16.vlgmr.msra.gmra.mrb[224].mxu0 %v13031_v3  ;;  %10752 = vmatpush3.bf16.msra.mxu1 %v13199_v49  ;;  %v11350_v3 = vld [vmem:[%s14002_s3 + $0x158] sm:$0xff]   ;;  %v11351_v49 = vld [vmem:[%s14002_s3 + $0x130] sm:$0xff]  }
 0x31f   : > { %10675 = vmatprep.mubr.bf16.mxu1 %v13166_v2  ;;  %10723 = vmatprep.mubr.bf16.mxu0 %v13038_v32  ;;  %v11345_v32 = vld [vmem:[%s14002_s3 + $0x120] sm:$0xff]  }
 0x320   : > { %10753 = vmatprep.subr.bf16.mxu1 %v11342_v54  ;;  %10800 = vmatpush3.bf16.msra.mxu0 %v13206_v39  ;;  %v11355_v39 = vld [vmem:[%s14002_s3 + $0x170] sm:$0xff]  }
 0x321   : > { %10801 = vmatprep.subr.bf16.mxu0 %v11347_v56 }
 0x322   : > { %10754 = vmatpush3.bf16.msra.mxu1 %v11342_v54  ;;  %v13518_v54 = vld [vmem:[#allocation2 + $0x40] sm:$0xff] }
 0x323   : > { %10755 = vmatprep.subr.bf16.mxu1 %v11343_v20 }
 0x324   : > { %10802 = vmatpush3.bf16.msra.mxu0 %v11347_v56 }
 0x325   : > { %10676 = vmatmul.mubr.bf16.gmra.mrb[204].mxu1 %v13169_v4  ;;  %10803 = vmatprep.subr.bf16.mxu0 %v11349_v30 }
 0x326   : > { %10724 = vmatmul.mubr.bf16.gmra.mrb[228].mxu0 %v13076_v14  ;;  %10679 = vmatprep.mubr.bf16.mxu1 %v13186_v10  ;;  %v11348_v14 = vld [vmem:[%s14002_s3 + $0x128] sm:$0xff]  }
 0x327   : > { %10727 = vmatprep.mubr.bf16.mxu0 %v13087_v11  ;;  %10756 = vmatpush3.bf16.msra.mxu1 %v11343_v20  ;;  %v11353_v11 = vld [vmem:[%s14002_s3 + $0x168] sm:$0xff]  }
 0x328   : > { %10757 = vmatprep.subr.bf16.mxu1 %v11344_v13  ;;  %10804 = vmatpush3.bf16.msra.mxu0 %v11349_v30 }
 0x329   : > { %10805 = vmatprep.subr.bf16.mxu0 %v11350_v3 }
 0x32b   : > { %10758 = vmatpush3.bf16.msra.mxu1 %v11344_v13 }
 0x32c   : > { %10759 = vmatprep.subr.bf16.mxu1 %v11345_v32  ;;  %10806 = vmatpush3.bf16.msra.mxu0 %v11350_v3  ;;  %v7537_v3 = vshrl.u32 %v13518_v54, 16 }
 0x32d   : > { %10680 = vmatmul.mubr.bf16.gmra.mrb[208].mxu1 %v13209_v60  ;;  %10807 = vmatprep.subr.bf16.mxu0 %v11352_v36 }
 0x32e   : > { %10728 = vmatmul.mubr.bf16.gmra.mrb[232].mxu0 %v13130_v47  ;;  %10683 = vmatprep.mubr.bf16.mxu1 %v13212_v63  ;;  %v11354_v47 = vld [vmem:[%s14002_s3 + $0x138] sm:$0xff]  }
 0x32f   : > { %10731 = vmatprep.mubr.bf16.mxu0 %v13148_v41  ;;  %10760 = vmatpush3.bf16.msra.mxu1 %v11345_v32  ;;  %v11356_v41 = vld [vmem:[%s14002_s3 + $0x178] sm:$0xff]  }
 0x330   : > { %10761 = vmatprep.subr.bf16.mxu1 %v11348_v14  ;;  %10808 = vmatpush3.bf16.msra.mxu0 %v11352_v36 }
 0x331   : > { %10809 = vmatprep.subr.bf16.mxu0 %v11353_v11 }
 0x333   : > { %10762 = vmatpush3.bf16.msra.mxu1 %v11348_v14 }
 0x334   : > { %10763 = vmatprep.subr.bf16.mxu1 %v11351_v49  ;;  %10810 = vmatpush3.bf16.msra.mxu0 %v11353_v11  ;;  %v13532_v11 = vld [vmem:[#allocation2 + $0x48] sm:$0xff] }
 0x335   : > { %10684 = vmatmul.mubr.bf16.gmra.mrb[212].mxu1 %v13227_v31  ;;  %10811 = vmatprep.subr.bf16.mxu0 %v11355_v39 }
 0x336   : > { %10732 = vmatmul.mubr.bf16.gmra.mrb[236].mxu0 %v13194_v23  ;;  %10687 = vmatprep.mubr.bf16.mxu1 %v13236_v9  ;;  %v13385_v23 = vld [vmem:[#allocation2 + $0x90] sm:$0xff] }
 0x337   : > { %10735 = vmatprep.mubr.bf16.mxu0 %v13220_v22  ;;  %10764 = vmatpush3.bf16.msra.mxu1 %v11351_v49  ;;  %v6625_v22 = vshrl.u32 %v13385_v23, 16  ;;  %v6628_v42 = vshll.u32 %v13385_v23, 16  ;;  %v7539_v49 = vrot.slane %v7537_v3, 7 }
 0x338   : > { %10765 = vmatprep.subr.bf16.mxu1 %v11354_v47  ;;  %10812 = vmatpush3.bf16.msra.mxu0 %v11355_v39  ;;  %v7540_v39 = vshll.u32 %v13518_v54, 16 }
 0x339   : > { %10813 = vmatprep.subr.bf16.mxu0 %v11356_v41  ;;  %v6627_v51 = vrot.slane %v6625_v22, 7 }
 0x33b   : > { %10766 = vmatpush3.bf16.msra.mxu1 %v11354_v47  ;;  %v13403_v45 = vor.u32 %v6628_v42, %v6627_v51  ;;  %v13537_v47 = vld [vmem:[#allocation2 + $0x50] sm:$0xff] }
 0x33c   : > { %10814 = vmatpush3.bf16.msra.mxu0 %v11356_v41  ;;  %10847 = vmatprep.subr.bf16.mxu1 %v11357_v29 }
 0x33d   : > { %10688 = vmatmul.mubr.bf16.gmra.mrb[216].mxu1 %v13243_v53  ;;  %10895 = vmatprep.subr.bf16.mxu0 %v11362_v61 }
 0x33e   : > { %10736 = vmatmul.mubr.bf16.gmra.mrb[240].mxu0 %v13267_v1  ;;  %10691 = vmatprep.mubr.bf16.mxu1 %v13251_v62  ;;  %v6099_v1 = vld [vmem:[#allocation2 + $0x90] sm:$0x1] }
 0x33f   : > { %10739 = vmatprep.mubr.bf16.mxu0 %v13273_v26  ;;  %v6633_v26 = vshrl.u32 %v13394_v27, 16  ;;  %v6245_v19 = vshll.u32 %v6099_v1, 16  ;;  %v7548_v1 = vshll.u32 %v13532_v11, 16 }
 0x341   : > { %v13407_v16 = vrot.slane %v6633_v26, 7 }
 0x343   : > { %v6638_v7 = vor.u32 %v6636_v12, %v13407_v16 }
 0x345   : > { %10692 = vmatmul.mubr.bf16.gmra.mrb[220].mxu1 %v13260_v28  ;;  %v13422_v6 = vsel %vm5741_vm2, %v6627_v51, %v6638_v7  ;;  %v13560_v7 = vld [vmem:[#allocation2 + $0x60] sm:$0xff] }
 0x346   : > { %10740 = vmatmul.mubr.bf16.gmra.mrb[244].mxu0 %v13290_v48  ;;  %10695 = vmatprep.mubr.bf16.mxu1 %v13263_v55  ;;  %v6631_v48 = vsel %vm5741_vm2, %v13292_v57, %v13403_v45  ;;  %v11358_v57 = vld [vmem:[%s14002_s3 + $0x188] sm:$0xff]  }
 0x347   : > { %10743 = vmatprep.mubr.bf16.mxu0 %v13297_v44  ;;  %v6247_v44 = vrot.slane %v6245_v19, 1  ;;  %v7556_v19 = vshll.u32 %v13537_v47, 16 }
 0x349   : > { %v6248_v35 = vsel %vm427_vm0, %v13294_v17, %v6247_v44  ;;  %v11374_v44 = vld [vmem:[%s14002_s3 + $0x208] sm:$0xff]  }
 0x34d   : > { %10696 = vmatmul.mubr.bf16.gmra.mrb[224].mxu1 %v13278_v8 }
 0x34e   : > { %10744 = vmatmul.mubr.bf16.gmra.mrb[248].mxu0 %v13307_v25  ;;  %10699 = vmatprep.mubr.bf16.mxu1 %v13287_v34  ;;  %v11363_v25 = vld [vmem:[%s14002_s3 + $0x1c8] sm:$0xff]  }
 0x34f   : > { %10747 = vmatprep.mubr.bf16.mxu0 %v6631_v48 }
 0x355   : > { %10700 = vmatmul.mubr.bf16.gmra.mrb[228].mxu1 %v6248_v35 }
 0x356   : > { %10748 = vmatmul.mubr.bf16.gmra.mrb[252].mxu0 %v13422_v6  ;;  %10767 = vmatprep.mubr.bf16.mxu1 %v12953_v21  ;;  %v11359_v21 = vld [vmem:[%s14002_s3 + $0x190] sm:$0xff]  }
 0x357   : > { %10815 = vmatprep.mubr.bf16.mxu0 %v13166_v2  ;;  %v11360_v2 = vld [vmem:[%s14002_s3 + $0x198] sm:$0xff]  }
 0x35d   : > { %10768 = vmatmul.mubr.bf16.vlgmr.msra.gmra.mrb[232].mxu1 %v12976_v58  ;;  %v11365_v58 = vld [vmem:[%s14002_s3 + $0x1d0] sm:$0xff]  }
 0x35e   : > { %10816 = vmatmul.mubr.bf16.vlgmr.msra.gmra.mrb[0].mxu0 %v13169_v4  ;;  %10848 = vmatpush3.bf16.msra.mxu1 %v11357_v29  ;;  %v11361_v4 = vld [vmem:[%s14002_s3 + $0x1a0] sm:$0xff]   ;;  %v7545_v29 = vshrl.u32 %v13532_v11, 16 }
 0x35f   : > { %10771 = vmatprep.mubr.bf16.mxu1 %v12978_v52  ;;  %10819 = vmatprep.mubr.bf16.mxu0 %v13186_v10  ;;  %v11366_v52 = vld [vmem:[%s14002_s3 + $0x1d8] sm:$0xff]   ;;  %v11369_v10 = vld [vmem:[%s14002_s3 + $0x1e8] sm:$0xff]  }
 0x360   : > { %10849 = vmatprep.subr.bf16.mxu1 %v11358_v57  ;;  %10896 = vmatpush3.bf16.msra.mxu0 %v11362_v61  ;;  %v7553_v61 = vshrl.u32 %v13537_v47, 16 }
 0x361   : > { %10897 = vmatprep.subr.bf16.mxu0 %v11363_v25 }
 0x362   : > { %10850 = vmatpush3.bf16.msra.mxu1 %v11358_v57 }
 0x363   : > { %10851 = vmatprep.subr.bf16.mxu1 %v11359_v21 }
 0x364   : > { %10898 = vmatpush3.bf16.msra.mxu0 %v11363_v25 }
 0x365   : > { %10772 = vmatmul.mubr.bf16.gmra.mrb[236].mxu1 %v13006_v43  ;;  %10899 = vmatprep.subr.bf16.mxu0 %v11365_v58  ;;  %v11368_v43 = vld [vmem:[%s14002_s3 + $0x1e0] sm:$0xff]  }
 0x366   : > { %10820 = vmatmul.mubr.bf16.gmra.mrb[4].mxu0 %v13209_v60  ;;  %10775 = vmatprep.mubr.bf16.mxu1 %v13009_v24  ;;  %v11364_v24 = vld [vmem:[%s14002_s3 + $0x1a8] sm:$0xff]   ;;  %v11367_v60 = vld [vmem:[%s14002_s3 + $0x1b0] sm:$0xff]  }
 0x367   : > { %10823 = vmatprep.mubr.bf16.mxu0 %v13212_v63  ;;  %10852 = vmatpush3.bf16.msra.mxu1 %v11359_v21  ;;  %v11372_v63 = vld [vmem:[%s14002_s3 + $0x1f8] sm:$0xff]   ;;  %v11375_v21 = vld [vmem:[%s14002_s3 + $0x210] sm:$0xff]  }
 0x368   : > { %10853 = vmatprep.subr.bf16.mxu1 %v11360_v2  ;;  %10900 = vmatpush3.bf16.msra.mxu0 %v11365_v58  ;;  %v7569_v58 = vshrl.u32 %v13560_v7, 16 }
 0x369   : > { %10901 = vmatprep.subr.bf16.mxu0 %v11366_v52 }
 0x36b   : > { %10854 = vmatpush3.bf16.msra.mxu1 %v11360_v2 }
 0x36c   : > { %10855 = vmatprep.subr.bf16.mxu1 %v11361_v4  ;;  %10902 = vmatpush3.bf16.msra.mxu0 %v11366_v52 }
 0x36d   : > { %10776 = vmatmul.mubr.bf16.gmra.mrb[240].mxu1 %v13035_v38  ;;  %10903 = vmatprep.subr.bf16.mxu0 %v11368_v43  ;;  %v11371_v38 = vld [vmem:[%s14002_s3 + $0x1f0] sm:$0xff]  }
 0x36e   : > { %10824 = vmatmul.mubr.bf16.gmra.mrb[8].mxu0 %v13227_v31  ;;  %10779 = vmatprep.mubr.bf16.mxu1 %v13046_v59  ;;  %v11370_v59 = vld [vmem:[%s14002_s3 + $0x1b8] sm:$0xff]   ;;  %v13488_v31 = vld [vmem:[%s14002_s3 + $0x200] sm:$0xff]  }
 0x36f   : > { %10827 = vmatprep.mubr.bf16.mxu0 %v13236_v9  ;;  %10856 = vmatpush3.bf16.msra.mxu1 %v11361_v4  ;;  %v7247_v9 = vrot.slane %v6636_v12, 1  ;;  %v13554_v12 = vld [vmem:[#allocation2 + $0x58] sm:$0xff] }
 0x370   : > { %10857 = vmatprep.subr.bf16.mxu1 %v11364_v24  ;;  %10904 = vmatpush3.bf16.msra.mxu0 %v11368_v43  ;;  %v7561_v57 = vshrl.u32 %v13554_v12, 16  ;;  %v7564_v4 = vshll.u32 %v13554_v12, 16 }
 0x371   : > { %10905 = vmatprep.subr.bf16.mxu0 %v11369_v10  ;;  %v7251_v56 = vor.u32 %v7247_v9, %v6633_v26  ;;  %v7555_v26 = vrot.slane %v7553_v61, 7 }
 0x372   : > { %v7563_v52 = vrot.slane %v7561_v57, 7 }
 0x373   : > { %10858 = vmatpush3.bf16.msra.mxu1 %v11364_v24  ;;  %v7558_v25 = vor.u32 %v7556_v19, %v7555_v26  ;;  %v7571_v24 = vrot.slane %v7569_v58, 7 }
 0x374   : > { %10859 = vmatprep.subr.bf16.mxu1 %v11367_v60  ;;  %10906 = vmatpush3.bf16.msra.mxu0 %v11369_v10  ;;  %v7572_v10 = vshll.u32 %v13560_v7, 16 }
 0x375   : > { %10780 = vmatmul.mubr.bf16.gmra.mrb[244].mxu1 %v13055_v50  ;;  %10907 = vmatprep.subr.bf16.mxu0 %v11371_v38  ;;  %v13496_v50 = vld [vmem:[#allocation2 + $0x30] sm:$0xff] }
 0x376   : > { %10828 = vmatmul.mubr.bf16.gmra.mrb[12].mxu0 %v13243_v53  ;;  %10783 = vmatprep.mubr.bf16.mxu1 %v13066_v46  ;;  %v7239_v46 = vrot.slane %v6628_v42, 1  ;;  %v7107_v53 = vld [vmem:[#allocation2 + $0xa0] sm:$0x1]  ;;  %v7547_v42 = vrot.slane %v7545_v29, 7 }
 0x377   : > { %10831 = vmatprep.mubr.bf16.mxu0 %v13251_v62  ;;  %10860 = vmatpush3.bf16.msra.mxu1 %v11367_v60  ;;  %v7482_v62 = vld [vmem:[#allocation2 + $0x28] sm:$0x80] }
 0x378   : > { %10861 = vmatprep.subr.bf16.mxu1 %v11370_v59  ;;  %10908 = vmatpush3.bf16.msra.mxu0 %v11371_v38  ;;  %v7550_v35 = vor.u32 %v7548_v1, %v7547_v42  ;;  %v7559_v43 = vsel %vm5741_vm2, %v7547_v42, %v7558_v25  ;;  %v13583_v60 = vld [vmem:[#allocation2 + $0x68] sm:$0xff]  ;;  %v11376_v38 = vld [vmem:[%s14002_s3 + $0x218] sm:$0xff]  }
 0x379   : > { %10909 = vmatprep.subr.bf16.mxu0 %v11372_v63 }
 0x37a   : > { %v7551_v2 = vsel %vm5741_vm2, %v7539_v49, %v7550_v35 }
 0x37b   : > { %10862 = vmatpush3.bf16.msra.mxu1 %v11370_v59  ;;  %v13588_v59 = vld [vmem:[#allocation2 + $0x70] sm:$0xff] }
 0x37c   : > { %10910 = vmatpush3.bf16.msra.mxu0 %v11372_v63  ;;  %10991 = vmatprep.subr.bf16.mxu1 %v13488_v31  ;;  %v7566_v63 = vor.u32 %v7564_v4, %v7563_v52 }
 0x37d   : > { %10784 = vmatmul.mubr.bf16.gmra.mrb[248].mxu1 %v13084_v5  ;;  %10943 = vmatprep.subr.bf16.mxu0 %v13488_v31  ;;  %v7521_v5 = vshrl.u32 %v13496_v50, 16 }
 0x37e   : > { %10832 = vmatmul.mubr.bf16.gmra.mrb[16].mxu0 %v13260_v28  ;;  %10787 = vmatprep.mubr.bf16.mxu1 %v13112_v15  ;;  %v7243_v15 = vor.u32 %v7239_v46, %v6625_v22  ;;  %v7253_v28 = vshll.u32 %v7107_v53, 16  ;;  %v7542_v22 = vor.u32 %v7540_v39, %v7539_v49  ;;  %v7567_v53 = vsel %vm5741_vm2, %v7555_v26, %v7566_v63  ;;  %v11379_v49 = vld [vmem:[%s14002_s3 + $0x230] sm:$0xff]   ;;  %v11380_v63 = vld [vmem:[%s14002_s3 + $0x238] sm:$0xff]  }
 0x37f   : > { %10835 = vmatprep.mubr.bf16.mxu0 %v13263_v55  ;;  %v7523_v55 = vrot.slane %v7521_v5, 7 }
 0x380   : > { %v7248_v37 = vsel %vm427_vm0, %v7243_v15, %v7247_v9  ;;  %v7255_v20 = vrot.slane %v7253_v28, 1  ;;  %v7585_v15 = vshrl.u32 %v13588_v59, 16  ;;  %v11377_v9 = vld [vmem:[%s14002_s3 + $0x220] sm:$0xff]  }
 0x382   : > { %v7256_v36 = vsel %vm427_vm0, %v7251_v56, %v7255_v20  ;;  %v13611_v56 = vld [vmem:[#allocation2 + $0x80] sm:$0xff]  ;;  %v11378_v20 = vld [vmem:[%s14002_s3 + $0x228] sm:$0xff]  }
 0x385   : > { %10788 = vmatmul.mubr.bf16.gmra.mrb[252].mxu1 %v13141_v18  ;;  %v7240_v18 = vsel %vm427_vm0, %v13294_v17, %v7239_v46  ;;  %v7574_v46 = vor.u32 %v7572_v10, %v7571_v24 }
 0x386   : > { %10836 = vmatmul.mubr.bf16.gmra.mrb[20].mxu0 %v13278_v8  ;;  %10791 = vmatprep.mubr.bf16.mxu1 %v13183_v33  ;;  %v7517_v33 = vshrl.u32 %v7482_v62, 16  ;;  %v7524_v8 = vshll.u32 %v13496_v50, 16 }
 0x387   : > { %10839 = vmatprep.mubr.bf16.mxu0 %v13287_v34  ;;  %v13514_v34 = vld [vmem:[#allocation2 + $0x38] sm:$0xff]  ;;  %v7575_v28 = vsel %vm5741_vm2, %v7563_v52, %v7574_v46 }
 0x388   : > { %v7529_v17 = vshrl.u32 %v13514_v34, 16  ;;  %v7519_v30 = vrot.slane %v7517_v33, 7  ;;  %v7526_v13 = vor.u32 %v7524_v8, %v7523_v55  ;;  %v7532_v32 = vshll.u32 %v13514_v34, 16 }
 0x389   : > { %v7587_v33 = vrot.slane %v7585_v15, 7 }
 0x38a   : > { %v7527_v14 = vsel %vm5741_vm2, %v7519_v30, %v7526_v13 }
 0x38d   : > { %10792 = vmatmul.mubr.bf16.gmra.mrb[0].mxu1 %v13269_v40  ;;  %v7531_v40 = vrot.slane %v7529_v17, 7 }
 0x38e   : > { %10840 = vmatmul.mubr.bf16.gmra.mrb[24].mxu0 %v7240_v18  ;;  %10795 = vmatprep.mubr.bf16.mxu1 %v13385_v23  ;;  %v7580_v18 = vshll.u32 %v13583_v60, 16 }
 0x38f   : > { %10843 = vmatprep.mubr.bf16.mxu0 %v7248_v37  ;;  %v7534_v41 = vor.u32 %v7532_v32, %v7531_v40  ;;  %v7543_v48 = vsel %vm5741_vm2, %v7531_v40, %v7542_v22  ;;  %v13609_v37 = vld [vmem:[#allocation2 + $0x78] sm:$0xff] }
 0x390   : > { %v7593_v13 = vshrl.u32 %v13609_v37, 16 }
 0x391   : > { %v7535_v51 = vsel %vm5741_vm2, %v7523_v55, %v7534_v41  ;;  %v7588_v55 = vshll.u32 %v13588_v59, 16 }
 0x393   : > { %v7590_v40 = vor.u32 %v7588_v55, %v7587_v33 }
 0x395   : > { %10796 = vmatmul.mubr.bf16.gmra.mrb[4].mxu1 %v13394_v27 }
 0x396   : > { %10844 = vmatmul.mubr.bf16.gmra.mrb[28].mxu0 %v7256_v36  ;;  %10863 = vmatprep.mubr.bf16.mxu1 %v7527_v14  ;;  %v7601_v36 = vshrl.u32 %v13611_v56, 16 }
 0x397   : > { %10911 = vmatprep.mubr.bf16.mxu0 %v13496_v50 }
 0x398   : > { %v7603_v52 = vrot.slane %v7601_v36, 7 }
 0x39d   : > { %10864 = vmatmul.mubr.bf16.vlgmr.msra.gmra.mrb[8].mxu1 %v7535_v51 }
 0x39e   : > { %10912 = vmatmul.mubr.bf16.vlgmr.msra.gmra.mrb[32].mxu0 %v13514_v34  ;;  %10999 = vmatpush3.bf16.msra.mxu1 %v13488_v31 }
 0x39f   : > { %10867 = vmatprep.mubr.bf16.mxu1 %v7543_v48  ;;  %10915 = vmatprep.mubr.bf16.mxu0 %v13518_v54  ;;  %v7595_v48 = vrot.slane %v7593_v13, 7 }
 0x3a0   : > { %10992 = vmatprep.subr.bf16.mxu1 %v11374_v44  ;;  %10944 = vmatpush3.bf16.msra.mxu0 %v13488_v31  ;;  %v7577_v31 = vshrl.u32 %v13583_v60, 16 }
 0x3a1   : > { %10945 = vmatprep.subr.bf16.mxu0 %v11374_v44 }
 0x3a2   : > { %11000 = vmatpush3.bf16.msra.mxu1 %v11374_v44  ;;  %v7579_v62 = vrot.slane %v7577_v31, 7 }
 0x3a3   : > { %10993 = vmatprep.subr.bf16.mxu1 %v11375_v21 }
 0x3a4   : > { %10946 = vmatpush3.bf16.msra.mxu0 %v11374_v44  ;;  %v7582_v30 = vor.u32 %v7580_v18, %v7579_v62  ;;  %v7596_v44 = vshll.u32 %v13609_v37, 16 }
 0x3a5   : > { %10868 = vmatmul.mubr.bf16.gmra.mrb[12].mxu1 %v7551_v2  ;;  %10947 = vmatprep.subr.bf16.mxu0 %v11375_v21  ;;  %v7591_v2 = vsel %vm5741_vm2, %v7579_v62, %v7590_v40 }
 0x3a6   : > { %10916 = vmatmul.mubr.bf16.gmra.mrb[36].mxu0 %v13532_v11  ;;  %10871 = vmatprep.mubr.bf16.mxu1 %v7559_v43  ;;  %v7583_v26 = vsel %vm5741_vm2, %v7571_v24, %v7582_v30  ;;  %v7604_v43 = vshll.u32 %v13611_v56, 16 }
 0x3a7   : > { %10919 = vmatprep.mubr.bf16.mxu0 %v13537_v47  ;;  %11001 = vmatpush3.bf16.msra.mxu1 %v11375_v21 }
 0x3a8   : > { %10994 = vmatprep.subr.bf16.mxu1 %v11376_v38  ;;  %10948 = vmatpush3.bf16.msra.mxu0 %v11375_v21  ;;  %v7606_v62 = vor.u32 %v7604_v43, %v7603_v52 }
 0x3a9   : > { %10949 = vmatprep.subr.bf16.mxu0 %v11376_v38 }
 0x3ab   : > { %11002 = vmatpush3.bf16.msra.mxu1 %v11376_v38 }
 0x3ac   : > { %10995 = vmatprep.subr.bf16.mxu1 %v11377_v9  ;;  %10950 = vmatpush3.bf16.msra.mxu0 %v11376_v38  ;;  %v13637_v38 = vld [vmem:[#allocation2 + $0x88] sm:$0xff] }
 0x3ad   : > { %10872 = vmatmul.mubr.bf16.gmra.mrb[16].mxu1 %v7567_v53  ;;  %10951 = vmatprep.subr.bf16.mxu0 %v11377_v9  ;;  %v7609_v53 = vshrl.u32 %v13637_v38, 16 }
 0x3ae   : > { %10920 = vmatmul.mubr.bf16.gmra.mrb[40].mxu0 %v13554_v12  ;;  %10875 = vmatprep.mubr.bf16.mxu1 %v7575_v28  ;;  %v8159_v12 = vrot.slane %v7548_v1, 1  ;;  %v8199_v1 = vrot.slane %v7588_v55, 1 }
 0x3af   : > { %10923 = vmatprep.mubr.bf16.mxu0 %v13560_v7  ;;  %11003 = vmatpush3.bf16.msra.mxu1 %v11377_v9 }
 0x3b0   : > { %v10577_v14 = vpop.f32.mrb[168].mxu1  ;;  %10996 = vmatprep.subr.bf16.mxu1 %v11378_v20  ;;  %10952 = vmatpush3.bf16.msra.mxu0 %v11377_v9  ;;  %v7598_v9 = vor.u32 %v7596_v44, %v7595_v48 }
 0x3b1   : > { %v10625_v41 = vpop.f32.mrb[192].mxu0  ;;  %v5630_v22 = vpop.f32.mrb[169].mxu1  ;;  %10953 = vmatprep.subr.bf16.mxu0 %v11378_v20 }
 0x3b2   : > { %v5972_v51 = vpop.f32.mrb[193].mxu0  ;;  %v10578_v42 = vpop.f32.mrb[170].mxu1  ;;  %v7599_v41 = vsel %vm5741_vm2, %v7587_v33, %v7598_v9 }
 0x3b3   : > { %v13631_v35 = vadd.f32 %v5972_v51, %v5630_v22  ;;  %v10626_v25 = vpop.f32.mrb[194].mxu0  ;;  %v5633_v21 = vpop.f32.mrb[171].mxu1  ;;  %11004 = vmatpush3.bf16.msra.mxu1 %v11378_v20  ;;  %v7611_v22 = vrot.slane %v7609_v53, 7  ;;  %v7612_v51 = vshll.u32 %v13637_v38, 16 }
 0x3b4   : > { %v5975_v24 = vpop.f32.mrb[195].mxu0  ;;  %10997 = vmatprep.subr.bf16.mxu1 %v11379_v49  ;;  %10954 = vmatpush3.bf16.msra.mxu0 %v11378_v20 }
 0x3b5   : > { %v13642_v46 = vadd.f32 %v5975_v24, %v5633_v21  ;;  %10876 = vmatmul.mubr.bf16.gmra.mrb[20].mxu1 %v7583_v26  ;;  %10955 = vmatprep.subr.bf16.mxu0 %v11379_v49  ;;  %v7607_v21 = vsel %vm5741_vm2, %v7595_v48, %v7606_v62  ;;  %v7614_v33 = vor.u32 %v7612_v51, %v7611_v22 }
 0x3b6   : > { %10924 = vmatmul.mubr.bf16.gmra.mrb[44].mxu0 %v13583_v60  ;;  %10879 = vmatprep.mubr.bf16.mxu1 %v7591_v2  ;;  %v13658_v2 = vld [vmem:[#allocation2 + $0xa0] sm:$0xff] }
 0x3b7   : > { %10927 = vmatprep.mubr.bf16.mxu0 %v13588_v59  ;;  %11005 = vmatpush3.bf16.msra.mxu1 %v11379_v49  ;;  %v14005_v9 = vshrl.u32 %v13658_v2, 16 }
 0x3b8   : > { %v10581_v28 = vpop.f32.mrb[172].mxu1  ;;  %10998 = vmatprep.subr.bf16.mxu1 %v11380_v63  ;;  %10956 = vmatpush3.bf16.msra.mxu0 %v11379_v49 }
 0x3b9   : > { %v10629_v20 = vpop.f32.mrb[196].mxu0  ;;  %v5644_v30 = vpop.f32.mrb[173].mxu1  ;;  %10957 = vmatprep.subr.bf16.mxu0 %v11380_v63 }
 0x3ba   : > { %v5986_v40 = vpop.f32.mrb[197].mxu0  ;;  %v10582_v14 = vpop.f32.mrb[174].mxu1 }
 0x3bb   : > { %v13655_v42 = vadd.f32 %v5986_v40, %v5644_v30  ;;  %v10630_v26 = vpop.f32.mrb[198].mxu0  ;;  %v5647_v25 = vpop.f32.mrb[175].mxu1  ;;  %11006 = vmatpush3.bf16.msra.mxu1 %v11380_v63 }
 0x3bc   : > { %v5989_v49 = vpop.f32.mrb[199].mxu0  ;;  %10958 = vmatpush3.bf16.msra.mxu0 %v11380_v63  ;;  %v7615_v63 = vsel %vm5741_vm2, %v7603_v52, %v7614_v33  ;;  %v7623_v26 = vsel %vm5741_vm2, %v7611_v22, %v13403_v45 }
 0x3bd   : > { %v13660_v24 = vadd.f32 %v5989_v49, %v5647_v25  ;;  %10880 = vmatmul.mubr.bf16.gmra.mrb[24].mxu1 %v7599_v41  ;;  %v7635_v25 = vrot.slane %v14005_v9, 7  ;;  %v13675_v49 = vld [vmem:[#allocation2 + $0xa8] sm:$0xff]  ;;  %v13693_v9 = vrot.slane %v7556_v19, 1  ;;  %v8175_v19 = vrot.slane %v7564_v4, 1 }
 0x3be   : > { %10928 = vmatmul.mubr.bf16.gmra.mrb[48].mxu0 %v13609_v37  ;;  %10883 = vmatprep.mubr.bf16.mxu1 %v7607_v21  ;;  %v7636_v21 = vshll.u32 %v13658_v2, 16  ;;  %v7641_v52 = vshrl.u32 %v13675_v49, 16 }
 0x3bf   : > { %10931 = vmatprep.mubr.bf16.mxu0 %v13611_v56 }
 0x3c0   : > { %v10585_v28 = vpop.f32.mrb[176].mxu1  ;;  %v7638_v45 = vor.u32 %v7636_v21, %v7635_v25 }
 0x3c1   : > { %v10633_v48 = vpop.f32.mrb[200].mxu0  ;;  %v5658_v62 = vpop.f32.mrb[177].mxu1 }
 0x3c2   : > { %v6000_v20 = vpop.f32.mrb[201].mxu0  ;;  %v10586_v30 = vpop.f32.mrb[178].mxu1 }
 0x3c3   : > { %v13668_v40 = vadd.f32 %v6000_v20, %v5658_v62  ;;  %v10634_v14 = vpop.f32.mrb[202].mxu0  ;;  %v5661_v41 = vpop.f32.mrb[179].mxu1 }
 0x3c4   : > { %v6003_v28 = vpop.f32.mrb[203].mxu0  ;;  %v7643_v14 = vrot.slane %v7641_v52, 7 }
 0x3c5   : > { %v13677_v48 = vadd.f32 %v6003_v28, %v5661_v41  ;;  %10884 = vmatmul.mubr.bf16.gmra.mrb[28].mxu1 %v7615_v63  ;;  %v7644_v63 = vshll.u32 %v13675_v49, 16 }
 0x3c6   : > { %10932 = vmatmul.mubr.bf16.gmra.mrb[52].mxu0 %v13637_v38  ;;  %10887 = vmatprep.mubr.bf16.mxu1 %v7623_v26 }
 0x3c7   : > { %10935 = vmatprep.mubr.bf16.mxu0 %v13385_v23  ;;  %v7639_v23 = vsel %vm5741_vm2, %v13407_v16, %v7638_v45  ;;  %v8171_v16 = vor.u32 %v13693_v9, %v7553_v61 }
 0x3c8   : > { %v10589_v22 = vpop.f32.mrb[180].mxu1 }
 0x3c9   : > { %v10637_v33 = vpop.f32.mrb[204].mxu0  ;;  %v5672_v62 = vpop.f32.mrb[181].mxu1 }
 0x3ca   : > { %v6014_v20 = vpop.f32.mrb[205].mxu0  ;;  %v10590_v30 = vpop.f32.mrb[182].mxu1  ;;  %v8138_v33 = vrot.slane %v7524_v8, 1 }
 0x3cb   : > { %v13687_v41 = vadd.f32 %v6014_v20, %v5672_v62  ;;  %v10638_v26 = vpop.f32.mrb[206].mxu0  ;;  %v5675_v28 = vpop.f32.mrb[183].mxu1  ;;  %v7646_v62 = vor.u32 %v7644_v63, %v7643_v14 }
 0x3cc   : > { %v6017_v22 = vpop.f32.mrb[207].mxu0  ;;  %v8139_v45 = vor.u32 %v8138_v33, %v7521_v5  ;;  %v8183_v5 = vrot.slane %v7572_v10, 1 }
 0x3cd   : > { %v13697_v30 = vadd.f32 %v6017_v22, %v5675_v28  ;;  %10888 = vmatmul.mubr.bf16.gmra.mrb[32].mxu1 %v13422_v6  ;;  %v7647_v28 = vsel %vm5741_vm2, %v7635_v25, %v7646_v62  ;;  %v8176_v22 = vsel %vm427_vm0, %v8171_v16, %v8175_v19  ;;  %v8151_v25 = vrot.slane %v7540_v39, 1 }
 0x3ce   : > { %10936 = vmatmul.mubr.bf16.gmra.mrb[56].mxu0 %v13394_v27  ;;  %10891 = vmatprep.mubr.bf16.mxu1 %v7639_v23  ;;  %v8143_v27 = vrot.slane %v7532_v32, 1  ;;  %v8179_v32 = vor.u32 %v8175_v19, %v7561_v57  ;;  %v8187_v62 = vor.u32 %v8183_v5, %v7569_v58  ;;  %v8191_v16 = vrot.slane %v7580_v18, 1 }
 0x3cf   : > { %10939 = vmatprep.mubr.bf16.mxu0 %v13658_v2 }
 0x3d0   : > { %v10593_v8 = vpop.f32.mrb[184].mxu1  ;;  %v8147_v33 = vor.u32 %v8143_v27, %v7529_v17  ;;  %v8184_v34 = vsel %vm427_vm0, %v8179_v32, %v8183_v5  ;;  %v8192_v18 = vsel %vm427_vm0, %v8187_v62, %v8191_v16 }
 0x3d1   : > { %v10641_v6 = vpop.f32.mrb[208].mxu0  ;;  %v5686_v20 = vpop.f32.mrb[185].mxu1  ;;  %v8144_v8 = vsel %vm427_vm0, %v8139_v45, %v8143_v27  ;;  %v8155_v45 = vor.u32 %v8151_v25, %v7537_v3 }
 0x3d2   : > { %v6028_v26 = vpop.f32.mrb[209].mxu0  ;;  %v10594_v14 = vpop.f32.mrb[186].mxu1  ;;  %v8152_v27 = vsel %vm427_vm0, %v8147_v33, %v8151_v25  ;;  %v8111_v33 = vld [vmem:[#allocation2 + $0x90] sm:$0xff] }
 0x3d3   : > { %v13714_v23 = vadd.f32 %v6028_v26, %v5686_v20  ;;  %v10642_v47 = vpop.f32.mrb[210].mxu0  ;;  %v5689_v61 = vpop.f32.mrb[187].mxu1  ;;  %v8160_v54 = vsel %vm427_vm0, %v8155_v45, %v8159_v12  ;;  %v8195_v26 = vor.u32 %v8191_v16, %v7577_v31  ;;  %v8163_v14 = vor.u32 %v8159_v12, %v7545_v29 }
 0x3d4   : > { %v6031_v4 = vpop.f32.mrb[211].mxu0  ;;  %v8207_v47 = vrot.slane %v7596_v44, 1  ;;  %v8215_v44 = vrot.slane %v7604_v43, 1  ;;  %v8233_v56 = vshrl.u32 %v8111_v33, 16 }
 0x3d5   : > { %v13718_v50 = vadd.f32 %v6031_v4, %v5689_v61  ;;  %10892 = vmatmul.mubr.bf16.gmra.mrb[36].mxu1 %v7647_v28  ;;  %v8203_v28 = vor.u32 %v8199_v1, %v7585_v15  ;;  %v8200_v5 = vsel %vm427_vm0, %v8195_v26, %v8199_v1  ;;  %v8168_v11 = vsel %vm427_vm0, %v8163_v14, %v13693_v9 }
 0x3d6   : > { %10940 = vmatmul.mubr.bf16.gmra.mrb[60].mxu0 %v13675_v49  ;;  %10967 = vmatprep.mubr.bf16.mxu1 %v8176_v22  ;;  %v8211_v25 = vor.u32 %v8207_v47, %v7593_v13  ;;  %v8219_v62 = vor.u32 %v8215_v44, %v7601_v36  ;;  %v8223_v9 = vrot.slane %v7612_v51, 1 }
 0x3d7   : > { %10959 = vmatprep.mubr.bf16.mxu0 %v8144_v8  ;;  %v8208_v29 = vsel %vm427_vm0, %v8203_v28, %v8207_v47 }
 0x3d8   : > { %v10597_v10 = vpop.f32.mrb[188].mxu1  ;;  %v8216_v43 = vsel %vm427_vm0, %v8211_v25, %v8215_v44  ;;  %v8115_v44 = vld [vmem:[#allocation2 + $0xb0] sm:$0x1] }
 0x3d9   : > { %v10645_v57 = vpop.f32.mrb[212].mxu0  ;;  %v5700_v19 = vpop.f32.mrb[189].mxu1  ;;  %v8112_v10 = vld [vmem:[#allocation2 + $0x98] sm:$0xff] }
 0x3da   : > { %v6042_v39 = vpop.f32.mrb[213].mxu0  ;;  %v10598_v6 = vpop.f32.mrb[190].mxu1  ;;  %v8229_v57 = vshll.u32 %v8111_v33, 16  ;;  %v8237_v36 = vshll.u32 %v8112_v10, 16 }
 0x3db   : > { %v13738_v17 = vadd.f32 %v6042_v39, %v5700_v19  ;;  %v10646_v7 = vpop.f32.mrb[214].mxu0  ;;  %v5703_v58 = vpop.f32.mrb[191].mxu1 }
 0x3dc   : > { %v6045_v20 = vpop.f32.mrb[215].mxu0  ;;  %v8231_v51 = vrot.slane %v8229_v57, 1 }
 0x3dd   : > { %v13743_v3 = vadd.f32 %v6045_v20, %v5703_v58  ;;  %10968 = vmatmul.mubr.bf16.vlgmr.msra.gmra.mrb[40].mxu1 %v8184_v34  ;;  %v8224_v34 = vsel %vm427_vm0, %v8219_v62, %v8223_v9  ;;  %v8239_v20 = vrot.slane %v8237_v36, 1 }
 0x3de   : > { %10960 = vmatmul.mubr.bf16.vlgmr.msra.gmra.mrb[64].mxu0 %v8152_v27  ;;  %10971 = vmatprep.mubr.bf16.mxu1 %v8192_v18  ;;  %v8227_v27 = vor.u32 %v8223_v9, %v7609_v53  ;;  %v8235_v18 = vor.u32 %v8233_v56, %v8231_v51 }
 0x3df   : > { %10963 = vmatprep.mubr.bf16.mxu0 %v8160_v54 }
 0x3e0   : > { %v10601_v61 = vpop.f32.mrb[192].mxu1 }
 0x3e1   : > { %v10649_v22 = vpop.f32.mrb[216].mxu0  ;;  %v5714_v4 = vpop.f32.mrb[193].mxu1  ;;  %v8232_v61 = vsel %vm427_vm0, %v8227_v27, %v8231_v51 }
 0x3e2   : > { %v6056_v8 = vpop.f32.mrb[217].mxu0  ;;  %v10602_v55 = vpop.f32.mrb[194].mxu1  ;;  %v8241_v22 = vshrl.u32 %v8112_v10, 16  ;;  %v8261_v10 = vshll.u32 %v8115_v44, 16 }
 0x3e3   : > { %v13756_v32 = vadd.f32 %v6056_v8, %v5714_v4  ;;  %v10650_v60 = vpop.f32.mrb[218].mxu0  ;;  %v5717_v31 = vpop.f32.mrb[195].mxu1  ;;  %v8240_v55 = vsel %vm427_vm0, %v8235_v18, %v8239_v20 }
 0x3e4   : > { %v6059_v59 = vpop.f32.mrb[219].mxu0  ;;  %v8247_v60 = vrot.slane %v7636_v21, 1 }
 0x3e5   : > { %v13761_v15 = vadd.f32 %v6059_v59, %v5717_v31  ;;  %10972 = vmatmul.mubr.bf16.gmra.mrb[44].mxu1 %v8200_v5  ;;  %v8255_v59 = vrot.slane %v7644_v63, 1 }
 0x3e6   : > { %10964 = vmatmul.mubr.bf16.gmra.mrb[68].mxu0 %v8168_v11  ;;  %10975 = vmatprep.mubr.bf16.mxu1 %v8208_v29  ;;  %v14006_v11 = vshrl.u32 %v13658_v2, 16 }
 0x3e8   : > { %v10605_v16 = vpop.f32.mrb[196].mxu1  ;;  %v8251_v29 = vor.u32 %v8247_v60, %v14006_v11 }
 0x3e9   : > { %v10653_v45 = vpop.f32.mrb[220].mxu0  ;;  %v5728_v12 = vpop.f32.mrb[197].mxu1 }
 0x3ea   : > { %v6070_v19 = vpop.f32.mrb[221].mxu0  ;;  %v10606_v39 = vpop.f32.mrb[198].mxu1  ;;  %v8256_v57 = vsel %vm427_vm0, %v8251_v29, %v8255_v59 }
 0x3eb   : > { %v13772_v6 = vadd.f32 %v6070_v19, %v5728_v12  ;;  %v10654_v37 = vpop.f32.mrb[222].mxu0  ;;  %v5731_v13 = vpop.f32.mrb[199].mxu1 }
 0x3ec   : > { %v6073_v7 = vpop.f32.mrb[223].mxu0 }
 0x3ed   : > { %v13775_v58 = vadd.f32 %v6073_v7, %v5731_v13  ;;  %10976 = vmatmul.mubr.bf16.gmra.mrb[48].mxu1 %v8216_v43  ;;  %v8263_v43 = vrot.slane %v8261_v10, 1 }
 0x3ee   : > { %10979 = vmatprep.mubr.bf16.mxu1 %v8224_v34 }
 0x3f0   : > { %v10673_v54 = vpop.f32.mrb[200].mxu1 }
 0x3f1   : > { %v6347_v1 = vpop.f32.mrb[201].mxu1  ;;  %v10721_v26 = vpop.f32.mrb[224].mxu0 }
 0x3f2   : > { %v6458_v14 = vadd.f32 %v6347_v1, %v13631_v35  ;;  %v10674_v28 = vpop.f32.mrb[202].mxu1  ;;  %v6738_v47 = vpop.f32.mrb[225].mxu0  ;;  %v8243_v35 = vor.u32 %v8241_v22, %v8239_v20 }
 0x3f3   : > { %v6350_v4 = vpop.f32.mrb[203].mxu1  ;;  %v10722_v8 = vpop.f32.mrb[226].mxu0 }
 0x3f4   : > { %v6459_v5 = vadd.f32 %v6350_v4, %v13642_v46  ;;  %v13783_v38 = vadd.f32 %v6738_v47, %v6458_v14  ;;  %v6741_v53 = vpop.f32.mrb[227].mxu0  ;;  %v8248_v21 = vsel %vm427_vm0, %v8243_v35, %v8247_v60 }
 0x3f5   : > { %10980 = vmatmul.mubr.bf16.gmra.mrb[52].mxu1 %v8232_v61 }
 0x3f6   : > { %v13787_v31 = vadd.f32 %v6741_v53, %v6459_v5  ;;  %10983 = vmatprep.mubr.bf16.mxu1 %v8240_v55 }
 0x3f8   : > { %v10677_v25 = vpop.f32.mrb[204].mxu1 }
 0x3f9   : > { %v6361_v46 = vpop.f32.mrb[205].mxu1  ;;  %v10725_v33 = vpop.f32.mrb[228].mxu0 }
 0x3fa   : > { %v6460_v62 = vadd.f32 %v6361_v46, %v13655_v42  ;;  %v10678_v9 = vpop.f32.mrb[206].mxu1  ;;  %v6752_v16 = vpop.f32.mrb[229].mxu0  ;;  %v8259_v42 = vor.u32 %v8255_v59, %v7641_v52 }
 0x3fb   : > { %v6364_v45 = vpop.f32.mrb[207].mxu1  ;;  %v10726_v12 = vpop.f32.mrb[230].mxu0 }
 0x3fc   : > { %v6461_v2 = vadd.f32 %v6364_v45, %v13660_v24  ;;  %v13797_v19 = vadd.f32 %v6752_v16, %v6460_v62  ;;  %v6755_v63 = vpop.f32.mrb[231].mxu0  ;;  %v8264_v24 = vsel %vm427_vm0, %v8259_v42, %v8263_v43 }
 0x3fd   : > { %10984 = vmatmul.mubr.bf16.gmra.mrb[56].mxu1 %v8248_v21 }
 0x3fe   : > { %v13799_v39 = vadd.f32 %v6755_v63, %v6461_v2  ;;  %10987 = vmatprep.mubr.bf16.mxu1 %v8256_v57 }
 0x400   : > { %v10681_v37 = vpop.f32.mrb[208].mxu1 }
 0x401   : > { %v6375_v13 = vpop.f32.mrb[209].mxu1  ;;  %v10729_v34 = vpop.f32.mrb[232].mxu0 }
 0x402   : > { %v6462_v56 = vadd.f32 %v6375_v13, %v13668_v40  ;;  %v10682_v36 = vpop.f32.mrb[210].mxu1  ;;  %v6766_v7 = vpop.f32.mrb[233].mxu0 }
 0x403   : > { %v6378_v51 = vpop.f32.mrb[211].mxu1  ;;  %v10730_v27 = vpop.f32.mrb[234].mxu0 }
 0x404   : > { %v6463_v18 = vadd.f32 %v6378_v51, %v13677_v48  ;;  %v13806_v20 = vadd.f32 %v6766_v7, %v6462_v56  ;;  %v6769_v54 = vpop.f32.mrb[235].mxu0 }
 0x405   : > { %10988 = vmatmul.mubr.bf16.gmra.mrb[60].mxu1 %v8264_v24 }
 0x406   : > { %v13808_v49 = vadd.f32 %v6769_v54, %v6463_v18 }
 0x408   : > { %v10685_v52 = vpop.f32.mrb[212].mxu1 }
 0x409   : > { %v6389_v1 = vpop.f32.mrb[213].mxu1  ;;  %v10733_v26 = vpop.f32.mrb[236].mxu0 }
 0x40a   : > { %v6464_v14 = vadd.f32 %v6389_v1, %v13687_v41  ;;  %v10686_v40 = vpop.f32.mrb[214].mxu1  ;;  %v6780_v28 = vpop.f32.mrb[237].mxu0 }
 0x40b   : > { %v6392_v47 = vpop.f32.mrb[215].mxu1  ;;  %v10734_v61 = vpop.f32.mrb[238].mxu0 }
 0x40c   : > { %v6465_v22 = vadd.f32 %v6392_v47, %v13697_v30  ;;  %v13812_v4 = vadd.f32 %v6780_v28, %v6464_v14  ;;  %v6783_v48 = vpop.f32.mrb[239].mxu0 }
 0x40e   : > { %v13814_v8 = vadd.f32 %v6783_v48, %v6465_v22 }
 0x410   : > { %v10689_v55 = vpop.f32.mrb[216].mxu1 }
 0x411   : > { %v6403_v5 = vpop.f32.mrb[217].mxu1  ;;  %v10737_v53 = vpop.f32.mrb[240].mxu0 }
 0x412   : > { %v6466_v60 = vadd.f32 %v6403_v5, %v13714_v23  ;;  %v10690_v35 = vpop.f32.mrb[218].mxu1  ;;  %v6794_v11 = vpop.f32.mrb[241].mxu0 }
 0x413   : > { %v6406_v29 = vpop.f32.mrb[219].mxu1  ;;  %v10738_v41 = vpop.f32.mrb[242].mxu0 }
 0x414   : > { %v6467_v59 = vadd.f32 %v6406_v29, %v13718_v50  ;;  %v13818_v44 = vadd.f32 %v6794_v11, %v6466_v60  ;;  %v6797_v25 = vpop.f32.mrb[243].mxu0 }
 0x416   : > { %v13820_v30 = vadd.f32 %v6797_v25, %v6467_v59 }
 0x418   : > { %v10693_v46 = vpop.f32.mrb[220].mxu1 }
 0x419   : > { %v6417_v33 = vpop.f32.mrb[221].mxu1  ;;  %v10741_v62 = vpop.f32.mrb[244].mxu0 }
 0x41a   : > { %v6468_v9 = vadd.f32 %v6417_v33, %v13738_v17  ;;  %v10694_v16 = vpop.f32.mrb[222].mxu1  ;;  %v6808_v21 = vpop.f32.mrb[245].mxu0 }
 0x41b   : > { %v6420_v10 = vpop.f32.mrb[223].mxu1  ;;  %v10742_v23 = vpop.f32.mrb[246].mxu0 }
 0x41c   : > { %v6469_v45 = vadd.f32 %v6420_v10, %v13743_v3  ;;  %v13824_v12 = vadd.f32 %v6808_v21, %v6468_v9  ;;  %v6811_v57 = vpop.f32.mrb[247].mxu0 }
 0x41e   : > { %v13826_v50 = vadd.f32 %v6811_v57, %v6469_v45 }
 0x420   : > { %v10697_v2 = vpop.f32.mrb[224].mxu1 }
 0x421   : > { %v6431_v63 = vpop.f32.mrb[225].mxu1  ;;  %v10745_v42 = vpop.f32.mrb[248].mxu0 }
 0x422   : > { %v6470_v43 = vadd.f32 %v6431_v63, %v13756_v32  ;;  %v10698_v37 = vpop.f32.mrb[226].mxu1  ;;  %v6822_v13 = vpop.f32.mrb[249].mxu0 }
 0x423   : > { %v6434_v34 = vpop.f32.mrb[227].mxu1  ;;  %v10746_v17 = vpop.f32.mrb[250].mxu0 }
 0x424   : > { %v6471_v56 = vadd.f32 %v6434_v34, %v13761_v15  ;;  %v13830_v36 = vadd.f32 %v6822_v13, %v6470_v43  ;;  %v6825_v7 = vpop.f32.mrb[251].mxu0 }
 0x426   : > { %v13832_v3 = vadd.f32 %v6825_v7, %v6471_v56 }
 0x428   : > { %v10701_v24 = vpop.f32.mrb[228].mxu1 }
 0x429   : > { %v6445_v51 = vpop.f32.mrb[229].mxu1  ;;  %v10749_v27 = vpop.f32.mrb[252].mxu0 }
 0x42a   : > { %v6472_v18 = vadd.f32 %v6445_v51, %v13772_v6  ;;  %v10702_v54 = vpop.f32.mrb[230].mxu1  ;;  %v6836_v52 = vpop.f32.mrb[253].mxu0 }
 0x42b   : > { %v6448_v1 = vpop.f32.mrb[231].mxu1  ;;  %v10750_v32 = vpop.f32.mrb[254].mxu0 }
 0x42c   : > { %v6473_v26 = vadd.f32 %v6448_v1, %v13775_v58  ;;  %v13836_v14 = vadd.f32 %v6836_v52, %v6472_v18  ;;  %v6839_v40 = vpop.f32.mrb[255].mxu0 }
 0x42e   : > { %v13838_v15 = vadd.f32 %v6839_v40, %v6473_v26 }
 0x430   : > { %v10769_v28 = vpop.f32.mrb[232].mxu1 }
 0x431   : > { %v6964_v47 = vpop.f32.mrb[233].mxu1  ;;  %v10817_v61 = vpop.f32.mrb[0].mxu0 }
 0x432   : > { %v7075_v22 = vadd.f32 %v6964_v47, %v13783_v38  ;;  %v10770_v48 = vpop.f32.mrb[234].mxu1  ;;  %v7355_v55 = vpop.f32.mrb[1].mxu0 }
 0x433   : > { %v6967_v5 = vpop.f32.mrb[235].mxu1  ;;  %v10818_v6 = vpop.f32.mrb[2].mxu0 }
 0x434   : > { %v7076_v53 = vadd.f32 %v6967_v5, %v13787_v31  ;;  %v13842_v60 = vadd.f32 %v7355_v55, %v7075_v22  ;;  %v7358_v35 = vpop.f32.mrb[3].mxu0 }
 0x436   : > { %v13844_v58 = vadd.f32 %v7358_v35, %v7076_v53 }
 0x438   : > { %v10773_v11 = vpop.f32.mrb[236].mxu1 }
 0x439   : > { %v6978_v29 = vpop.f32.mrb[237].mxu1  ;;  %v10821_v41 = vpop.f32.mrb[4].mxu0 }
 0x43a   : > { %v7077_v59 = vadd.f32 %v6978_v29, %v13797_v19  ;;  %v10774_v25 = vpop.f32.mrb[238].mxu1  ;;  %v7369_v46 = vpop.f32.mrb[5].mxu0 }
 0x43b   : > { %v6981_v33 = vpop.f32.mrb[239].mxu1  ;;  %v10822_v38 = vpop.f32.mrb[6].mxu0 }
 0x43c   : > { %v7078_v62 = vadd.f32 %v6981_v33, %v13799_v39  ;;  %v13848_v9 = vadd.f32 %v7369_v46, %v7077_v59  ;;  %v7372_v16 = vpop.f32.mrb[7].mxu0 }
 0x43e   : > { %v13850_v31 = vadd.f32 %v7372_v16, %v7078_v62 }
 0x440   : > { %v10777_v21 = vpop.f32.mrb[240].mxu1 }
 0x441   : > { %v6992_v10 = vpop.f32.mrb[241].mxu1  ;;  %v10825_v23 = vpop.f32.mrb[8].mxu0 }
 0x442   : > { %v7079_v45 = vadd.f32 %v6992_v10, %v13806_v20  ;;  %v10778_v57 = vpop.f32.mrb[242].mxu1  ;;  %v7383_v2 = vpop.f32.mrb[9].mxu0 }
 0x443   : > { %v6995_v63 = vpop.f32.mrb[243].mxu1  ;;  %v10826_v19 = vpop.f32.mrb[10].mxu0 }
 0x444   : > { %v7080_v42 = vadd.f32 %v6995_v63, %v13808_v49  ;;  %v13854_v43 = vadd.f32 %v7383_v2, %v7079_v45  ;;  %v7386_v37 = vpop.f32.mrb[11].mxu0 }
 0x446   : > { %v13856_v39 = vadd.f32 %v7386_v37, %v7080_v42 }
 0x448   : > { %v10781_v13 = vpop.f32.mrb[244].mxu1 }
 0x449   : > { %v7006_v34 = vpop.f32.mrb[245].mxu1  ;;  %v10829_v17 = vpop.f32.mrb[12].mxu0 }
 0x44a   : > { %v7081_v56 = vadd.f32 %v7006_v34, %v13812_v4  ;;  %v10782_v7 = vpop.f32.mrb[246].mxu1  ;;  %v7397_v24 = vpop.f32.mrb[13].mxu0 }
 0x44b   : > { %v7009_v51 = vpop.f32.mrb[247].mxu1  ;;  %v10830_v20 = vpop.f32.mrb[14].mxu0 }
 0x44c   : > { %v7082_v27 = vadd.f32 %v7009_v51, %v13814_v8  ;;  %v13860_v18 = vadd.f32 %v7397_v24, %v7081_v56  ;;  %v7400_v54 = vpop.f32.mrb[15].mxu0 }
 0x44e   : > { %v13862_v49 = vadd.f32 %v7400_v54, %v7082_v27 }
 0x450   : > { %v10785_v52 = vpop.f32.mrb[248].mxu1 }
 0x451   : > { %v7020_v1 = vpop.f32.mrb[249].mxu1  ;;  %v10833_v32 = vpop.f32.mrb[16].mxu0 }
 0x452   : > { %v7083_v26 = vadd.f32 %v7020_v1, %v13818_v44  ;;  %v10786_v40 = vpop.f32.mrb[250].mxu1  ;;  %v7411_v28 = vpop.f32.mrb[17].mxu0 }
 0x453   : > { %v7023_v47 = vpop.f32.mrb[251].mxu1  ;;  %v10834_v4 = vpop.f32.mrb[18].mxu0 }
 0x454   : > { %v7084_v61 = vadd.f32 %v7023_v47, %v13820_v30  ;;  %v13866_v22 = vadd.f32 %v7411_v28, %v7083_v26  ;;  %v7414_v48 = vpop.f32.mrb[19].mxu0 }
 0x456   : > { %v13868_v8 = vadd.f32 %v7414_v48, %v7084_v61 }
 0x458   : > { %v10789_v55 = vpop.f32.mrb[252].mxu1 }
 0x459   : > { %v7034_v5 = vpop.f32.mrb[253].mxu1  ;;  %v10837_v6 = vpop.f32.mrb[20].mxu0 }
 0x45a   : > { %v7085_v53 = vadd.f32 %v7034_v5, %v13824_v12  ;;  %v10790_v35 = vpop.f32.mrb[254].mxu1  ;;  %v7425_v11 = vpop.f32.mrb[21].mxu0 }
 0x45b   : > { %v7037_v29 = vpop.f32.mrb[255].mxu1  ;;  %v10838_v44 = vpop.f32.mrb[22].mxu0 }
 0x45c   : > { %v7086_v41 = vadd.f32 %v7037_v29, %v13826_v50  ;;  %v13872_v59 = vadd.f32 %v7425_v11, %v7085_v53  ;;  %v7428_v25 = vpop.f32.mrb[23].mxu0 }
 0x45e   : > { %v13874_v30 = vadd.f32 %v7428_v25, %v7086_v41 }
 0x460   : > { %v10793_v46 = vpop.f32.mrb[0].mxu1 }
 0x461   : > { %v7048_v33 = vpop.f32.mrb[1].mxu1  ;;  %v10841_v38 = vpop.f32.mrb[24].mxu0 }
 0x462   : > { %v7087_v62 = vadd.f32 %v7048_v33, %v13830_v36  ;;  %v10794_v16 = vpop.f32.mrb[2].mxu1  ;;  %v7439_v21 = vpop.f32.mrb[25].mxu0 }
 0x463   : > { %v7051_v10 = vpop.f32.mrb[3].mxu1  ;;  %v10842_v12 = vpop.f32.mrb[26].mxu0 }
 0x464   : > { %v7088_v23 = vadd.f32 %v7051_v10, %v13832_v3  ;;  %v13878_v45 = vadd.f32 %v7439_v21, %v7087_v62  ;;  %v7442_v57 = vpop.f32.mrb[27].mxu0 }
 0x466   : > { %v13880_v50 = vadd.f32 %v7442_v57, %v7088_v23 }
 0x468   : > { %v10797_v2 = vpop.f32.mrb[4].mxu1 }
 0x469   : > { %v7062_v63 = vpop.f32.mrb[5].mxu1  ;;  %v10845_v19 = vpop.f32.mrb[28].mxu0 }
 0x46a   : > { %v7089_v42 = vadd.f32 %v7062_v63, %v13836_v14  ;;  %v10798_v37 = vpop.f32.mrb[6].mxu1  ;;  %v7453_v13 = vpop.f32.mrb[29].mxu0 }
 0x46b   : > { %v7065_v34 = vpop.f32.mrb[7].mxu1  ;;  %v10846_v36 = vpop.f32.mrb[30].mxu0 }
 0x46c   : > { %v7090_v17 = vadd.f32 %v7065_v34, %v13838_v15  ;;  %v13884_v56 = vadd.f32 %v7453_v13, %v7089_v42  ;;  %v7456_v7 = vpop.f32.mrb[31].mxu0 }
 0x46e   : > { %v13886_v3 = vadd.f32 %v7456_v7, %v7090_v17 }
 0x470   : > { %v10865_v24 = vpop.f32.mrb[8].mxu1 }
 0x471   : > { %v7746_v51 = vpop.f32.mrb[9].mxu1  ;;  %v10913_v20 = vpop.f32.mrb[32].mxu0 }
 0x472   : > { %v7857_v27 = vadd.f32 %v7746_v51, %v13842_v60  ;;  %v10866_v54 = vpop.f32.mrb[10].mxu1  ;;  %v7972_v52 = vpop.f32.mrb[33].mxu0 }
 0x473   : > { %v7749_v1 = vpop.f32.mrb[11].mxu1  ;;  %v10914_v14 = vpop.f32.mrb[34].mxu0 }
 0x474   : > { %v7858_v32 = vadd.f32 %v7749_v1, %v13844_v58  ;;  %v13890_v26 = vadd.f32 %v7972_v52, %v7857_v27  ;;  %v7975_v40 = vpop.f32.mrb[35].mxu0 }
 0x476   : > { %v13892_v15 = vadd.f32 %v7975_v40, %v7858_v32 }
 0x478   : > { %v10869_v28 = vpop.f32.mrb[12].mxu1 }
 0x479   : > { %v7760_v47 = vpop.f32.mrb[13].mxu1  ;;  %v10917_v4 = vpop.f32.mrb[36].mxu0 }
 0x47a   : > { %v7859_v61 = vadd.f32 %v7760_v47, %v13848_v9  ;;  %v10870_v48 = vpop.f32.mrb[14].mxu1  ;;  %v7986_v55 = vpop.f32.mrb[37].mxu0 }
 0x47b   : > { %v7763_v5 = vpop.f32.mrb[15].mxu1  ;;  %v10918_v60 = vpop.f32.mrb[38].mxu0 }
 0x47c   : > { %v7860_v6 = vadd.f32 %v7763_v5, %v13850_v31  ;;  %v13896_v53 = vadd.f32 %v7986_v55, %v7859_v61  ;;  %v7989_v35 = vpop.f32.mrb[39].mxu0 }
 0x47e   : > { %v13898_v58 = vadd.f32 %v7989_v35, %v7860_v6 }
 0x480   : > { %v10873_v11 = vpop.f32.mrb[16].mxu1 }
 0x481   : > { %v7774_v29 = vpop.f32.mrb[17].mxu1  ;;  %v10921_v44 = vpop.f32.mrb[40].mxu0 }
 0x482   : > { %v7861_v41 = vadd.f32 %v7774_v29, %v13854_v43  ;;  %v10874_v25 = vpop.f32.mrb[18].mxu1  ;;  %v8000_v46 = vpop.f32.mrb[41].mxu0 }
 0x483   : > { %v7777_v33 = vpop.f32.mrb[19].mxu1  ;;  %v10922_v9 = vpop.f32.mrb[42].mxu0 }
 0x484   : > { %v7862_v38 = vadd.f32 %v7777_v33, %v13856_v39  ;;  %v13902_v62 = vadd.f32 %v8000_v46, %v7861_v41  ;;  %v8003_v16 = vpop.f32.mrb[43].mxu0 }
 0x486   : > { %v13904_v31 = vadd.f32 %v8003_v16, %v7862_v38 }
 0x488   : > { %v10877_v21 = vpop.f32.mrb[20].mxu1 }
 0x489   : > { %v7788_v10 = vpop.f32.mrb[21].mxu1  ;;  %v10925_v12 = vpop.f32.mrb[44].mxu0 }
 0x48a   : > { %v7863_v23 = vadd.f32 %v7788_v10, %v13860_v18  ;;  %v10878_v57 = vpop.f32.mrb[22].mxu1  ;;  %v8014_v2 = vpop.f32.mrb[45].mxu0 }
 0x48b   : > { %v7791_v63 = vpop.f32.mrb[23].mxu1  ;;  %v10926_v43 = vpop.f32.mrb[46].mxu0 }
 0x48c   : > { %v7864_v19 = vadd.f32 %v7791_v63, %v13862_v49  ;;  %v13908_v42 = vadd.f32 %v8014_v2, %v7863_v23  ;;  %v8017_v37 = vpop.f32.mrb[47].mxu0 }
 0x48e   : > { %v13910_v39 = vadd.f32 %v8017_v37, %v7864_v19 }
 0x490   : > { %v10881_v13 = vpop.f32.mrb[24].mxu1 }
 0x491   : > { %v7802_v34 = vpop.f32.mrb[25].mxu1  ;;  %v10929_v36 = vpop.f32.mrb[48].mxu0 }
 0x492   : > { %v7865_v17 = vadd.f32 %v7802_v34, %v13866_v22  ;;  %v10882_v7 = vpop.f32.mrb[26].mxu1  ;;  %v8028_v24 = vpop.f32.mrb[49].mxu0 }
 0x493   : > { %v7805_v51 = vpop.f32.mrb[27].mxu1  ;;  %v10930_v18 = vpop.f32.mrb[50].mxu0 }
 0x494   : > { %v7866_v20 = vadd.f32 %v7805_v51, %v13868_v8  ;;  %v13914_v27 = vadd.f32 %v8028_v24, %v7865_v17  ;;  %v8031_v54 = vpop.f32.mrb[51].mxu0 }
 0x496   : > { %v13916_v49 = vadd.f32 %v8031_v54, %v7866_v20 }
 0x498   : > { %v10885_v52 = vpop.f32.mrb[28].mxu1 }
 0x499   : > { %v7816_v1 = vpop.f32.mrb[29].mxu1  ;;  %v10933_v14 = vpop.f32.mrb[52].mxu0 }
 0x49a   : > { %v7867_v32 = vadd.f32 %v7816_v1, %v13872_v59  ;;  %v10886_v40 = vpop.f32.mrb[30].mxu1  ;;  %v8042_v28 = vpop.f32.mrb[53].mxu0 }
 0x49b   : > { %v7819_v47 = vpop.f32.mrb[31].mxu1  ;;  %v10934_v22 = vpop.f32.mrb[54].mxu0 }
 0x49c   : > { %v7868_v4 = vadd.f32 %v7819_v47, %v13874_v30  ;;  %v13920_v61 = vadd.f32 %v8042_v28, %v7867_v32  ;;  %v8045_v48 = vpop.f32.mrb[55].mxu0 }
 0x49e   : > { %v13922_v8 = vadd.f32 %v8045_v48, %v7868_v4 }
 0x4a0   : > { %v10889_v55 = vpop.f32.mrb[32].mxu1 }
 0x4a1   : > { %v7830_v5 = vpop.f32.mrb[33].mxu1  ;;  %v10937_v60 = vpop.f32.mrb[56].mxu0 }
 0x4a2   : > { %v7869_v6 = vadd.f32 %v7830_v5, %v13878_v45  ;;  %v10890_v35 = vpop.f32.mrb[34].mxu1  ;;  %v8056_v11 = vpop.f32.mrb[57].mxu0 }
 0x4a3   : > { %v7833_v29 = vpop.f32.mrb[35].mxu1  ;;  %v10938_v59 = vpop.f32.mrb[58].mxu0 }
 0x4a4   : > { %v7870_v44 = vadd.f32 %v7833_v29, %v13880_v50  ;;  %v13926_v41 = vadd.f32 %v8056_v11, %v7869_v6  ;;  %v8059_v25 = vpop.f32.mrb[59].mxu0 }
 0x4a6   : > { %v13928_v30 = vadd.f32 %v8059_v25, %v7870_v44 }
 0x4a8   : > { %v10893_v46 = vpop.f32.mrb[36].mxu1 }
 0x4a9   : > { %v7844_v33 = vpop.f32.mrb[37].mxu1  ;;  %v10941_v9 = vpop.f32.mrb[60].mxu0 }
 0x4aa   : > { %v7871_v38 = vadd.f32 %v7844_v33, %v13884_v56  ;;  %v10894_v16 = vpop.f32.mrb[38].mxu1  ;;  %v8070_v21 = vpop.f32.mrb[61].mxu0 }
 0x4ab   : > { %v7847_v10 = vpop.f32.mrb[39].mxu1  ;;  %v10942_v45 = vpop.f32.mrb[62].mxu0 }
 0x4ac   : > { %v7872_v12 = vadd.f32 %v7847_v10, %v13886_v3  ;;  %v13932_v23 = vadd.f32 %v8070_v21, %v7871_v38  ;;  %v8073_v57 = vpop.f32.mrb[63].mxu0 }
 0x4ae   : > { %v13934_v50 = vadd.f32 %v8073_v57, %v7872_v12 }
 0x4b0   : > { %v10969_v2 = vpop.f32.mrb[40].mxu1 }
 0x4b1   : > { %v10961_v63 = vpop.f32.mrb[64].mxu0  ;;  %v8391_v43 = vpop.f32.mrb[41].mxu1 }
 0x4b2   : > { %v8363_v19 = vpop.f32.mrb[65].mxu0  ;;  %v8478_v37 = vadd.f32 %v8391_v43, %v13902_v62  ;;  %v10970_v13 = vpop.f32.mrb[42].mxu1 }
 0x4b3   : > { %v8474_v56 = vadd.f32 %v8363_v19, %v13890_v26  ;;  %v10962_v34 = vpop.f32.mrb[66].mxu0  ;;  %v8394_v36 = vpop.f32.mrb[43].mxu1 }
 0x4b4   : > { %v8500_v3 = vadd.f32 %v11490_v0, %v8478_v37  ;;  %v8366_v17 = vpop.f32.mrb[67].mxu0  ;;  %v8479_v7 = vadd.f32 %v8394_v36, %v13904_v31 }
 0x4b5   : > { %v8496_v24 = vadd.f32 %v11490_v0, %v8474_v56  ;;  %v8475_v51 = vadd.f32 %v8366_v17, %v13892_v15 }
 0x4b6   : > { %v8516_v18 = vmax.f32 %v8500_v3, 0.0  ;;  %v8501_v62 = vadd.f32 %v11490_v0, %v8479_v7 }
 0x4b7   : > { %v8512_v20 = vmax.f32 %v8496_v24, 0.0  ;;  %v8497_v54 = vadd.f32 %v11490_v0, %v8475_v51 }
 0x4b8   : > { %8532 = vst [vmem:[%s11547_s26 + $0x20] sm:$0xff] %v8516_v18  ;;  %v8517_v26 = vmax.f32 %v8501_v62, 0.0  ;;  %v10973_v52 = vpop.f32.mrb[44].mxu1 }
 0x4b9   : > { %8528 = vst [vmem:[%s11547_s26] sm:$0xff] %v8512_v20  ;;  %v8513_v1 = vmax.f32 %v8497_v54, 0.0  ;;  %v10965_v14 = vpop.f32.mrb[68].mxu0  ;;  %v8405_v32 = vpop.f32.mrb[45].mxu1 }
 0x4ba   : > { %8533 = vst [vmem:[%s11547_s26 + $0x28] sm:$0xff] %v8517_v26  ;;  %v8377_v31 = vpop.f32.mrb[69].mxu0  ;;  %v8480_v40 = vadd.f32 %v8405_v32, %v13908_v42  ;;  %v10974_v15 = vpop.f32.mrb[46].mxu1 }
 0x4bb   : > { %8529 = vst [vmem:[%s11547_s26 + $0x8] sm:$0xff] %v8513_v1  ;;  %v8476_v28 = vadd.f32 %v8377_v31, %v13896_v53  ;;  %v10966_v47 = vpop.f32.mrb[70].mxu0  ;;  %v8408_v22 = vpop.f32.mrb[47].mxu1 }
 0x4bc   : > { %v8502_v4 = vadd.f32 %v11490_v0, %v8480_v40  ;;  %v8380_v48 = vpop.f32.mrb[71].mxu0  ;;  %v8481_v55 = vadd.f32 %v8408_v22, %v13910_v39 }
 0x4bd   : > { %v8498_v5 = vadd.f32 %v11490_v0, %v8476_v28  ;;  %v8477_v60 = vadd.f32 %v8380_v48, %v13898_v58 }
 0x4be   : > { %v8518_v6 = vmax.f32 %v8502_v4, 0.0  ;;  %v8503_v42 = vadd.f32 %v11490_v0, %v8481_v55 }
 0x4bf   : > { %v8514_v35 = vmax.f32 %v8498_v5, 0.0  ;;  %v8499_v11 = vadd.f32 %v11490_v0, %v8477_v60 }
 0x4c0   : > { %8534 = vst [vmem:[%s11547_s26 + $0x30] sm:$0xff] %v8518_v6  ;;  %v8519_v53 = vmax.f32 %v8503_v42, 0.0  ;;  %v10977_v29 = vpop.f32.mrb[48].mxu1 }
 0x4c1   : > { %8530 = vst [vmem:[%s11547_s26 + $0x10] sm:$0xff] %v8514_v35  ;;  %v8515_v59 = vmax.f32 %v8499_v11, 0.0  ;;  %v8419_v44 = vpop.f32.mrb[49].mxu1 }
 0x4c2   : > { %8535 = vst [vmem:[%s11547_s26 + $0x38] sm:$0xff] %v8519_v53  ;;  %v8482_v39 = vadd.f32 %v8419_v44, %v13914_v27  ;;  %v10978_v25 = vpop.f32.mrb[50].mxu1 }
 0x4c3   : > { %8531 = vst [vmem:[%s11547_s26 + $0x18] sm:$0xff] %v8515_v59  ;;  %v8422_v58 = vpop.f32.mrb[51].mxu1 }
 0x4c4   : > { %v8504_v46 = vadd.f32 %v11490_v0, %v8482_v39  ;;  %v8483_v33 = vadd.f32 %v8422_v58, %v13916_v49 }
 0x4c6   : > { %v8520_v9 = vmax.f32 %v8504_v46, 0.0  ;;  %v8505_v38 = vadd.f32 %v11490_v0, %v8483_v33 }
 0x4c8   : > { %8536 = vst [vmem:[%s11547_s26 + $0x40] sm:$0xff] %v8520_v9  ;;  %v8521_v16 = vmax.f32 %v8505_v38, 0.0  ;;  %v10981_v21 = vpop.f32.mrb[52].mxu1 }
 0x4c9   : > { %v8433_v10 = vpop.f32.mrb[53].mxu1 }
 0x4ca   : > { %8537 = vst [vmem:[%s11547_s26 + $0x48] sm:$0xff] %v8521_v16  ;;  %v8484_v45 = vadd.f32 %v8433_v10, %v13920_v61  ;;  %v10982_v27 = vpop.f32.mrb[54].mxu1 }
 0x4cb   : > { %v8436_v12 = vpop.f32.mrb[55].mxu1 }
 0x4cc   : > { %v8506_v57 = vadd.f32 %v11490_v0, %v8484_v45  ;;  %v8485_v2 = vadd.f32 %v8436_v12, %v13922_v8 }
 0x4ce   : > { %v8522_v63 = vmax.f32 %v8506_v57, 0.0  ;;  %v8507_v49 = vadd.f32 %v11490_v0, %v8485_v2 }
 0x4d0   : > { %8538 = vst [vmem:[%s11547_s26 + $0x50] sm:$0xff] %v8522_v63  ;;  %v8523_v43 = vmax.f32 %v8507_v49, 0.0  ;;  %v10985_v19 = vpop.f32.mrb[56].mxu1 }
 0x4d1   : > { %v8447_v37 = vpop.f32.mrb[57].mxu1 }
 0x4d2   : > { %8539 = vst [vmem:[%s11547_s26 + $0x58] sm:$0xff] %v8523_v43  ;;  %v8486_v13 = vadd.f32 %v8447_v37, %v13926_v41  ;;  %v10986_v56 = vpop.f32.mrb[58].mxu1 }
 0x4d3   : > { %v8450_v61 = vpop.f32.mrb[59].mxu1 }
 0x4d4   : > { %v8508_v34 = vadd.f32 %v11490_v0, %v8486_v13  ;;  %v8487_v36 = vadd.f32 %v8450_v61, %v13928_v30 }
 0x4d6   : > { %v8524_v3 = vmax.f32 %v8508_v34, 0.0  ;;  %v8509_v8 = vadd.f32 %v11490_v0, %v8487_v36 }
 0x4d8   : > { %8540 = vst [vmem:[%s11547_s26 + $0x60] sm:$0xff] %v8524_v3  ;;  %v8525_v17 = vmax.f32 %v8509_v8, 0.0  ;;  %v10989_v7 = vpop.f32.mrb[60].mxu1 }
 0x4d9   : > { %v8461_v24 = vpop.f32.mrb[61].mxu1 }
 0x4da   : > { %8541 = vst [vmem:[%s11547_s26 + $0x68] sm:$0xff] %v8525_v17  ;;  %v8488_v51 = vadd.f32 %v8461_v24, %v13932_v23  ;;  %v10990_v18 = vpop.f32.mrb[62].mxu1 }
 0x4db   : > { %v8464_v41 = vpop.f32.mrb[63].mxu1 }
 0x4dc   : > { %v8510_v62 = vadd.f32 %v11490_v0, %v8488_v51  ;;  %v8489_v20 = vadd.f32 %v8464_v41, %v13934_v50 }
 0x4de   : > { %v8526_v54 = vmax.f32 %v8510_v62, 0.0  ;;  %v8511_v30 = vadd.f32 %v11490_v0, %v8489_v20 }
 0x4e0   : > { %8542 = vst [vmem:[%s11547_s26 + $0x70] sm:$0xff] %v8526_v54  ;;  %v8527_v26 = vmax.f32 %v8511_v30, 0.0 }
 0x4e2   : > { %8543 = vst [vmem:[%s11547_s26 + $0x78] sm:$0xff] %v8527_v26 }
 0x4e3 PF: > { %s15_s22 = sadd.s32 1, %s11419_s22   ;;  %s14007_s18 = smov %s11411_s20 }
 0x4e4   : > { %p12_p10 = scmp.ge.s32.totalorder %s15_s22, 6   ;;  %s14008_s19 = smov %s11415_s21 }
 0x4e5   : > { %s14009_s20 = smov %s14012_s23  ;;  %s14010_s21 = smov %s14016_s24 }
 0x4e6   :  { %14 = sbr.rel (!%p12_p10) target bundleno = 3 (0x3), region = 94 }

</bundles_post_ra>
